<compile_context>
chip_gen: v7x
topology: tpu7x:2x2x1
jax: 0.10.0
libtpu: 0.0.40
codegen_flags: <defaults>
</compile_context>

<pallas_src>
import jax
import jax.numpy as jnp
from jax.experimental import pallas as pl
from jax.experimental.pallas import tpu as pltpu

N_EMBED = 32
BLOCK_SIZE = 8
N_HEAD = 4
HEAD_SIZE = N_EMBED // N_HEAD
N_LAYERS = 3
VOCAB_SIZE = 65          # deterministic stand-in for len(set(open('input.txt').read()))
VOCAB_PAD = 128          # lane-dense lm_head output width
PARAMS_PER_BLOCK = 13    # ln1w, ln1b, wk, wq, wv, wproj, bproj, ln2w, ln2b, w1, b1, w2, b2


def _layernorm(x, w, b, eps=1e-5):
    mu = jnp.mean(x, axis=-1, keepdims=True)
    var = jnp.mean((x - mu) ** 2, axis=-1, keepdims=True)
    return (x - mu) * jax.lax.rsqrt(var + eps) * w + b


def gpt_kernel(x_ref, wqkv_ref, wproj_ref, w128_ref, wout_ref, b128_ref,
               vecs_ref, out_ref):
    """All params arrive as a handful of stacked blobs:

    wqkv_ref : (N_LAYERS*3*N_HEAD, C, HEAD)  per-head K/Q/V weight columns
    wproj_ref: (N_LAYERS*N_HEAD, HEAD, C)    per-head proj weight rows
    w128_ref : (N_LAYERS+1, C, 4C)           FFN W1 per layer; slot N_LAYERS = padded lm_W
    wout_ref : (N_LAYERS, 4C, C)             FFN W2 per layer
    b128_ref : (N_LAYERS+1, 1, 4C)           FFN b1 per layer; slot N_LAYERS = padded lm_b
    vecs_ref : (N_LAYERS, 6, C)              rows: ln1w, ln1b, bproj, ln2w, ln2b, b2
    """
    x = x_ref[...]                               # (B, T, C) f32
    B, T, C = x.shape
    N = B * T
    x2 = x.reshape(N, C)                         # collapse (B,T): sublane merge only

    # causal mask (query row >= key col); finite mask value, no inf arithmetic
    row = jax.lax.broadcasted_iota(jnp.int32, (T, T), 0)
    col = jax.lax.broadcasted_iota(jnp.int32, (T, T), 1)
    causal = (row >= col)[None, :, :]            # (1, T, T)
    scale = C ** (-0.5)                          # reference quirk: n_embed**-0.5

    for L in range(N_LAYERS):
        V = vecs_ref[L]                          # (6, C)
        ln1w, ln1b, bproj, ln2w, ln2b, b2 = (V[i:i + 1, :] for i in range(6))

        # --- multi-head causal self-attention on ln1(x) ---
        h = _layernorm(x2, ln1w, ln1b)           # (N, C)
        att = jnp.zeros((N, C), jnp.float32)
        for hh in range(N_HEAD):
            kh = jnp.dot(h, wqkv_ref[(L * 3 + 0) * N_HEAD + hh],
                         preferred_element_type=jnp.float32)            # (N, D)
            qh = jnp.dot(h, wqkv_ref[(L * 3 + 1) * N_HEAD + hh],
                         preferred_element_type=jnp.float32)
            vh = jnp.dot(h, wqkv_ref[(L * 3 + 2) * N_HEAD + hh],
                         preferred_element_type=jnp.float32)
            qh = qh.reshape(B, T, HEAD_SIZE)     # sublane split, no lane movement
            kh = kh.reshape(B, T, HEAD_SIZE)
            vh = vh.reshape(B, T, HEAD_SIZE)

            wei = jnp.einsum('bqd,bkd->bqk', qh, kh,
                             preferred_element_type=jnp.float32) * scale
            wei = jnp.where(causal, wei, -1e30)
            wei = jnp.exp(wei - jnp.max(wei, axis=-1, keepdims=True))
            wei = wei * pl.reciprocal(jnp.sum(wei, axis=-1, keepdims=True),
                                      approx=True)
            oh = jnp.einsum('bqk,bkd->bqd', wei, vh,
                            preferred_element_type=jnp.float32)         # (B, T, D)
            # sum_h (oh_h @ Wproj_rows_h) == concat_h(oh_h) @ Wproj
            att = att + jnp.dot(oh.reshape(N, HEAD_SIZE),
                                wproj_ref[L * N_HEAD + hh],
                                preferred_element_type=jnp.float32)     # (N, C)
        x2 = x2 + att + bproj

        # --- feed-forward on ln2(x) ---
        h2 = _layernorm(x2, ln2w, ln2b)
        ff = jnp.dot(h2, w128_ref[L], preferred_element_type=jnp.float32) + b128_ref[L]
        ff = jnp.maximum(ff, 0.0)
        x2 = x2 + jnp.dot(ff, wout_ref[L], preferred_element_type=jnp.float32) + b2

    # lm head padded to 128 lanes -> lane-dense store; caller slices [..., :65]
    logits = jnp.dot(x2, w128_ref[N_LAYERS],
                     preferred_element_type=jnp.float32) + b128_ref[N_LAYERS]
    out_ref[...] = logits.reshape(B, T, VOCAB_PAD)


def _full_spec(a):
    nd = a.ndim
    return pl.BlockSpec(a.shape, lambda i, _nd=nd: (0,) * _nd)


def pack_params(flat):
    """Pack the per-module parameter list into a few stacked blobs."""
    w_qkv, w_proj, w_in, w_out, b_in, vecs = [], [], [], [], [], []
    i = 0
    for _ in range(N_LAYERS):
        (ln1w, ln1b, wk, wq, wv, wproj, bproj,
         ln2w, ln2b, w1, b1, w2, b2) = flat[i:i + PARAMS_PER_BLOCK]
        i += PARAMS_PER_BLOCK
        for w in (wk, wq, wv):                                   # t = 0,1,2
            for hh in range(N_HEAD):
                w_qkv.append(w[:, hh * HEAD_SIZE:(hh + 1) * HEAD_SIZE])   # (C, D)
        for hh in range(N_HEAD):
            w_proj.append(wproj[hh * HEAD_SIZE:(hh + 1) * HEAD_SIZE, :])  # (D, C)
        w_in.append(w1)                                          # (C, 4C)
        w_out.append(w2)                                         # (4C, C)
        b_in.append(b1.reshape(1, -1))                           # (1, 4C)
        vecs.append(jnp.stack([ln1w, ln1b, bproj, ln2w, ln2b, b2]))       # (6, C)
    lm_w, lm_b = flat[i], flat[i + 1]
    w_in.append(jnp.pad(lm_w, ((0, 0), (0, VOCAB_PAD - VOCAB_SIZE))))     # (C, 128)
    b_in.append(jnp.pad(lm_b.reshape(1, -1), ((0, 0), (0, VOCAB_PAD - VOCAB_SIZE))))
    return dict(
        w_qkv=jnp.stack(w_qkv),    # (N_LAYERS*3*N_HEAD, C, D)
        w_proj=jnp.stack(w_proj),  # (N_LAYERS*N_HEAD, D, C)
        w_in=jnp.stack(w_in),      # (N_LAYERS+1, C, 128)
        w_out=jnp.stack(w_out),    # (N_LAYERS, 128, C)
        b_in=jnp.stack(b_in),      # (N_LAYERS+1, 1, 128)
        vecs=jnp.stack(vecs),      # (N_LAYERS, 6, C)
    )


def bigram_forward(idx_tokens, params):
    """idx_tokens: (B, T) int32.  Returns (logits (B, T, VOCAB_SIZE), None)."""
    B, T = idx_tokens.shape
    # glue: embedding gathers in plain JAX
    tok_emb = params['tok_emb'][idx_tokens]                      # (B, T, C)
    pos_emb = params['pos_emb'][jnp.arange(T)]                   # (T, C)
    x = (tok_emb + pos_emb[None, :, :]).astype(jnp.float32)

    packed = params['packed']
    ins = [x, packed['w_qkv'], packed['w_proj'], packed['w_in'],
           packed['w_out'], packed['b_in'], packed['vecs']]

    # NOTE: at large B, switch to grid=(B // TB,) with a "parallel" batch axis
    # to shard across the two v7x TensorCores; at B=2 a single step is optimal.
    logits_pad = pl.pallas_call(
        gpt_kernel,
        out_shape=jax.ShapeDtypeStruct((B, T, VOCAB_PAD), jnp.float32),
        grid=(1,),
        in_specs=[_full_spec(a) for a in ins],
        out_specs=pl.BlockSpec((B, T, VOCAB_PAD), lambda i: (0, 0, 0)),
        compiler_params=pltpu.CompilerParams(
            dimension_semantics=("arbitrary",)),
    )(*ins)
    return logits_pad[..., :VOCAB_SIZE], None


def _reference_forward(idx_tokens, params):
    """Pure-JAX reference for correctness checking (unpacked params)."""
    T = idx_tokens.shape[1]
    x = params['tok_emb'][idx_tokens] + params['pos_emb'][jnp.arange(T)][None]
    causal = jnp.tril(jnp.ones((T, T), bool))
    p = params['flat']
    i = 0
    for _ in range(N_LAYERS):
        (ln1w, ln1b, wk, wq, wv, wproj, bproj,
         ln2w, ln2b, w1, b1, w2, b2) = p[i:i + PARAMS_PER_BLOCK]
        i += PARAMS_PER_BLOCK
        h = _layernorm(x, ln1w, ln1b)
        k, q, v = h @ wk, h @ wq, h @ wv
        outs = []
        for hh in range(N_HEAD):
            lo, hi = hh * HEAD_SIZE, (hh + 1) * HEAD_SIZE
            wei = jnp.einsum('bqh,bkh->bqk', q[..., lo:hi], k[..., lo:hi]) * (N_EMBED ** -0.5)
            wei = jnp.where(causal, wei, -jnp.inf)
            wei = jax.nn.softmax(wei, axis=-1)
            outs.append(wei @ v[..., lo:hi])
        x = x + (jnp.concatenate(outs, -1) @ wproj + bproj)
        h2 = _layernorm(x, ln2w, ln2b)
        x = x + (jnp.maximum(h2 @ w1 + b1, 0.0) @ w2 + b2)
    return x @ p[i] + p[i + 1]


def init_params(key):
    def nrm(k, shape, scale=0.02):
        return scale * jax.random.normal(k, shape, jnp.float32)

    keys = iter(jax.random.split(key, 64))
    params = {
        'tok_emb': nrm(next(keys), (VOCAB_SIZE, N_EMBED), 1.0),
        'pos_emb': nrm(next(keys), (BLOCK_SIZE, N_EMBED), 1.0),
    }
    flat = []
    for _ in range(N_LAYERS):
        flat += [
            1.0 + nrm(next(keys), (N_EMBED,)),            # ln1 weight
            nrm(next(keys), (N_EMBED,)),                  # ln1 bias
            nrm(next(keys), (N_EMBED, N_EMBED)),          # Wk (heads stacked in columns)
            nrm(next(keys), (N_EMBED, N_EMBED)),          # Wq
            nrm(next(keys), (N_EMBED, N_EMBED)),          # Wv
            nrm(next(keys), (N_EMBED, N_EMBED)),          # Wproj
            nrm(next(keys), (N_EMBED,)),                  # bproj
            1.0 + nrm(next(keys), (N_EMBED,)),            # ln2 weight
            nrm(next(keys), (N_EMBED,)),                  # ln2 bias
            nrm(next(keys), (N_EMBED, 4 * N_EMBED)),      # FF W1
            nrm(next(keys), (4 * N_EMBED,)),              # FF b1
            nrm(next(keys), (4 * N_EMBED, N_EMBED)),      # FF W2
            nrm(next(keys), (N_EMBED,)),                  # FF b2
        ]
    flat += [
        nrm(next(keys), (N_EMBED, VOCAB_SIZE)),           # lm_linear W
        nrm(next(keys), (VOCAB_SIZE,)),                   # lm_linear b
    ]
    params['flat'] = flat
    params['packed'] = pack_params(flat)
    return params


if __name__ == "__main__":
    key = jax.random.PRNGKey(0)
    pkey, ikey = jax.random.split(key)
    params = init_params(pkey)

    B, T = 2, BLOCK_SIZE
    idx_tokens = jax.random.randint(ikey, (B, T), 0, VOCAB_SIZE, dtype=jnp.int32)

    logits, loss = bigram_forward(idx_tokens, params)
    logits = jax.block_until_ready(logits)

    ref = _reference_forward(idx_tokens, params)
    assert logits.shape == (B, T, VOCAB_SIZE), logits.shape
    assert loss is None
    assert bool(jnp.all(jnp.isfinite(logits)))
    # Tolerance accounts for pl.reciprocal(approx=True) in the softmax denom.
    err = float(jnp.max(jnp.abs(logits - ref)))
    assert bool(jnp.allclose(logits, ref, atol=2e-3, rtol=2e-3)), err

    print("KERNEL_OK")
</pallas_src>

<mosaic_0001>
module attributes {stable_mosaic.version = 11 : i64} {
  func.func @gpt_kernel(%arg0: i32, %arg1: memref<2x8x32xf32, #tpu.memory_space<vmem>>, %arg2: memref<36x32x8xf32, #tpu.memory_space<vmem>>, %arg3: memref<12x8x32xf32, #tpu.memory_space<vmem>>, %arg4: memref<4x32x128xf32, #tpu.memory_space<vmem>>, %arg5: memref<3x128x32xf32, #tpu.memory_space<vmem>>, %arg6: memref<4x1x128xf32, #tpu.memory_space<vmem>>, %arg7: memref<3x6x32xf32, #tpu.memory_space<vmem>>, %arg8: memref<2x8x128xf32, #tpu.memory_space<vmem>>) attributes {dimension_semantics = [#tpu.dimension_semantics<arbitrary>], iteration_bounds = array<i64: 1>, scalar_prefetch = 0 : i64, scratch_operands = 0 : i64, tpu.core_type = #tpu.core_type<tc>, window_params = [{pipeline_mode = #tpu.pipeline_mode<synchronous>, transform_indices = @transform_0, window_bounds = array<i64: 2, 8, 32>}, {pipeline_mode = #tpu.pipeline_mode<synchronous>, transform_indices = @transform_1, window_bounds = array<i64: 36, 32, 8>}, {pipeline_mode = #tpu.pipeline_mode<synchronous>, transform_indices = @transform_2, window_bounds = array<i64: 12, 8, 32>}, {pipeline_mode = #tpu.pipeline_mode<synchronous>, transform_indices = @transform_3, window_bounds = array<i64: 4, 32, 128>}, {pipeline_mode = #tpu.pipeline_mode<synchronous>, transform_indices = @transform_4, window_bounds = array<i64: 3, 128, 32>}, {pipeline_mode = #tpu.pipeline_mode<synchronous>, transform_indices = @transform_5, window_bounds = array<i64: 4, 1, 128>}, {pipeline_mode = #tpu.pipeline_mode<synchronous>, transform_indices = @transform_6, window_bounds = array<i64: 3, 6, 32>}, {pipeline_mode = #tpu.pipeline_mode<synchronous>, transform_indices = @transform_7, window_bounds = array<i64: 2, 8, 128>}]} {
    %c0 = arith.constant 0 : index
    %c0_0 = arith.constant 0 : index
    %c0_1 = arith.constant 0 : index
    %0 = vector.load %arg1[%c0, %c0_0, %c0_1] : memref<2x8x32xf32, #tpu.memory_space<vmem>>, vector<2x8x32xf32>
    %1 = vector.shape_cast %0 : vector<2x8x32xf32> to vector<16x32xf32>
    %2 = tpu.iota {dimensions = array<i32: 0>} : vector<8x8xi32>
    %3 = tpu.iota {dimensions = array<i32: 1>} : vector<8x8xi32>
    %4 = arith.cmpi sge, %2, %3 : vector<8x8xi32>
    %5 = vector.shape_cast %4 : vector<8x8xi1> to vector<1x8x8xi1>
    %c0_2 = arith.constant 0 : index
    %c0_3 = arith.constant 0 : index
    %c0_4 = arith.constant 0 : index
    %6 = vector.load %arg7[%c0_2, %c0_3, %c0_4] : memref<3x6x32xf32, #tpu.memory_space<vmem>>, vector<1x6x32xf32>
    %7 = vector.shape_cast %6 : vector<1x6x32xf32> to vector<6x32xf32>
    %8 = vector.extract_strided_slice %7 {offsets = [0, 0], sizes = [1, 32], strides = [1, 1]} : vector<6x32xf32> to vector<1x32xf32>
    %9 = vector.extract_strided_slice %7 {offsets = [1, 0], sizes = [1, 32], strides = [1, 1]} : vector<6x32xf32> to vector<1x32xf32>
    %10 = vector.extract_strided_slice %7 {offsets = [2, 0], sizes = [1, 32], strides = [1, 1]} : vector<6x32xf32> to vector<1x32xf32>
    %11 = vector.extract_strided_slice %7 {offsets = [3, 0], sizes = [1, 32], strides = [1, 1]} : vector<6x32xf32> to vector<1x32xf32>
    %12 = vector.extract_strided_slice %7 {offsets = [4, 0], sizes = [1, 32], strides = [1, 1]} : vector<6x32xf32> to vector<1x32xf32>
    %13 = vector.extract_strided_slice %7 {offsets = [5, 0], sizes = [1, 32], strides = [1, 1]} : vector<6x32xf32> to vector<1x32xf32>
    %cst = arith.constant dense<0.000000e+00> : vector<16xf32>
    %14 = vector.multi_reduction <add>, %1, %cst [1] : vector<16x32xf32> to vector<16xf32>
    %15 = vector.shape_cast %14 : vector<16xf32> to vector<16x1xf32>
    %cst_5 = arith.constant 3.200000e+01 : f32
    %16 = vector.broadcast %cst_5 : f32 to vector<16x1xf32>
    %17 = arith.divf %15, %16 : vector<16x1xf32>
    %18 = vector.broadcast %17 : vector<16x1xf32> to vector<16x32xf32>
    %19 = arith.subf %1, %18 : vector<16x32xf32>
    %20 = arith.mulf %19, %19 : vector<16x32xf32>
    %cst_6 = arith.constant dense<0.000000e+00> : vector<16xf32>
    %21 = vector.multi_reduction <add>, %20, %cst_6 [1] : vector<16x32xf32> to vector<16xf32>
    %22 = vector.shape_cast %21 : vector<16xf32> to vector<16x1xf32>
    %cst_7 = arith.constant 3.200000e+01 : f32
    %23 = vector.broadcast %cst_7 : f32 to vector<16x1xf32>
    %24 = arith.divf %22, %23 : vector<16x1xf32>
    %25 = vector.broadcast %17 : vector<16x1xf32> to vector<16x32xf32>
    %26 = arith.subf %1, %25 : vector<16x32xf32>
    %cst_8 = arith.constant 9.99999974E-6 : f32
    %27 = vector.broadcast %cst_8 : f32 to vector<16x1xf32>
    %28 = arith.addf %24, %27 : vector<16x1xf32>
    %29 = math.rsqrt %28 : vector<16x1xf32>
    %30 = vector.broadcast %29 : vector<16x1xf32> to vector<16x32xf32>
    %31 = arith.mulf %26, %30 : vector<16x32xf32>
    %32 = vector.broadcast %8 : vector<1x32xf32> to vector<16x32xf32>
    %33 = arith.mulf %31, %32 : vector<16x32xf32>
    %34 = vector.broadcast %9 : vector<1x32xf32> to vector<16x32xf32>
    %35 = arith.addf %33, %34 : vector<16x32xf32>
    %cst_9 = arith.constant 0.000000e+00 : f32
    %36 = vector.broadcast %cst_9 : f32 to vector<16x32xf32>
    %c0_10 = arith.constant 0 : index
    %c0_11 = arith.constant 0 : index
    %c0_12 = arith.constant 0 : index
    %37 = vector.load %arg2[%c0_10, %c0_11, %c0_12] : memref<36x32x8xf32, #tpu.memory_space<vmem>>, vector<1x32x8xf32>
    %38 = vector.shape_cast %37 : vector<1x32x8xf32> to vector<32x8xf32>
    %cst_13 = arith.constant dense<0.000000e+00> : vector<16x8xf32>
    %39 = tpu.matmul %35, %38, %cst_13 {dimension_numbers = #tpu.dot_dimension_numbers<[1], [0], [0], [1], [0, 0, 1, 1], [], []>} : vector<16x32xf32>, vector<32x8xf32>, vector<16x8xf32> -> vector<16x8xf32>
    %c4 = arith.constant 4 : index
    %c0_14 = arith.constant 0 : index
    %c0_15 = arith.constant 0 : index
    %40 = vector.load %arg2[%c4, %c0_14, %c0_15] : memref<36x32x8xf32, #tpu.memory_space<vmem>>, vector<1x32x8xf32>
    %41 = vector.shape_cast %40 : vector<1x32x8xf32> to vector<32x8xf32>
    %cst_16 = arith.constant dense<0.000000e+00> : vector<16x8xf32>
    %42 = tpu.matmul %35, %41, %cst_16 {dimension_numbers = #tpu.dot_dimension_numbers<[1], [0], [0], [1], [0, 0, 1, 1], [], []>} : vector<16x32xf32>, vector<32x8xf32>, vector<16x8xf32> -> vector<16x8xf32>
    %c8 = arith.constant 8 : index
    %c0_17 = arith.constant 0 : index
    %c0_18 = arith.constant 0 : index
    %43 = vector.load %arg2[%c8, %c0_17, %c0_18] : memref<36x32x8xf32, #tpu.memory_space<vmem>>, vector<1x32x8xf32>
    %44 = vector.shape_cast %43 : vector<1x32x8xf32> to vector<32x8xf32>
    %cst_19 = arith.constant dense<0.000000e+00> : vector<16x8xf32>
    %45 = tpu.matmul %35, %44, %cst_19 {dimension_numbers = #tpu.dot_dimension_numbers<[1], [0], [0], [1], [0, 0, 1, 1], [], []>} : vector<16x32xf32>, vector<32x8xf32>, vector<16x8xf32> -> vector<16x8xf32>
    %46 = vector.shape_cast %42 : vector<16x8xf32> to vector<2x8x8xf32>
    %47 = vector.shape_cast %39 : vector<16x8xf32> to vector<2x8x8xf32>
    %48 = vector.shape_cast %45 : vector<16x8xf32> to vector<2x8x8xf32>
    "tpu.trace_start"() <{level = 10 : i32, message = "bqd,bkd->bqk"}> : () -> ()
    %cst_20 = arith.constant dense<0.000000e+00> : vector<2x8x8xf32>
    %49 = tpu.matmul %46, %47, %cst_20 {dimension_numbers = #tpu.dot_dimension_numbers<[2], [2], [1], [1], [0, 0, 0, 1, 1, 1], [0], [0]>} : vector<2x8x8xf32>, vector<2x8x8xf32>, vector<2x8x8xf32> -> vector<2x8x8xf32>
    "tpu.trace_stop"() : () -> ()
    %cst_21 = arith.constant 0.176776692 : f32
    %50 = vector.broadcast %cst_21 : f32 to vector<2x8x8xf32>
    %51 = arith.mulf %49, %50 : vector<2x8x8xf32>
    %cst_22 = arith.constant -1.000000e+30 : f32
    %52 = vector.shape_cast %5 : vector<1x8x8xi1> to vector<1x8x8xi1>
    %53 = vector.broadcast %52 : vector<1x8x8xi1> to vector<2x8x8xi1>
    %54 = vector.broadcast %cst_22 : f32 to vector<2x8x8xf32>
    %55 = arith.select %53, %51, %54 : vector<2x8x8xi1>, vector<2x8x8xf32>
    %cst_23 = arith.constant dense<0xFF800000> : vector<2x8xf32>
    %56 = vector.multi_reduction <maximumf>, %55, %cst_23 [2] : vector<2x8x8xf32> to vector<2x8xf32>
    %57 = vector.shape_cast %56 : vector<2x8xf32> to vector<2x8x1xf32>
    %58 = vector.broadcast %57 : vector<2x8x1xf32> to vector<2x8x8xf32>
    %59 = arith.subf %55, %58 : vector<2x8x8xf32>
    %60 = math.exp %59 : vector<2x8x8xf32>
    %cst_24 = arith.constant dense<0.000000e+00> : vector<2x8xf32>
    %61 = vector.multi_reduction <add>, %60, %cst_24 [2] : vector<2x8x8xf32> to vector<2x8xf32>
    %62 = vector.shape_cast %61 : vector<2x8xf32> to vector<2x8x1xf32>
    %63 = tpu.reciprocal %62 {approx = true} : vector<2x8x1xf32> -> vector<2x8x1xf32>
    %64 = vector.broadcast %63 : vector<2x8x1xf32> to vector<2x8x8xf32>
    %65 = arith.mulf %60, %64 : vector<2x8x8xf32>
    "tpu.trace_start"() <{level = 10 : i32, message = "bqk,bkd->bqd"}> : () -> ()
    %cst_25 = arith.constant dense<0.000000e+00> : vector<2x8x8xf32>
    %66 = tpu.matmul %65, %48, %cst_25 {dimension_numbers = #tpu.dot_dimension_numbers<[2], [1], [1], [2], [0, 0, 0, 1, 1, 2], [0], [0]>} : vector<2x8x8xf32>, vector<2x8x8xf32>, vector<2x8x8xf32> -> vector<2x8x8xf32>
    "tpu.trace_stop"() : () -> ()
    %67 = vector.shape_cast %66 : vector<2x8x8xf32> to vector<16x8xf32>
    %c0_26 = arith.constant 0 : index
    %c0_27 = arith.constant 0 : index
    %c0_28 = arith.constant 0 : index
    %68 = vector.load %arg3[%c0_26, %c0_27, %c0_28] : memref<12x8x32xf32, #tpu.memory_space<vmem>>, vector<1x8x32xf32>
    %69 = vector.shape_cast %68 : vector<1x8x32xf32> to vector<8x32xf32>
    %cst_29 = arith.constant dense<0.000000e+00> : vector<16x32xf32>
    %70 = tpu.matmul %67, %69, %cst_29 {dimension_numbers = #tpu.dot_dimension_numbers<[1], [0], [0], [1], [0, 0, 1, 1], [], []>} : vector<16x8xf32>, vector<8x32xf32>, vector<16x32xf32> -> vector<16x32xf32>
    %71 = arith.addf %36, %70 : vector<16x32xf32>
    %c1 = arith.constant 1 : index
    %c0_30 = arith.constant 0 : index
    %c0_31 = arith.constant 0 : index
    %72 = vector.load %arg2[%c1, %c0_30, %c0_31] : memref<36x32x8xf32, #tpu.memory_space<vmem>>, vector<1x32x8xf32>
    %73 = vector.shape_cast %72 : vector<1x32x8xf32> to vector<32x8xf32>
    %cst_32 = arith.constant dense<0.000000e+00> : vector<16x8xf32>
    %74 = tpu.matmul %35, %73, %cst_32 {dimension_numbers = #tpu.dot_dimension_numbers<[1], [0], [0], [1], [0, 0, 1, 1], [], []>} : vector<16x32xf32>, vector<32x8xf32>, vector<16x8xf32> -> vector<16x8xf32>
    %c5 = arith.constant 5 : index
    %c0_33 = arith.constant 0 : index
    %c0_34 = arith.constant 0 : index
    %75 = vector.load %arg2[%c5, %c0_33, %c0_34] : memref<36x32x8xf32, #tpu.memory_space<vmem>>, vector<1x32x8xf32>
    %76 = vector.shape_cast %75 : vector<1x32x8xf32> to vector<32x8xf32>
    %cst_35 = arith.constant dense<0.000000e+00> : vector<16x8xf32>
    %77 = tpu.matmul %35, %76, %cst_35 {dimension_numbers = #tpu.dot_dimension_numbers<[1], [0], [0], [1], [0, 0, 1, 1], [], []>} : vector<16x32xf32>, vector<32x8xf32>, vector<16x8xf32> -> vector<16x8xf32>
    %c9 = arith.constant 9 : index
    %c0_36 = arith.constant 0 : index
    %c0_37 = arith.constant 0 : index
    %78 = vector.load %arg2[%c9, %c0_36, %c0_37] : memref<36x32x8xf32, #tpu.memory_space<vmem>>, vector<1x32x8xf32>
    %79 = vector.shape_cast %78 : vector<1x32x8xf32> to vector<32x8xf32>
    %cst_38 = arith.constant dense<0.000000e+00> : vector<16x8xf32>
    %80 = tpu.matmul %35, %79, %cst_38 {dimension_numbers = #tpu.dot_dimension_numbers<[1], [0], [0], [1], [0, 0, 1, 1], [], []>} : vector<16x32xf32>, vector<32x8xf32>, vector<16x8xf32> -> vector<16x8xf32>
    %81 = vector.shape_cast %77 : vector<16x8xf32> to vector<2x8x8xf32>
    %82 = vector.shape_cast %74 : vector<16x8xf32> to vector<2x8x8xf32>
    %83 = vector.shape_cast %80 : vector<16x8xf32> to vector<2x8x8xf32>
    "tpu.trace_start"() <{level = 10 : i32, message = "bqd,bkd->bqk"}> : () -> ()
    %cst_39 = arith.constant dense<0.000000e+00> : vector<2x8x8xf32>
    %84 = tpu.matmul %81, %82, %cst_39 {dimension_numbers = #tpu.dot_dimension_numbers<[2], [2], [1], [1], [0, 0, 0, 1, 1, 1], [0], [0]>} : vector<2x8x8xf32>, vector<2x8x8xf32>, vector<2x8x8xf32> -> vector<2x8x8xf32>
    "tpu.trace_stop"() : () -> ()
    %cst_40 = arith.constant 0.176776692 : f32
    %85 = vector.broadcast %cst_40 : f32 to vector<2x8x8xf32>
    %86 = arith.mulf %84, %85 : vector<2x8x8xf32>
    %cst_41 = arith.constant -1.000000e+30 : f32
    %87 = vector.shape_cast %5 : vector<1x8x8xi1> to vector<1x8x8xi1>
    %88 = vector.broadcast %87 : vector<1x8x8xi1> to vector<2x8x8xi1>
    %89 = vector.broadcast %cst_41 : f32 to vector<2x8x8xf32>
    %90 = arith.select %88, %86, %89 : vector<2x8x8xi1>, vector<2x8x8xf32>
    %cst_42 = arith.constant dense<0xFF800000> : vector<2x8xf32>
    %91 = vector.multi_reduction <maximumf>, %90, %cst_42 [2] : vector<2x8x8xf32> to vector<2x8xf32>
    %92 = vector.shape_cast %91 : vector<2x8xf32> to vector<2x8x1xf32>
    %93 = vector.broadcast %92 : vector<2x8x1xf32> to vector<2x8x8xf32>
    %94 = arith.subf %90, %93 : vector<2x8x8xf32>
    %95 = math.exp %94 : vector<2x8x8xf32>
    %cst_43 = arith.constant dense<0.000000e+00> : vector<2x8xf32>
    %96 = vector.multi_reduction <add>, %95, %cst_43 [2] : vector<2x8x8xf32> to vector<2x8xf32>
    %97 = vector.shape_cast %96 : vector<2x8xf32> to vector<2x8x1xf32>
    %98 = tpu.reciprocal %97 {approx = true} : vector<2x8x1xf32> -> vector<2x8x1xf32>
    %99 = vector.broadcast %98 : vector<2x8x1xf32> to vector<2x8x8xf32>
    %100 = arith.mulf %95, %99 : vector<2x8x8xf32>
    "tpu.trace_start"() <{level = 10 : i32, message = "bqk,bkd->bqd"}> : () -> ()
    %cst_44 = arith.constant dense<0.000000e+00> : vector<2x8x8xf32>
    %101 = tpu.matmul %100, %83, %cst_44 {dimension_numbers = #tpu.dot_dimension_numbers<[2], [1], [1], [2], [0, 0, 0, 1, 1, 2], [0], [0]>} : vector<2x8x8xf32>, vector<2x8x8xf32>, vector<2x8x8xf32> -> vector<2x8x8xf32>
    "tpu.trace_stop"() : () -> ()
    %102 = vector.shape_cast %101 : vector<2x8x8xf32> to vector<16x8xf32>
    %c1_45 = arith.constant 1 : index
    %c0_46 = arith.constant 0 : index
    %c0_47 = arith.constant 0 : index
    %103 = vector.load %arg3[%c1_45, %c0_46, %c0_47] : memref<12x8x32xf32, #tpu.memory_space<vmem>>, vector<1x8x32xf32>
    %104 = vector.shape_cast %103 : vector<1x8x32xf32> to vector<8x32xf32>
    %cst_48 = arith.constant dense<0.000000e+00> : vector<16x32xf32>
    %105 = tpu.matmul %102, %104, %cst_48 {dimension_numbers = #tpu.dot_dimension_numbers<[1], [0], [0], [1], [0, 0, 1, 1], [], []>} : vector<16x8xf32>, vector<8x32xf32>, vector<16x32xf32> -> vector<16x32xf32>
    %106 = arith.addf %71, %105 : vector<16x32xf32>
    %c2 = arith.constant 2 : index
    %c0_49 = arith.constant 0 : index
    %c0_50 = arith.constant 0 : index
    %107 = vector.load %arg2[%c2, %c0_49, %c0_50] : memref<36x32x8xf32, #tpu.memory_space<vmem>>, vector<1x32x8xf32>
    %108 = vector.shape_cast %107 : vector<1x32x8xf32> to vector<32x8xf32>
    %cst_51 = arith.constant dense<0.000000e+00> : vector<16x8xf32>
    %109 = tpu.matmul %35, %108, %cst_51 {dimension_numbers = #tpu.dot_dimension_numbers<[1], [0], [0], [1], [0, 0, 1, 1], [], []>} : vector<16x32xf32>, vector<32x8xf32>, vector<16x8xf32> -> vector<16x8xf32>
    %c6 = arith.constant 6 : index
    %c0_52 = arith.constant 0 : index
    %c0_53 = arith.constant 0 : index
    %110 = vector.load %arg2[%c6, %c0_52, %c0_53] : memref<36x32x8xf32, #tpu.memory_space<vmem>>, vector<1x32x8xf32>
    %111 = vector.shape_cast %110 : vector<1x32x8xf32> to vector<32x8xf32>
    %cst_54 = arith.constant dense<0.000000e+00> : vector<16x8xf32>
    %112 = tpu.matmul %35, %111, %cst_54 {dimension_numbers = #tpu.dot_dimension_numbers<[1], [0], [0], [1], [0, 0, 1, 1], [], []>} : vector<16x32xf32>, vector<32x8xf32>, vector<16x8xf32> -> vector<16x8xf32>
    %c10 = arith.constant 10 : index
    %c0_55 = arith.constant 0 : index
    %c0_56 = arith.constant 0 : index
    %113 = vector.load %arg2[%c10, %c0_55, %c0_56] : memref<36x32x8xf32, #tpu.memory_space<vmem>>, vector<1x32x8xf32>
    %114 = vector.shape_cast %113 : vector<1x32x8xf32> to vector<32x8xf32>
    %cst_57 = arith.constant dense<0.000000e+00> : vector<16x8xf32>
    %115 = tpu.matmul %35, %114, %cst_57 {dimension_numbers = #tpu.dot_dimension_numbers<[1], [0], [0], [1], [0, 0, 1, 1], [], []>} : vector<16x32xf32>, vector<32x8xf32>, vector<16x8xf32> -> vector<16x8xf32>
    %116 = vector.shape_cast %112 : vector<16x8xf32> to vector<2x8x8xf32>
    %117 = vector.shape_cast %109 : vector<16x8xf32> to vector<2x8x8xf32>
    %118 = vector.shape_cast %115 : vector<16x8xf32> to vector<2x8x8xf32>
    "tpu.trace_start"() <{level = 10 : i32, message = "bqd,bkd->bqk"}> : () -> ()
    %cst_58 = arith.constant dense<0.000000e+00> : vector<2x8x8xf32>
    %119 = tpu.matmul %116, %117, %cst_58 {dimension_numbers = #tpu.dot_dimension_numbers<[2], [2], [1], [1], [0, 0, 0, 1, 1, 1], [0], [0]>} : vector<2x8x8xf32>, vector<2x8x8xf32>, vector<2x8x8xf32> -> vector<2x8x8xf32>
    "tpu.trace_stop"() : () -> ()
    %cst_59 = arith.constant 0.176776692 : f32
    %120 = vector.broadcast %cst_59 : f32 to vector<2x8x8xf32>
    %121 = arith.mulf %119, %120 : vector<2x8x8xf32>
    %cst_60 = arith.constant -1.000000e+30 : f32
    %122 = vector.shape_cast %5 : vector<1x8x8xi1> to vector<1x8x8xi1>
    %123 = vector.broadcast %122 : vector<1x8x8xi1> to vector<2x8x8xi1>
    %124 = vector.broadcast %cst_60 : f32 to vector<2x8x8xf32>
    %125 = arith.select %123, %121, %124 : vector<2x8x8xi1>, vector<2x8x8xf32>
    %cst_61 = arith.constant dense<0xFF800000> : vector<2x8xf32>
    %126 = vector.multi_reduction <maximumf>, %125, %cst_61 [2] : vector<2x8x8xf32> to vector<2x8xf32>
    %127 = vector.shape_cast %126 : vector<2x8xf32> to vector<2x8x1xf32>
    %128 = vector.broadcast %127 : vector<2x8x1xf32> to vector<2x8x8xf32>
    %129 = arith.subf %125, %128 : vector<2x8x8xf32>
    %130 = math.exp %129 : vector<2x8x8xf32>
    %cst_62 = arith.constant dense<0.000000e+00> : vector<2x8xf32>
    %131 = vector.multi_reduction <add>, %130, %cst_62 [2] : vector<2x8x8xf32> to vector<2x8xf32>
    %132 = vector.shape_cast %131 : vector<2x8xf32> to vector<2x8x1xf32>
    %133 = tpu.reciprocal %132 {approx = true} : vector<2x8x1xf32> -> vector<2x8x1xf32>
    %134 = vector.broadcast %133 : vector<2x8x1xf32> to vector<2x8x8xf32>
    %135 = arith.mulf %130, %134 : vector<2x8x8xf32>
    "tpu.trace_start"() <{level = 10 : i32, message = "bqk,bkd->bqd"}> : () -> ()
    %cst_63 = arith.constant dense<0.000000e+00> : vector<2x8x8xf32>
    %136 = tpu.matmul %135, %118, %cst_63 {dimension_numbers = #tpu.dot_dimension_numbers<[2], [1], [1], [2], [0, 0, 0, 1, 1, 2], [0], [0]>} : vector<2x8x8xf32>, vector<2x8x8xf32>, vector<2x8x8xf32> -> vector<2x8x8xf32>
    "tpu.trace_stop"() : () -> ()
    %137 = vector.shape_cast %136 : vector<2x8x8xf32> to vector<16x8xf32>
    %c2_64 = arith.constant 2 : index
    %c0_65 = arith.constant 0 : index
    %c0_66 = arith.constant 0 : index
    %138 = vector.load %arg3[%c2_64, %c0_65, %c0_66] : memref<12x8x32xf32, #tpu.memory_space<vmem>>, vector<1x8x32xf32>
    %139 = vector.shape_cast %138 : vector<1x8x32xf32> to vector<8x32xf32>
    %cst_67 = arith.constant dense<0.000000e+00> : vector<16x32xf32>
    %140 = tpu.matmul %137, %139, %cst_67 {dimension_numbers = #tpu.dot_dimension_numbers<[1], [0], [0], [1], [0, 0, 1, 1], [], []>} : vector<16x8xf32>, vector<8x32xf32>, vector<16x32xf32> -> vector<16x32xf32>
    %141 = arith.addf %106, %140 : vector<16x32xf32>
    %c3 = arith.constant 3 : index
    %c0_68 = arith.constant 0 : index
    %c0_69 = arith.constant 0 : index
    %142 = vector.load %arg2[%c3, %c0_68, %c0_69] : memref<36x32x8xf32, #tpu.memory_space<vmem>>, vector<1x32x8xf32>
    %143 = vector.shape_cast %142 : vector<1x32x8xf32> to vector<32x8xf32>
    %cst_70 = arith.constant dense<0.000000e+00> : vector<16x8xf32>
    %144 = tpu.matmul %35, %143, %cst_70 {dimension_numbers = #tpu.dot_dimension_numbers<[1], [0], [0], [1], [0, 0, 1, 1], [], []>} : vector<16x32xf32>, vector<32x8xf32>, vector<16x8xf32> -> vector<16x8xf32>
    %c7 = arith.constant 7 : index
    %c0_71 = arith.constant 0 : index
    %c0_72 = arith.constant 0 : index
    %145 = vector.load %arg2[%c7, %c0_71, %c0_72] : memref<36x32x8xf32, #tpu.memory_space<vmem>>, vector<1x32x8xf32>
    %146 = vector.shape_cast %145 : vector<1x32x8xf32> to vector<32x8xf32>
    %cst_73 = arith.constant dense<0.000000e+00> : vector<16x8xf32>
    %147 = tpu.matmul %35, %146, %cst_73 {dimension_numbers = #tpu.dot_dimension_numbers<[1], [0], [0], [1], [0, 0, 1, 1], [], []>} : vector<16x32xf32>, vector<32x8xf32>, vector<16x8xf32> -> vector<16x8xf32>
    %c11 = arith.constant 11 : index
    %c0_74 = arith.constant 0 : index
    %c0_75 = arith.constant 0 : index
    %148 = vector.load %arg2[%c11, %c0_74, %c0_75] : memref<36x32x8xf32, #tpu.memory_space<vmem>>, vector<1x32x8xf32>
    %149 = vector.shape_cast %148 : vector<1x32x8xf32> to vector<32x8xf32>
    %cst_76 = arith.constant dense<0.000000e+00> : vector<16x8xf32>
    %150 = tpu.matmul %35, %149, %cst_76 {dimension_numbers = #tpu.dot_dimension_numbers<[1], [0], [0], [1], [0, 0, 1, 1], [], []>} : vector<16x32xf32>, vector<32x8xf32>, vector<16x8xf32> -> vector<16x8xf32>
    %151 = vector.shape_cast %147 : vector<16x8xf32> to vector<2x8x8xf32>
    %152 = vector.shape_cast %144 : vector<16x8xf32> to vector<2x8x8xf32>
    %153 = vector.shape_cast %150 : vector<16x8xf32> to vector<2x8x8xf32>
    "tpu.trace_start"() <{level = 10 : i32, message = "bqd,bkd->bqk"}> : () -> ()
    %cst_77 = arith.constant dense<0.000000e+00> : vector<2x8x8xf32>
    %154 = tpu.matmul %151, %152, %cst_77 {dimension_numbers = #tpu.dot_dimension_numbers<[2], [2], [1], [1], [0, 0, 0, 1, 1, 1], [0], [0]>} : vector<2x8x8xf32>, vector<2x8x8xf32>, vector<2x8x8xf32> -> vector<2x8x8xf32>
    "tpu.trace_stop"() : () -> ()
    %cst_78 = arith.constant 0.176776692 : f32
    %155 = vector.broadcast %cst_78 : f32 to vector<2x8x8xf32>
    %156 = arith.mulf %154, %155 : vector<2x8x8xf32>
    %cst_79 = arith.constant -1.000000e+30 : f32
    %157 = vector.shape_cast %5 : vector<1x8x8xi1> to vector<1x8x8xi1>
    %158 = vector.broadcast %157 : vector<1x8x8xi1> to vector<2x8x8xi1>
    %159 = vector.broadcast %cst_79 : f32 to vector<2x8x8xf32>
    %160 = arith.select %158, %156, %159 : vector<2x8x8xi1>, vector<2x8x8xf32>
    %cst_80 = arith.constant dense<0xFF800000> : vector<2x8xf32>
    %161 = vector.multi_reduction <maximumf>, %160, %cst_80 [2] : vector<2x8x8xf32> to vector<2x8xf32>
    %162 = vector.shape_cast %161 : vector<2x8xf32> to vector<2x8x1xf32>
    %163 = vector.broadcast %162 : vector<2x8x1xf32> to vector<2x8x8xf32>
    %164 = arith.subf %160, %163 : vector<2x8x8xf32>
    %165 = math.exp %164 : vector<2x8x8xf32>
    %cst_81 = arith.constant dense<0.000000e+00> : vector<2x8xf32>
    %166 = vector.multi_reduction <add>, %165, %cst_81 [2] : vector<2x8x8xf32> to vector<2x8xf32>
    %167 = vector.shape_cast %166 : vector<2x8xf32> to vector<2x8x1xf32>
    %168 = tpu.reciprocal %167 {approx = true} : vector<2x8x1xf32> -> vector<2x8x1xf32>
    %169 = vector.broadcast %168 : vector<2x8x1xf32> to vector<2x8x8xf32>
    %170 = arith.mulf %165, %169 : vector<2x8x8xf32>
    "tpu.trace_start"() <{level = 10 : i32, message = "bqk,bkd->bqd"}> : () -> ()
    %cst_82 = arith.constant dense<0.000000e+00> : vector<2x8x8xf32>
    %171 = tpu.matmul %170, %153, %cst_82 {dimension_numbers = #tpu.dot_dimension_numbers<[2], [1], [1], [2], [0, 0, 0, 1, 1, 2], [0], [0]>} : vector<2x8x8xf32>, vector<2x8x8xf32>, vector<2x8x8xf32> -> vector<2x8x8xf32>
    "tpu.trace_stop"() : () -> ()
    %172 = vector.shape_cast %171 : vector<2x8x8xf32> to vector<16x8xf32>
    %c3_83 = arith.constant 3 : index
    %c0_84 = arith.constant 0 : index
    %c0_85 = arith.constant 0 : index
    %173 = vector.load %arg3[%c3_83, %c0_84, %c0_85] : memref<12x8x32xf32, #tpu.memory_space<vmem>>, vector<1x8x32xf32>
    %174 = vector.shape_cast %173 : vector<1x8x32xf32> to vector<8x32xf32>
    %cst_86 = arith.constant dense<0.000000e+00> : vector<16x32xf32>
    %175 = tpu.matmul %172, %174, %cst_86 {dimension_numbers = #tpu.dot_dimension_numbers<[1], [0], [0], [1], [0, 0, 1, 1], [], []>} : vector<16x8xf32>, vector<8x32xf32>, vector<16x32xf32> -> vector<16x32xf32>
    %176 = arith.addf %141, %175 : vector<16x32xf32>
    %177 = arith.addf %1, %176 : vector<16x32xf32>
    %178 = vector.broadcast %10 : vector<1x32xf32> to vector<16x32xf32>
    %179 = arith.addf %177, %178 : vector<16x32xf32>
    %cst_87 = arith.constant dense<0.000000e+00> : vector<16xf32>
    %180 = vector.multi_reduction <add>, %179, %cst_87 [1] : vector<16x32xf32> to vector<16xf32>
    %181 = vector.shape_cast %180 : vector<16xf32> to vector<16x1xf32>
    %cst_88 = arith.constant 3.200000e+01 : f32
    %182 = vector.broadcast %cst_88 : f32 to vector<16x1xf32>
    %183 = arith.divf %181, %182 : vector<16x1xf32>
    %184 = vector.broadcast %183 : vector<16x1xf32> to vector<16x32xf32>
    %185 = arith.subf %179, %184 : vector<16x32xf32>
    %186 = arith.mulf %185, %185 : vector<16x32xf32>
    %cst_89 = arith.constant dense<0.000000e+00> : vector<16xf32>
    %187 = vector.multi_reduction <add>, %186, %cst_89 [1] : vector<16x32xf32> to vector<16xf32>
    %188 = vector.shape_cast %187 : vector<16xf32> to vector<16x1xf32>
    %cst_90 = arith.constant 3.200000e+01 : f32
    %189 = vector.broadcast %cst_90 : f32 to vector<16x1xf32>
    %190 = arith.divf %188, %189 : vector<16x1xf32>
    %191 = vector.broadcast %183 : vector<16x1xf32> to vector<16x32xf32>
    %192 = arith.subf %179, %191 : vector<16x32xf32>
    %cst_91 = arith.constant 9.99999974E-6 : f32
    %193 = vector.broadcast %cst_91 : f32 to vector<16x1xf32>
    %194 = arith.addf %190, %193 : vector<16x1xf32>
    %195 = math.rsqrt %194 : vector<16x1xf32>
    %196 = vector.broadcast %195 : vector<16x1xf32> to vector<16x32xf32>
    %197 = arith.mulf %192, %196 : vector<16x32xf32>
    %198 = vector.broadcast %11 : vector<1x32xf32> to vector<16x32xf32>
    %199 = arith.mulf %197, %198 : vector<16x32xf32>
    %200 = vector.broadcast %12 : vector<1x32xf32> to vector<16x32xf32>
    %201 = arith.addf %199, %200 : vector<16x32xf32>
    %c0_92 = arith.constant 0 : index
    %c0_93 = arith.constant 0 : index
    %c0_94 = arith.constant 0 : index
    %202 = vector.load %arg4[%c0_92, %c0_93, %c0_94] : memref<4x32x128xf32, #tpu.memory_space<vmem>>, vector<1x32x128xf32>
    %203 = vector.shape_cast %202 : vector<1x32x128xf32> to vector<32x128xf32>
    %cst_95 = arith.constant dense<0.000000e+00> : vector<16x128xf32>
    %204 = tpu.matmul %201, %203, %cst_95 {dimension_numbers = #tpu.dot_dimension_numbers<[1], [0], [0], [1], [0, 0, 1, 1], [], []>} : vector<16x32xf32>, vector<32x128xf32>, vector<16x128xf32> -> vector<16x128xf32>
    %c0_96 = arith.constant 0 : index
    %c0_97 = arith.constant 0 : index
    %c0_98 = arith.constant 0 : index
    %205 = vector.load %arg6[%c0_96, %c0_97, %c0_98] : memref<4x1x128xf32, #tpu.memory_space<vmem>>, vector<1x1x128xf32>
    %206 = vector.shape_cast %205 : vector<1x1x128xf32> to vector<1x128xf32>
    %207 = vector.broadcast %206 : vector<1x128xf32> to vector<16x128xf32>
    %208 = arith.addf %204, %207 : vector<16x128xf32>
    %cst_99 = arith.constant 0.000000e+00 : f32
    %209 = vector.broadcast %cst_99 : f32 to vector<16x128xf32>
    %210 = arith.maximumf %208, %209 : vector<16x128xf32>
    %c0_100 = arith.constant 0 : index
    %c0_101 = arith.constant 0 : index
    %c0_102 = arith.constant 0 : index
    %211 = vector.load %arg5[%c0_100, %c0_101, %c0_102] : memref<3x128x32xf32, #tpu.memory_space<vmem>>, vector<1x128x32xf32>
    %212 = vector.shape_cast %211 : vector<1x128x32xf32> to vector<128x32xf32>
    %cst_103 = arith.constant dense<0.000000e+00> : vector<16x32xf32>
    %213 = tpu.matmul %210, %212, %cst_103 {dimension_numbers = #tpu.dot_dimension_numbers<[1], [0], [0], [1], [0, 0, 1, 1], [], []>} : vector<16x128xf32>, vector<128x32xf32>, vector<16x32xf32> -> vector<16x32xf32>
    %214 = arith.addf %179, %213 : vector<16x32xf32>
    %215 = vector.broadcast %13 : vector<1x32xf32> to vector<16x32xf32>
    %216 = arith.addf %214, %215 : vector<16x32xf32>
    %c1_104 = arith.constant 1 : index
    %c0_105 = arith.constant 0 : index
    %c0_106 = arith.constant 0 : index
    %217 = vector.load %arg7[%c1_104, %c0_105, %c0_106] : memref<3x6x32xf32, #tpu.memory_space<vmem>>, vector<1x6x32xf32>
    %218 = vector.shape_cast %217 : vector<1x6x32xf32> to vector<6x32xf32>
    %219 = vector.extract_strided_slice %218 {offsets = [0, 0], sizes = [1, 32], strides = [1, 1]} : vector<6x32xf32> to vector<1x32xf32>
    %220 = vector.extract_strided_slice %218 {offsets = [1, 0], sizes = [1, 32], strides = [1, 1]} : vector<6x32xf32> to vector<1x32xf32>
    %221 = vector.extract_strided_slice %218 {offsets = [2, 0], sizes = [1, 32], strides = [1, 1]} : vector<6x32xf32> to vector<1x32xf32>
    %222 = vector.extract_strided_slice %218 {offsets = [3, 0], sizes = [1, 32], strides = [1, 1]} : vector<6x32xf32> to vector<1x32xf32>
    %223 = vector.extract_strided_slice %218 {offsets = [4, 0], sizes = [1, 32], strides = [1, 1]} : vector<6x32xf32> to vector<1x32xf32>
    %224 = vector.extract_strided_slice %218 {offsets = [5, 0], sizes = [1, 32], strides = [1, 1]} : vector<6x32xf32> to vector<1x32xf32>
    %cst_107 = arith.constant dense<0.000000e+00> : vector<16xf32>
    %225 = vector.multi_reduction <add>, %216, %cst_107 [1] : vector<16x32xf32> to vector<16xf32>
    %226 = vector.shape_cast %225 : vector<16xf32> to vector<16x1xf32>
    %cst_108 = arith.constant 3.200000e+01 : f32
    %227 = vector.broadcast %cst_108 : f32 to vector<16x1xf32>
    %228 = arith.divf %226, %227 : vector<16x1xf32>
    %229 = vector.broadcast %228 : vector<16x1xf32> to vector<16x32xf32>
    %230 = arith.subf %216, %229 : vector<16x32xf32>
    %231 = arith.mulf %230, %230 : vector<16x32xf32>
    %cst_109 = arith.constant dense<0.000000e+00> : vector<16xf32>
    %232 = vector.multi_reduction <add>, %231, %cst_109 [1] : vector<16x32xf32> to vector<16xf32>
    %233 = vector.shape_cast %232 : vector<16xf32> to vector<16x1xf32>
    %cst_110 = arith.constant 3.200000e+01 : f32
    %234 = vector.broadcast %cst_110 : f32 to vector<16x1xf32>
    %235 = arith.divf %233, %234 : vector<16x1xf32>
    %236 = vector.broadcast %228 : vector<16x1xf32> to vector<16x32xf32>
    %237 = arith.subf %216, %236 : vector<16x32xf32>
    %cst_111 = arith.constant 9.99999974E-6 : f32
    %238 = vector.broadcast %cst_111 : f32 to vector<16x1xf32>
    %239 = arith.addf %235, %238 : vector<16x1xf32>
    %240 = math.rsqrt %239 : vector<16x1xf32>
    %241 = vector.broadcast %240 : vector<16x1xf32> to vector<16x32xf32>
    %242 = arith.mulf %237, %241 : vector<16x32xf32>
    %243 = vector.broadcast %219 : vector<1x32xf32> to vector<16x32xf32>
    %244 = arith.mulf %242, %243 : vector<16x32xf32>
    %245 = vector.broadcast %220 : vector<1x32xf32> to vector<16x32xf32>
    %246 = arith.addf %244, %245 : vector<16x32xf32>
    %cst_112 = arith.constant 0.000000e+00 : f32
    %247 = vector.broadcast %cst_112 : f32 to vector<16x32xf32>
    %c12 = arith.constant 12 : index
    %c0_113 = arith.constant 0 : index
    %c0_114 = arith.constant 0 : index
    %248 = vector.load %arg2[%c12, %c0_113, %c0_114] : memref<36x32x8xf32, #tpu.memory_space<vmem>>, vector<1x32x8xf32>
    %249 = vector.shape_cast %248 : vector<1x32x8xf32> to vector<32x8xf32>
    %cst_115 = arith.constant dense<0.000000e+00> : vector<16x8xf32>
    %250 = tpu.matmul %246, %249, %cst_115 {dimension_numbers = #tpu.dot_dimension_numbers<[1], [0], [0], [1], [0, 0, 1, 1], [], []>} : vector<16x32xf32>, vector<32x8xf32>, vector<16x8xf32> -> vector<16x8xf32>
    %c16 = arith.constant 16 : index
    %c0_116 = arith.constant 0 : index
    %c0_117 = arith.constant 0 : index
    %251 = vector.load %arg2[%c16, %c0_116, %c0_117] : memref<36x32x8xf32, #tpu.memory_space<vmem>>, vector<1x32x8xf32>
    %252 = vector.shape_cast %251 : vector<1x32x8xf32> to vector<32x8xf32>
    %cst_118 = arith.constant dense<0.000000e+00> : vector<16x8xf32>
    %253 = tpu.matmul %246, %252, %cst_118 {dimension_numbers = #tpu.dot_dimension_numbers<[1], [0], [0], [1], [0, 0, 1, 1], [], []>} : vector<16x32xf32>, vector<32x8xf32>, vector<16x8xf32> -> vector<16x8xf32>
    %c20 = arith.constant 20 : index
    %c0_119 = arith.constant 0 : index
    %c0_120 = arith.constant 0 : index
    %254 = vector.load %arg2[%c20, %c0_119, %c0_120] : memref<36x32x8xf32, #tpu.memory_space<vmem>>, vector<1x32x8xf32>
    %255 = vector.shape_cast %254 : vector<1x32x8xf32> to vector<32x8xf32>
    %cst_121 = arith.constant dense<0.000000e+00> : vector<16x8xf32>
    %256 = tpu.matmul %246, %255, %cst_121 {dimension_numbers = #tpu.dot_dimension_numbers<[1], [0], [0], [1], [0, 0, 1, 1], [], []>} : vector<16x32xf32>, vector<32x8xf32>, vector<16x8xf32> -> vector<16x8xf32>
    %257 = vector.shape_cast %253 : vector<16x8xf32> to vector<2x8x8xf32>
    %258 = vector.shape_cast %250 : vector<16x8xf32> to vector<2x8x8xf32>
    %259 = vector.shape_cast %256 : vector<16x8xf32> to vector<2x8x8xf32>
    "tpu.trace_start"() <{level = 10 : i32, message = "bqd,bkd->bqk"}> : () -> ()
    %cst_122 = arith.constant dense<0.000000e+00> : vector<2x8x8xf32>
    %260 = tpu.matmul %257, %258, %cst_122 {dimension_numbers = #tpu.dot_dimension_numbers<[2], [2], [1], [1], [0, 0, 0, 1, 1, 1], [0], [0]>} : vector<2x8x8xf32>, vector<2x8x8xf32>, vector<2x8x8xf32> -> vector<2x8x8xf32>
    "tpu.trace_stop"() : () -> ()
    %cst_123 = arith.constant 0.176776692 : f32
    %261 = vector.broadcast %cst_123 : f32 to vector<2x8x8xf32>
    %262 = arith.mulf %260, %261 : vector<2x8x8xf32>
    %cst_124 = arith.constant -1.000000e+30 : f32
    %263 = vector.shape_cast %5 : vector<1x8x8xi1> to vector<1x8x8xi1>
    %264 = vector.broadcast %263 : vector<1x8x8xi1> to vector<2x8x8xi1>
    %265 = vector.broadcast %cst_124 : f32 to vector<2x8x8xf32>
    %266 = arith.select %264, %262, %265 : vector<2x8x8xi1>, vector<2x8x8xf32>
    %cst_125 = arith.constant dense<0xFF800000> : vector<2x8xf32>
    %267 = vector.multi_reduction <maximumf>, %266, %cst_125 [2] : vector<2x8x8xf32> to vector<2x8xf32>
    %268 = vector.shape_cast %267 : vector<2x8xf32> to vector<2x8x1xf32>
    %269 = vector.broadcast %268 : vector<2x8x1xf32> to vector<2x8x8xf32>
    %270 = arith.subf %266, %269 : vector<2x8x8xf32>
    %271 = math.exp %270 : vector<2x8x8xf32>
    %cst_126 = arith.constant dense<0.000000e+00> : vector<2x8xf32>
    %272 = vector.multi_reduction <add>, %271, %cst_126 [2] : vector<2x8x8xf32> to vector<2x8xf32>
    %273 = vector.shape_cast %272 : vector<2x8xf32> to vector<2x8x1xf32>
    %274 = tpu.reciprocal %273 {approx = true} : vector<2x8x1xf32> -> vector<2x8x1xf32>
    %275 = vector.broadcast %274 : vector<2x8x1xf32> to vector<2x8x8xf32>
    %276 = arith.mulf %271, %275 : vector<2x8x8xf32>
    "tpu.trace_start"() <{level = 10 : i32, message = "bqk,bkd->bqd"}> : () -> ()
    %cst_127 = arith.constant dense<0.000000e+00> : vector<2x8x8xf32>
    %277 = tpu.matmul %276, %259, %cst_127 {dimension_numbers = #tpu.dot_dimension_numbers<[2], [1], [1], [2], [0, 0, 0, 1, 1, 2], [0], [0]>} : vector<2x8x8xf32>, vector<2x8x8xf32>, vector<2x8x8xf32> -> vector<2x8x8xf32>
    "tpu.trace_stop"() : () -> ()
    %278 = vector.shape_cast %277 : vector<2x8x8xf32> to vector<16x8xf32>
    %c4_128 = arith.constant 4 : index
    %c0_129 = arith.constant 0 : index
    %c0_130 = arith.constant 0 : index
    %279 = vector.load %arg3[%c4_128, %c0_129, %c0_130] : memref<12x8x32xf32, #tpu.memory_space<vmem>>, vector<1x8x32xf32>
    %280 = vector.shape_cast %279 : vector<1x8x32xf32> to vector<8x32xf32>
    %cst_131 = arith.constant dense<0.000000e+00> : vector<16x32xf32>
    %281 = tpu.matmul %278, %280, %cst_131 {dimension_numbers = #tpu.dot_dimension_numbers<[1], [0], [0], [1], [0, 0, 1, 1], [], []>} : vector<16x8xf32>, vector<8x32xf32>, vector<16x32xf32> -> vector<16x32xf32>
    %282 = arith.addf %247, %281 : vector<16x32xf32>
    %c13 = arith.constant 13 : index
    %c0_132 = arith.constant 0 : index
    %c0_133 = arith.constant 0 : index
    %283 = vector.load %arg2[%c13, %c0_132, %c0_133] : memref<36x32x8xf32, #tpu.memory_space<vmem>>, vector<1x32x8xf32>
    %284 = vector.shape_cast %283 : vector<1x32x8xf32> to vector<32x8xf32>
    %cst_134 = arith.constant dense<0.000000e+00> : vector<16x8xf32>
    %285 = tpu.matmul %246, %284, %cst_134 {dimension_numbers = #tpu.dot_dimension_numbers<[1], [0], [0], [1], [0, 0, 1, 1], [], []>} : vector<16x32xf32>, vector<32x8xf32>, vector<16x8xf32> -> vector<16x8xf32>
    %c17 = arith.constant 17 : index
    %c0_135 = arith.constant 0 : index
    %c0_136 = arith.constant 0 : index
    %286 = vector.load %arg2[%c17, %c0_135, %c0_136] : memref<36x32x8xf32, #tpu.memory_space<vmem>>, vector<1x32x8xf32>
    %287 = vector.shape_cast %286 : vector<1x32x8xf32> to vector<32x8xf32>
    %cst_137 = arith.constant dense<0.000000e+00> : vector<16x8xf32>
    %288 = tpu.matmul %246, %287, %cst_137 {dimension_numbers = #tpu.dot_dimension_numbers<[1], [0], [0], [1], [0, 0, 1, 1], [], []>} : vector<16x32xf32>, vector<32x8xf32>, vector<16x8xf32> -> vector<16x8xf32>
    %c21 = arith.constant 21 : index
    %c0_138 = arith.constant 0 : index
    %c0_139 = arith.constant 0 : index
    %289 = vector.load %arg2[%c21, %c0_138, %c0_139] : memref<36x32x8xf32, #tpu.memory_space<vmem>>, vector<1x32x8xf32>
    %290 = vector.shape_cast %289 : vector<1x32x8xf32> to vector<32x8xf32>
    %cst_140 = arith.constant dense<0.000000e+00> : vector<16x8xf32>
    %291 = tpu.matmul %246, %290, %cst_140 {dimension_numbers = #tpu.dot_dimension_numbers<[1], [0], [0], [1], [0, 0, 1, 1], [], []>} : vector<16x32xf32>, vector<32x8xf32>, vector<16x8xf32> -> vector<16x8xf32>
    %292 = vector.shape_cast %288 : vector<16x8xf32> to vector<2x8x8xf32>
    %293 = vector.shape_cast %285 : vector<16x8xf32> to vector<2x8x8xf32>
    %294 = vector.shape_cast %291 : vector<16x8xf32> to vector<2x8x8xf32>
    "tpu.trace_start"() <{level = 10 : i32, message = "bqd,bkd->bqk"}> : () -> ()
    %cst_141 = arith.constant dense<0.000000e+00> : vector<2x8x8xf32>
    %295 = tpu.matmul %292, %293, %cst_141 {dimension_numbers = #tpu.dot_dimension_numbers<[2], [2], [1], [1], [0, 0, 0, 1, 1, 1], [0], [0]>} : vector<2x8x8xf32>, vector<2x8x8xf32>, vector<2x8x8xf32> -> vector<2x8x8xf32>
    "tpu.trace_stop"() : () -> ()
    %cst_142 = arith.constant 0.176776692 : f32
    %296 = vector.broadcast %cst_142 : f32 to vector<2x8x8xf32>
    %297 = arith.mulf %295, %296 : vector<2x8x8xf32>
    %cst_143 = arith.constant -1.000000e+30 : f32
    %298 = vector.shape_cast %5 : vector<1x8x8xi1> to vector<1x8x8xi1>
    %299 = vector.broadcast %298 : vector<1x8x8xi1> to vector<2x8x8xi1>
    %300 = vector.broadcast %cst_143 : f32 to vector<2x8x8xf32>
    %301 = arith.select %299, %297, %300 : vector<2x8x8xi1>, vector<2x8x8xf32>
    %cst_144 = arith.constant dense<0xFF800000> : vector<2x8xf32>
    %302 = vector.multi_reduction <maximumf>, %301, %cst_144 [2] : vector<2x8x8xf32> to vector<2x8xf32>
    %303 = vector.shape_cast %302 : vector<2x8xf32> to vector<2x8x1xf32>
    %304 = vector.broadcast %303 : vector<2x8x1xf32> to vector<2x8x8xf32>
    %305 = arith.subf %301, %304 : vector<2x8x8xf32>
    %306 = math.exp %305 : vector<2x8x8xf32>
    %cst_145 = arith.constant dense<0.000000e+00> : vector<2x8xf32>
    %307 = vector.multi_reduction <add>, %306, %cst_145 [2] : vector<2x8x8xf32> to vector<2x8xf32>
    %308 = vector.shape_cast %307 : vector<2x8xf32> to vector<2x8x1xf32>
    %309 = tpu.reciprocal %308 {approx = true} : vector<2x8x1xf32> -> vector<2x8x1xf32>
    %310 = vector.broadcast %309 : vector<2x8x1xf32> to vector<2x8x8xf32>
    %311 = arith.mulf %306, %310 : vector<2x8x8xf32>
    "tpu.trace_start"() <{level = 10 : i32, message = "bqk,bkd->bqd"}> : () -> ()
    %cst_146 = arith.constant dense<0.000000e+00> : vector<2x8x8xf32>
    %312 = tpu.matmul %311, %294, %cst_146 {dimension_numbers = #tpu.dot_dimension_numbers<[2], [1], [1], [2], [0, 0, 0, 1, 1, 2], [0], [0]>} : vector<2x8x8xf32>, vector<2x8x8xf32>, vector<2x8x8xf32> -> vector<2x8x8xf32>
    "tpu.trace_stop"() : () -> ()
    %313 = vector.shape_cast %312 : vector<2x8x8xf32> to vector<16x8xf32>
    %c5_147 = arith.constant 5 : index
    %c0_148 = arith.constant 0 : index
    %c0_149 = arith.constant 0 : index
    %314 = vector.load %arg3[%c5_147, %c0_148, %c0_149] : memref<12x8x32xf32, #tpu.memory_space<vmem>>, vector<1x8x32xf32>
    %315 = vector.shape_cast %314 : vector<1x8x32xf32> to vector<8x32xf32>
    %cst_150 = arith.constant dense<0.000000e+00> : vector<16x32xf32>
    %316 = tpu.matmul %313, %315, %cst_150 {dimension_numbers = #tpu.dot_dimension_numbers<[1], [0], [0], [1], [0, 0, 1, 1], [], []>} : vector<16x8xf32>, vector<8x32xf32>, vector<16x32xf32> -> vector<16x32xf32>
    %317 = arith.addf %282, %316 : vector<16x32xf32>
    %c14 = arith.constant 14 : index
    %c0_151 = arith.constant 0 : index
    %c0_152 = arith.constant 0 : index
    %318 = vector.load %arg2[%c14, %c0_151, %c0_152] : memref<36x32x8xf32, #tpu.memory_space<vmem>>, vector<1x32x8xf32>
    %319 = vector.shape_cast %318 : vector<1x32x8xf32> to vector<32x8xf32>
    %cst_153 = arith.constant dense<0.000000e+00> : vector<16x8xf32>
    %320 = tpu.matmul %246, %319, %cst_153 {dimension_numbers = #tpu.dot_dimension_numbers<[1], [0], [0], [1], [0, 0, 1, 1], [], []>} : vector<16x32xf32>, vector<32x8xf32>, vector<16x8xf32> -> vector<16x8xf32>
    %c18 = arith.constant 18 : index
    %c0_154 = arith.constant 0 : index
    %c0_155 = arith.constant 0 : index
    %321 = vector.load %arg2[%c18, %c0_154, %c0_155] : memref<36x32x8xf32, #tpu.memory_space<vmem>>, vector<1x32x8xf32>
    %322 = vector.shape_cast %321 : vector<1x32x8xf32> to vector<32x8xf32>
    %cst_156 = arith.constant dense<0.000000e+00> : vector<16x8xf32>
    %323 = tpu.matmul %246, %322, %cst_156 {dimension_numbers = #tpu.dot_dimension_numbers<[1], [0], [0], [1], [0, 0, 1, 1], [], []>} : vector<16x32xf32>, vector<32x8xf32>, vector<16x8xf32> -> vector<16x8xf32>
    %c22 = arith.constant 22 : index
    %c0_157 = arith.constant 0 : index
    %c0_158 = arith.constant 0 : index
    %324 = vector.load %arg2[%c22, %c0_157, %c0_158] : memref<36x32x8xf32, #tpu.memory_space<vmem>>, vector<1x32x8xf32>
    %325 = vector.shape_cast %324 : vector<1x32x8xf32> to vector<32x8xf32>
    %cst_159 = arith.constant dense<0.000000e+00> : vector<16x8xf32>
    %326 = tpu.matmul %246, %325, %cst_159 {dimension_numbers = #tpu.dot_dimension_numbers<[1], [0], [0], [1], [0, 0, 1, 1], [], []>} : vector<16x32xf32>, vector<32x8xf32>, vector<16x8xf32> -> vector<16x8xf32>
    %327 = vector.shape_cast %323 : vector<16x8xf32> to vector<2x8x8xf32>
    %328 = vector.shape_cast %320 : vector<16x8xf32> to vector<2x8x8xf32>
    %329 = vector.shape_cast %326 : vector<16x8xf32> to vector<2x8x8xf32>
    "tpu.trace_start"() <{level = 10 : i32, message = "bqd,bkd->bqk"}> : () -> ()
    %cst_160 = arith.constant dense<0.000000e+00> : vector<2x8x8xf32>
    %330 = tpu.matmul %327, %328, %cst_160 {dimension_numbers = #tpu.dot_dimension_numbers<[2], [2], [1], [1], [0, 0, 0, 1, 1, 1], [0], [0]>} : vector<2x8x8xf32>, vector<2x8x8xf32>, vector<2x8x8xf32> -> vector<2x8x8xf32>
    "tpu.trace_stop"() : () -> ()
    %cst_161 = arith.constant 0.176776692 : f32
    %331 = vector.broadcast %cst_161 : f32 to vector<2x8x8xf32>
    %332 = arith.mulf %330, %331 : vector<2x8x8xf32>
    %cst_162 = arith.constant -1.000000e+30 : f32
    %333 = vector.shape_cast %5 : vector<1x8x8xi1> to vector<1x8x8xi1>
    %334 = vector.broadcast %333 : vector<1x8x8xi1> to vector<2x8x8xi1>
    %335 = vector.broadcast %cst_162 : f32 to vector<2x8x8xf32>
    %336 = arith.select %334, %332, %335 : vector<2x8x8xi1>, vector<2x8x8xf32>
    %cst_163 = arith.constant dense<0xFF800000> : vector<2x8xf32>
    %337 = vector.multi_reduction <maximumf>, %336, %cst_163 [2] : vector<2x8x8xf32> to vector<2x8xf32>
    %338 = vector.shape_cast %337 : vector<2x8xf32> to vector<2x8x1xf32>
    %339 = vector.broadcast %338 : vector<2x8x1xf32> to vector<2x8x8xf32>
    %340 = arith.subf %336, %339 : vector<2x8x8xf32>
    %341 = math.exp %340 : vector<2x8x8xf32>
    %cst_164 = arith.constant dense<0.000000e+00> : vector<2x8xf32>
    %342 = vector.multi_reduction <add>, %341, %cst_164 [2] : vector<2x8x8xf32> to vector<2x8xf32>
    %343 = vector.shape_cast %342 : vector<2x8xf32> to vector<2x8x1xf32>
    %344 = tpu.reciprocal %343 {approx = true} : vector<2x8x1xf32> -> vector<2x8x1xf32>
    %345 = vector.broadcast %344 : vector<2x8x1xf32> to vector<2x8x8xf32>
    %346 = arith.mulf %341, %345 : vector<2x8x8xf32>
    "tpu.trace_start"() <{level = 10 : i32, message = "bqk,bkd->bqd"}> : () -> ()
    %cst_165 = arith.constant dense<0.000000e+00> : vector<2x8x8xf32>
    %347 = tpu.matmul %346, %329, %cst_165 {dimension_numbers = #tpu.dot_dimension_numbers<[2], [1], [1], [2], [0, 0, 0, 1, 1, 2], [0], [0]>} : vector<2x8x8xf32>, vector<2x8x8xf32>, vector<2x8x8xf32> -> vector<2x8x8xf32>
    "tpu.trace_stop"() : () -> ()
    %348 = vector.shape_cast %347 : vector<2x8x8xf32> to vector<16x8xf32>
    %c6_166 = arith.constant 6 : index
    %c0_167 = arith.constant 0 : index
    %c0_168 = arith.constant 0 : index
    %349 = vector.load %arg3[%c6_166, %c0_167, %c0_168] : memref<12x8x32xf32, #tpu.memory_space<vmem>>, vector<1x8x32xf32>
    %350 = vector.shape_cast %349 : vector<1x8x32xf32> to vector<8x32xf32>
    %cst_169 = arith.constant dense<0.000000e+00> : vector<16x32xf32>
    %351 = tpu.matmul %348, %350, %cst_169 {dimension_numbers = #tpu.dot_dimension_numbers<[1], [0], [0], [1], [0, 0, 1, 1], [], []>} : vector<16x8xf32>, vector<8x32xf32>, vector<16x32xf32> -> vector<16x32xf32>
    %352 = arith.addf %317, %351 : vector<16x32xf32>
    %c15 = arith.constant 15 : index
    %c0_170 = arith.constant 0 : index
    %c0_171 = arith.constant 0 : index
    %353 = vector.load %arg2[%c15, %c0_170, %c0_171] : memref<36x32x8xf32, #tpu.memory_space<vmem>>, vector<1x32x8xf32>
    %354 = vector.shape_cast %353 : vector<1x32x8xf32> to vector<32x8xf32>
    %cst_172 = arith.constant dense<0.000000e+00> : vector<16x8xf32>
    %355 = tpu.matmul %246, %354, %cst_172 {dimension_numbers = #tpu.dot_dimension_numbers<[1], [0], [0], [1], [0, 0, 1, 1], [], []>} : vector<16x32xf32>, vector<32x8xf32>, vector<16x8xf32> -> vector<16x8xf32>
    %c19 = arith.constant 19 : index
    %c0_173 = arith.constant 0 : index
    %c0_174 = arith.constant 0 : index
    %356 = vector.load %arg2[%c19, %c0_173, %c0_174] : memref<36x32x8xf32, #tpu.memory_space<vmem>>, vector<1x32x8xf32>
    %357 = vector.shape_cast %356 : vector<1x32x8xf32> to vector<32x8xf32>
    %cst_175 = arith.constant dense<0.000000e+00> : vector<16x8xf32>
    %358 = tpu.matmul %246, %357, %cst_175 {dimension_numbers = #tpu.dot_dimension_numbers<[1], [0], [0], [1], [0, 0, 1, 1], [], []>} : vector<16x32xf32>, vector<32x8xf32>, vector<16x8xf32> -> vector<16x8xf32>
    %c23 = arith.constant 23 : index
    %c0_176 = arith.constant 0 : index
    %c0_177 = arith.constant 0 : index
    %359 = vector.load %arg2[%c23, %c0_176, %c0_177] : memref<36x32x8xf32, #tpu.memory_space<vmem>>, vector<1x32x8xf32>
    %360 = vector.shape_cast %359 : vector<1x32x8xf32> to vector<32x8xf32>
    %cst_178 = arith.constant dense<0.000000e+00> : vector<16x8xf32>
    %361 = tpu.matmul %246, %360, %cst_178 {dimension_numbers = #tpu.dot_dimension_numbers<[1], [0], [0], [1], [0, 0, 1, 1], [], []>} : vector<16x32xf32>, vector<32x8xf32>, vector<16x8xf32> -> vector<16x8xf32>
    %362 = vector.shape_cast %358 : vector<16x8xf32> to vector<2x8x8xf32>
    %363 = vector.shape_cast %355 : vector<16x8xf32> to vector<2x8x8xf32>
    %364 = vector.shape_cast %361 : vector<16x8xf32> to vector<2x8x8xf32>
    "tpu.trace_start"() <{level = 10 : i32, message = "bqd,bkd->bqk"}> : () -> ()
    %cst_179 = arith.constant dense<0.000000e+00> : vector<2x8x8xf32>
    %365 = tpu.matmul %362, %363, %cst_179 {dimension_numbers = #tpu.dot_dimension_numbers<[2], [2], [1], [1], [0, 0, 0, 1, 1, 1], [0], [0]>} : vector<2x8x8xf32>, vector<2x8x8xf32>, vector<2x8x8xf32> -> vector<2x8x8xf32>
    "tpu.trace_stop"() : () -> ()
    %cst_180 = arith.constant 0.176776692 : f32
    %366 = vector.broadcast %cst_180 : f32 to vector<2x8x8xf32>
    %367 = arith.mulf %365, %366 : vector<2x8x8xf32>
    %cst_181 = arith.constant -1.000000e+30 : f32
    %368 = vector.shape_cast %5 : vector<1x8x8xi1> to vector<1x8x8xi1>
    %369 = vector.broadcast %368 : vector<1x8x8xi1> to vector<2x8x8xi1>
    %370 = vector.broadcast %cst_181 : f32 to vector<2x8x8xf32>
    %371 = arith.select %369, %367, %370 : vector<2x8x8xi1>, vector<2x8x8xf32>
    %cst_182 = arith.constant dense<0xFF800000> : vector<2x8xf32>
    %372 = vector.multi_reduction <maximumf>, %371, %cst_182 [2] : vector<2x8x8xf32> to vector<2x8xf32>
    %373 = vector.shape_cast %372 : vector<2x8xf32> to vector<2x8x1xf32>
    %374 = vector.broadcast %373 : vector<2x8x1xf32> to vector<2x8x8xf32>
    %375 = arith.subf %371, %374 : vector<2x8x8xf32>
    %376 = math.exp %375 : vector<2x8x8xf32>
    %cst_183 = arith.constant dense<0.000000e+00> : vector<2x8xf32>
    %377 = vector.multi_reduction <add>, %376, %cst_183 [2] : vector<2x8x8xf32> to vector<2x8xf32>
    %378 = vector.shape_cast %377 : vector<2x8xf32> to vector<2x8x1xf32>
    %379 = tpu.reciprocal %378 {approx = true} : vector<2x8x1xf32> -> vector<2x8x1xf32>
    %380 = vector.broadcast %379 : vector<2x8x1xf32> to vector<2x8x8xf32>
    %381 = arith.mulf %376, %380 : vector<2x8x8xf32>
    "tpu.trace_start"() <{level = 10 : i32, message = "bqk,bkd->bqd"}> : () -> ()
    %cst_184 = arith.constant dense<0.000000e+00> : vector<2x8x8xf32>
    %382 = tpu.matmul %381, %364, %cst_184 {dimension_numbers = #tpu.dot_dimension_numbers<[2], [1], [1], [2], [0, 0, 0, 1, 1, 2], [0], [0]>} : vector<2x8x8xf32>, vector<2x8x8xf32>, vector<2x8x8xf32> -> vector<2x8x8xf32>
    "tpu.trace_stop"() : () -> ()
    %383 = vector.shape_cast %382 : vector<2x8x8xf32> to vector<16x8xf32>
    %c7_185 = arith.constant 7 : index
    %c0_186 = arith.constant 0 : index
    %c0_187 = arith.constant 0 : index
    %384 = vector.load %arg3[%c7_185, %c0_186, %c0_187] : memref<12x8x32xf32, #tpu.memory_space<vmem>>, vector<1x8x32xf32>
    %385 = vector.shape_cast %384 : vector<1x8x32xf32> to vector<8x32xf32>
    %cst_188 = arith.constant dense<0.000000e+00> : vector<16x32xf32>
    %386 = tpu.matmul %383, %385, %cst_188 {dimension_numbers = #tpu.dot_dimension_numbers<[1], [0], [0], [1], [0, 0, 1, 1], [], []>} : vector<16x8xf32>, vector<8x32xf32>, vector<16x32xf32> -> vector<16x32xf32>
    %387 = arith.addf %352, %386 : vector<16x32xf32>
    %388 = arith.addf %216, %387 : vector<16x32xf32>
    %389 = vector.broadcast %221 : vector<1x32xf32> to vector<16x32xf32>
    %390 = arith.addf %388, %389 : vector<16x32xf32>
    %cst_189 = arith.constant dense<0.000000e+00> : vector<16xf32>
    %391 = vector.multi_reduction <add>, %390, %cst_189 [1] : vector<16x32xf32> to vector<16xf32>
    %392 = vector.shape_cast %391 : vector<16xf32> to vector<16x1xf32>
    %cst_190 = arith.constant 3.200000e+01 : f32
    %393 = vector.broadcast %cst_190 : f32 to vector<16x1xf32>
    %394 = arith.divf %392, %393 : vector<16x1xf32>
    %395 = vector.broadcast %394 : vector<16x1xf32> to vector<16x32xf32>
    %396 = arith.subf %390, %395 : vector<16x32xf32>
    %397 = arith.mulf %396, %396 : vector<16x32xf32>
    %cst_191 = arith.constant dense<0.000000e+00> : vector<16xf32>
    %398 = vector.multi_reduction <add>, %397, %cst_191 [1] : vector<16x32xf32> to vector<16xf32>
    %399 = vector.shape_cast %398 : vector<16xf32> to vector<16x1xf32>
    %cst_192 = arith.constant 3.200000e+01 : f32
    %400 = vector.broadcast %cst_192 : f32 to vector<16x1xf32>
    %401 = arith.divf %399, %400 : vector<16x1xf32>
    %402 = vector.broadcast %394 : vector<16x1xf32> to vector<16x32xf32>
    %403 = arith.subf %390, %402 : vector<16x32xf32>
    %cst_193 = arith.constant 9.99999974E-6 : f32
    %404 = vector.broadcast %cst_193 : f32 to vector<16x1xf32>
    %405 = arith.addf %401, %404 : vector<16x1xf32>
    %406 = math.rsqrt %405 : vector<16x1xf32>
    %407 = vector.broadcast %406 : vector<16x1xf32> to vector<16x32xf32>
    %408 = arith.mulf %403, %407 : vector<16x32xf32>
    %409 = vector.broadcast %222 : vector<1x32xf32> to vector<16x32xf32>
    %410 = arith.mulf %408, %409 : vector<16x32xf32>
    %411 = vector.broadcast %223 : vector<1x32xf32> to vector<16x32xf32>
    %412 = arith.addf %410, %411 : vector<16x32xf32>
    %c1_194 = arith.constant 1 : index
    %c0_195 = arith.constant 0 : index
    %c0_196 = arith.constant 0 : index
    %413 = vector.load %arg4[%c1_194, %c0_195, %c0_196] : memref<4x32x128xf32, #tpu.memory_space<vmem>>, vector<1x32x128xf32>
    %414 = vector.shape_cast %413 : vector<1x32x128xf32> to vector<32x128xf32>
    %cst_197 = arith.constant dense<0.000000e+00> : vector<16x128xf32>
    %415 = tpu.matmul %412, %414, %cst_197 {dimension_numbers = #tpu.dot_dimension_numbers<[1], [0], [0], [1], [0, 0, 1, 1], [], []>} : vector<16x32xf32>, vector<32x128xf32>, vector<16x128xf32> -> vector<16x128xf32>
    %c1_198 = arith.constant 1 : index
    %c0_199 = arith.constant 0 : index
    %c0_200 = arith.constant 0 : index
    %416 = vector.load %arg6[%c1_198, %c0_199, %c0_200] : memref<4x1x128xf32, #tpu.memory_space<vmem>>, vector<1x1x128xf32>
    %417 = vector.shape_cast %416 : vector<1x1x128xf32> to vector<1x128xf32>
    %418 = vector.broadcast %417 : vector<1x128xf32> to vector<16x128xf32>
    %419 = arith.addf %415, %418 : vector<16x128xf32>
    %cst_201 = arith.constant 0.000000e+00 : f32
    %420 = vector.broadcast %cst_201 : f32 to vector<16x128xf32>
    %421 = arith.maximumf %419, %420 : vector<16x128xf32>
    %c1_202 = arith.constant 1 : index
    %c0_203 = arith.constant 0 : index
    %c0_204 = arith.constant 0 : index
    %422 = vector.load %arg5[%c1_202, %c0_203, %c0_204] : memref<3x128x32xf32, #tpu.memory_space<vmem>>, vector<1x128x32xf32>
    %423 = vector.shape_cast %422 : vector<1x128x32xf32> to vector<128x32xf32>
    %cst_205 = arith.constant dense<0.000000e+00> : vector<16x32xf32>
    %424 = tpu.matmul %421, %423, %cst_205 {dimension_numbers = #tpu.dot_dimension_numbers<[1], [0], [0], [1], [0, 0, 1, 1], [], []>} : vector<16x128xf32>, vector<128x32xf32>, vector<16x32xf32> -> vector<16x32xf32>
    %425 = arith.addf %390, %424 : vector<16x32xf32>
    %426 = vector.broadcast %224 : vector<1x32xf32> to vector<16x32xf32>
    %427 = arith.addf %425, %426 : vector<16x32xf32>
    %c2_206 = arith.constant 2 : index
    %c0_207 = arith.constant 0 : index
    %c0_208 = arith.constant 0 : index
    %428 = vector.load %arg7[%c2_206, %c0_207, %c0_208] : memref<3x6x32xf32, #tpu.memory_space<vmem>>, vector<1x6x32xf32>
    %429 = vector.shape_cast %428 : vector<1x6x32xf32> to vector<6x32xf32>
    %430 = vector.extract_strided_slice %429 {offsets = [0, 0], sizes = [1, 32], strides = [1, 1]} : vector<6x32xf32> to vector<1x32xf32>
    %431 = vector.extract_strided_slice %429 {offsets = [1, 0], sizes = [1, 32], strides = [1, 1]} : vector<6x32xf32> to vector<1x32xf32>
    %432 = vector.extract_strided_slice %429 {offsets = [2, 0], sizes = [1, 32], strides = [1, 1]} : vector<6x32xf32> to vector<1x32xf32>
    %433 = vector.extract_strided_slice %429 {offsets = [3, 0], sizes = [1, 32], strides = [1, 1]} : vector<6x32xf32> to vector<1x32xf32>
    %434 = vector.extract_strided_slice %429 {offsets = [4, 0], sizes = [1, 32], strides = [1, 1]} : vector<6x32xf32> to vector<1x32xf32>
    %435 = vector.extract_strided_slice %429 {offsets = [5, 0], sizes = [1, 32], strides = [1, 1]} : vector<6x32xf32> to vector<1x32xf32>
    %cst_209 = arith.constant dense<0.000000e+00> : vector<16xf32>
    %436 = vector.multi_reduction <add>, %427, %cst_209 [1] : vector<16x32xf32> to vector<16xf32>
    %437 = vector.shape_cast %436 : vector<16xf32> to vector<16x1xf32>
    %cst_210 = arith.constant 3.200000e+01 : f32
    %438 = vector.broadcast %cst_210 : f32 to vector<16x1xf32>
    %439 = arith.divf %437, %438 : vector<16x1xf32>
    %440 = vector.broadcast %439 : vector<16x1xf32> to vector<16x32xf32>
    %441 = arith.subf %427, %440 : vector<16x32xf32>
    %442 = arith.mulf %441, %441 : vector<16x32xf32>
    %cst_211 = arith.constant dense<0.000000e+00> : vector<16xf32>
    %443 = vector.multi_reduction <add>, %442, %cst_211 [1] : vector<16x32xf32> to vector<16xf32>
    %444 = vector.shape_cast %443 : vector<16xf32> to vector<16x1xf32>
    %cst_212 = arith.constant 3.200000e+01 : f32
    %445 = vector.broadcast %cst_212 : f32 to vector<16x1xf32>
    %446 = arith.divf %444, %445 : vector<16x1xf32>
    %447 = vector.broadcast %439 : vector<16x1xf32> to vector<16x32xf32>
    %448 = arith.subf %427, %447 : vector<16x32xf32>
    %cst_213 = arith.constant 9.99999974E-6 : f32
    %449 = vector.broadcast %cst_213 : f32 to vector<16x1xf32>
    %450 = arith.addf %446, %449 : vector<16x1xf32>
    %451 = math.rsqrt %450 : vector<16x1xf32>
    %452 = vector.broadcast %451 : vector<16x1xf32> to vector<16x32xf32>
    %453 = arith.mulf %448, %452 : vector<16x32xf32>
    %454 = vector.broadcast %430 : vector<1x32xf32> to vector<16x32xf32>
    %455 = arith.mulf %453, %454 : vector<16x32xf32>
    %456 = vector.broadcast %431 : vector<1x32xf32> to vector<16x32xf32>
    %457 = arith.addf %455, %456 : vector<16x32xf32>
    %cst_214 = arith.constant 0.000000e+00 : f32
    %458 = vector.broadcast %cst_214 : f32 to vector<16x32xf32>
    %c24 = arith.constant 24 : index
    %c0_215 = arith.constant 0 : index
    %c0_216 = arith.constant 0 : index
    %459 = vector.load %arg2[%c24, %c0_215, %c0_216] : memref<36x32x8xf32, #tpu.memory_space<vmem>>, vector<1x32x8xf32>
    %460 = vector.shape_cast %459 : vector<1x32x8xf32> to vector<32x8xf32>
    %cst_217 = arith.constant dense<0.000000e+00> : vector<16x8xf32>
    %461 = tpu.matmul %457, %460, %cst_217 {dimension_numbers = #tpu.dot_dimension_numbers<[1], [0], [0], [1], [0, 0, 1, 1], [], []>} : vector<16x32xf32>, vector<32x8xf32>, vector<16x8xf32> -> vector<16x8xf32>
    %c28 = arith.constant 28 : index
    %c0_218 = arith.constant 0 : index
    %c0_219 = arith.constant 0 : index
    %462 = vector.load %arg2[%c28, %c0_218, %c0_219] : memref<36x32x8xf32, #tpu.memory_space<vmem>>, vector<1x32x8xf32>
    %463 = vector.shape_cast %462 : vector<1x32x8xf32> to vector<32x8xf32>
    %cst_220 = arith.constant dense<0.000000e+00> : vector<16x8xf32>
    %464 = tpu.matmul %457, %463, %cst_220 {dimension_numbers = #tpu.dot_dimension_numbers<[1], [0], [0], [1], [0, 0, 1, 1], [], []>} : vector<16x32xf32>, vector<32x8xf32>, vector<16x8xf32> -> vector<16x8xf32>
    %c32 = arith.constant 32 : index
    %c0_221 = arith.constant 0 : index
    %c0_222 = arith.constant 0 : index
    %465 = vector.load %arg2[%c32, %c0_221, %c0_222] : memref<36x32x8xf32, #tpu.memory_space<vmem>>, vector<1x32x8xf32>
    %466 = vector.shape_cast %465 : vector<1x32x8xf32> to vector<32x8xf32>
    %cst_223 = arith.constant dense<0.000000e+00> : vector<16x8xf32>
    %467 = tpu.matmul %457, %466, %cst_223 {dimension_numbers = #tpu.dot_dimension_numbers<[1], [0], [0], [1], [0, 0, 1, 1], [], []>} : vector<16x32xf32>, vector<32x8xf32>, vector<16x8xf32> -> vector<16x8xf32>
    %468 = vector.shape_cast %464 : vector<16x8xf32> to vector<2x8x8xf32>
    %469 = vector.shape_cast %461 : vector<16x8xf32> to vector<2x8x8xf32>
    %470 = vector.shape_cast %467 : vector<16x8xf32> to vector<2x8x8xf32>
    "tpu.trace_start"() <{level = 10 : i32, message = "bqd,bkd->bqk"}> : () -> ()
    %cst_224 = arith.constant dense<0.000000e+00> : vector<2x8x8xf32>
    %471 = tpu.matmul %468, %469, %cst_224 {dimension_numbers = #tpu.dot_dimension_numbers<[2], [2], [1], [1], [0, 0, 0, 1, 1, 1], [0], [0]>} : vector<2x8x8xf32>, vector<2x8x8xf32>, vector<2x8x8xf32> -> vector<2x8x8xf32>
    "tpu.trace_stop"() : () -> ()
    %cst_225 = arith.constant 0.176776692 : f32
    %472 = vector.broadcast %cst_225 : f32 to vector<2x8x8xf32>
    %473 = arith.mulf %471, %472 : vector<2x8x8xf32>
    %cst_226 = arith.constant -1.000000e+30 : f32
    %474 = vector.shape_cast %5 : vector<1x8x8xi1> to vector<1x8x8xi1>
    %475 = vector.broadcast %474 : vector<1x8x8xi1> to vector<2x8x8xi1>
    %476 = vector.broadcast %cst_226 : f32 to vector<2x8x8xf32>
    %477 = arith.select %475, %473, %476 : vector<2x8x8xi1>, vector<2x8x8xf32>
    %cst_227 = arith.constant dense<0xFF800000> : vector<2x8xf32>
    %478 = vector.multi_reduction <maximumf>, %477, %cst_227 [2] : vector<2x8x8xf32> to vector<2x8xf32>
    %479 = vector.shape_cast %478 : vector<2x8xf32> to vector<2x8x1xf32>
    %480 = vector.broadcast %479 : vector<2x8x1xf32> to vector<2x8x8xf32>
    %481 = arith.subf %477, %480 : vector<2x8x8xf32>
    %482 = math.exp %481 : vector<2x8x8xf32>
    %cst_228 = arith.constant dense<0.000000e+00> : vector<2x8xf32>
    %483 = vector.multi_reduction <add>, %482, %cst_228 [2] : vector<2x8x8xf32> to vector<2x8xf32>
    %484 = vector.shape_cast %483 : vector<2x8xf32> to vector<2x8x1xf32>
    %485 = tpu.reciprocal %484 {approx = true} : vector<2x8x1xf32> -> vector<2x8x1xf32>
    %486 = vector.broadcast %485 : vector<2x8x1xf32> to vector<2x8x8xf32>
    %487 = arith.mulf %482, %486 : vector<2x8x8xf32>
    "tpu.trace_start"() <{level = 10 : i32, message = "bqk,bkd->bqd"}> : () -> ()
    %cst_229 = arith.constant dense<0.000000e+00> : vector<2x8x8xf32>
    %488 = tpu.matmul %487, %470, %cst_229 {dimension_numbers = #tpu.dot_dimension_numbers<[2], [1], [1], [2], [0, 0, 0, 1, 1, 2], [0], [0]>} : vector<2x8x8xf32>, vector<2x8x8xf32>, vector<2x8x8xf32> -> vector<2x8x8xf32>
    "tpu.trace_stop"() : () -> ()
    %489 = vector.shape_cast %488 : vector<2x8x8xf32> to vector<16x8xf32>
    %c8_230 = arith.constant 8 : index
    %c0_231 = arith.constant 0 : index
    %c0_232 = arith.constant 0 : index
    %490 = vector.load %arg3[%c8_230, %c0_231, %c0_232] : memref<12x8x32xf32, #tpu.memory_space<vmem>>, vector<1x8x32xf32>
    %491 = vector.shape_cast %490 : vector<1x8x32xf32> to vector<8x32xf32>
    %cst_233 = arith.constant dense<0.000000e+00> : vector<16x32xf32>
    %492 = tpu.matmul %489, %491, %cst_233 {dimension_numbers = #tpu.dot_dimension_numbers<[1], [0], [0], [1], [0, 0, 1, 1], [], []>} : vector<16x8xf32>, vector<8x32xf32>, vector<16x32xf32> -> vector<16x32xf32>
    %493 = arith.addf %458, %492 : vector<16x32xf32>
    %c25 = arith.constant 25 : index
    %c0_234 = arith.constant 0 : index
    %c0_235 = arith.constant 0 : index
    %494 = vector.load %arg2[%c25, %c0_234, %c0_235] : memref<36x32x8xf32, #tpu.memory_space<vmem>>, vector<1x32x8xf32>
    %495 = vector.shape_cast %494 : vector<1x32x8xf32> to vector<32x8xf32>
    %cst_236 = arith.constant dense<0.000000e+00> : vector<16x8xf32>
    %496 = tpu.matmul %457, %495, %cst_236 {dimension_numbers = #tpu.dot_dimension_numbers<[1], [0], [0], [1], [0, 0, 1, 1], [], []>} : vector<16x32xf32>, vector<32x8xf32>, vector<16x8xf32> -> vector<16x8xf32>
    %c29 = arith.constant 29 : index
    %c0_237 = arith.constant 0 : index
    %c0_238 = arith.constant 0 : index
    %497 = vector.load %arg2[%c29, %c0_237, %c0_238] : memref<36x32x8xf32, #tpu.memory_space<vmem>>, vector<1x32x8xf32>
    %498 = vector.shape_cast %497 : vector<1x32x8xf32> to vector<32x8xf32>
    %cst_239 = arith.constant dense<0.000000e+00> : vector<16x8xf32>
    %499 = tpu.matmul %457, %498, %cst_239 {dimension_numbers = #tpu.dot_dimension_numbers<[1], [0], [0], [1], [0, 0, 1, 1], [], []>} : vector<16x32xf32>, vector<32x8xf32>, vector<16x8xf32> -> vector<16x8xf32>
    %c33 = arith.constant 33 : index
    %c0_240 = arith.constant 0 : index
    %c0_241 = arith.constant 0 : index
    %500 = vector.load %arg2[%c33, %c0_240, %c0_241] : memref<36x32x8xf32, #tpu.memory_space<vmem>>, vector<1x32x8xf32>
    %501 = vector.shape_cast %500 : vector<1x32x8xf32> to vector<32x8xf32>
    %cst_242 = arith.constant dense<0.000000e+00> : vector<16x8xf32>
    %502 = tpu.matmul %457, %501, %cst_242 {dimension_numbers = #tpu.dot_dimension_numbers<[1], [0], [0], [1], [0, 0, 1, 1], [], []>} : vector<16x32xf32>, vector<32x8xf32>, vector<16x8xf32> -> vector<16x8xf32>
    %503 = vector.shape_cast %499 : vector<16x8xf32> to vector<2x8x8xf32>
    %504 = vector.shape_cast %496 : vector<16x8xf32> to vector<2x8x8xf32>
    %505 = vector.shape_cast %502 : vector<16x8xf32> to vector<2x8x8xf32>
    "tpu.trace_start"() <{level = 10 : i32, message = "bqd,bkd->bqk"}> : () -> ()
    %cst_243 = arith.constant dense<0.000000e+00> : vector<2x8x8xf32>
    %506 = tpu.matmul %503, %504, %cst_243 {dimension_numbers = #tpu.dot_dimension_numbers<[2], [2], [1], [1], [0, 0, 0, 1, 1, 1], [0], [0]>} : vector<2x8x8xf32>, vector<2x8x8xf32>, vector<2x8x8xf32> -> vector<2x8x8xf32>
    "tpu.trace_stop"() : () -> ()
    %cst_244 = arith.constant 0.176776692 : f32
    %507 = vector.broadcast %cst_244 : f32 to vector<2x8x8xf32>
    %508 = arith.mulf %506, %507 : vector<2x8x8xf32>
    %cst_245 = arith.constant -1.000000e+30 : f32
    %509 = vector.shape_cast %5 : vector<1x8x8xi1> to vector<1x8x8xi1>
    %510 = vector.broadcast %509 : vector<1x8x8xi1> to vector<2x8x8xi1>
    %511 = vector.broadcast %cst_245 : f32 to vector<2x8x8xf32>
    %512 = arith.select %510, %508, %511 : vector<2x8x8xi1>, vector<2x8x8xf32>
    %cst_246 = arith.constant dense<0xFF800000> : vector<2x8xf32>
    %513 = vector.multi_reduction <maximumf>, %512, %cst_246 [2] : vector<2x8x8xf32> to vector<2x8xf32>
    %514 = vector.shape_cast %513 : vector<2x8xf32> to vector<2x8x1xf32>
    %515 = vector.broadcast %514 : vector<2x8x1xf32> to vector<2x8x8xf32>
    %516 = arith.subf %512, %515 : vector<2x8x8xf32>
    %517 = math.exp %516 : vector<2x8x8xf32>
    %cst_247 = arith.constant dense<0.000000e+00> : vector<2x8xf32>
    %518 = vector.multi_reduction <add>, %517, %cst_247 [2] : vector<2x8x8xf32> to vector<2x8xf32>
    %519 = vector.shape_cast %518 : vector<2x8xf32> to vector<2x8x1xf32>
    %520 = tpu.reciprocal %519 {approx = true} : vector<2x8x1xf32> -> vector<2x8x1xf32>
    %521 = vector.broadcast %520 : vector<2x8x1xf32> to vector<2x8x8xf32>
    %522 = arith.mulf %517, %521 : vector<2x8x8xf32>
    "tpu.trace_start"() <{level = 10 : i32, message = "bqk,bkd->bqd"}> : () -> ()
    %cst_248 = arith.constant dense<0.000000e+00> : vector<2x8x8xf32>
    %523 = tpu.matmul %522, %505, %cst_248 {dimension_numbers = #tpu.dot_dimension_numbers<[2], [1], [1], [2], [0, 0, 0, 1, 1, 2], [0], [0]>} : vector<2x8x8xf32>, vector<2x8x8xf32>, vector<2x8x8xf32> -> vector<2x8x8xf32>
    "tpu.trace_stop"() : () -> ()
    %524 = vector.shape_cast %523 : vector<2x8x8xf32> to vector<16x8xf32>
    %c9_249 = arith.constant 9 : index
    %c0_250 = arith.constant 0 : index
    %c0_251 = arith.constant 0 : index
    %525 = vector.load %arg3[%c9_249, %c0_250, %c0_251] : memref<12x8x32xf32, #tpu.memory_space<vmem>>, vector<1x8x32xf32>
    %526 = vector.shape_cast %525 : vector<1x8x32xf32> to vector<8x32xf32>
    %cst_252 = arith.constant dense<0.000000e+00> : vector<16x32xf32>
    %527 = tpu.matmul %524, %526, %cst_252 {dimension_numbers = #tpu.dot_dimension_numbers<[1], [0], [0], [1], [0, 0, 1, 1], [], []>} : vector<16x8xf32>, vector<8x32xf32>, vector<16x32xf32> -> vector<16x32xf32>
    %528 = arith.addf %493, %527 : vector<16x32xf32>
    %c26 = arith.constant 26 : index
    %c0_253 = arith.constant 0 : index
    %c0_254 = arith.constant 0 : index
    %529 = vector.load %arg2[%c26, %c0_253, %c0_254] : memref<36x32x8xf32, #tpu.memory_space<vmem>>, vector<1x32x8xf32>
    %530 = vector.shape_cast %529 : vector<1x32x8xf32> to vector<32x8xf32>
    %cst_255 = arith.constant dense<0.000000e+00> : vector<16x8xf32>
    %531 = tpu.matmul %457, %530, %cst_255 {dimension_numbers = #tpu.dot_dimension_numbers<[1], [0], [0], [1], [0, 0, 1, 1], [], []>} : vector<16x32xf32>, vector<32x8xf32>, vector<16x8xf32> -> vector<16x8xf32>
    %c30 = arith.constant 30 : index
    %c0_256 = arith.constant 0 : index
    %c0_257 = arith.constant 0 : index
    %532 = vector.load %arg2[%c30, %c0_256, %c0_257] : memref<36x32x8xf32, #tpu.memory_space<vmem>>, vector<1x32x8xf32>
    %533 = vector.shape_cast %532 : vector<1x32x8xf32> to vector<32x8xf32>
    %cst_258 = arith.constant dense<0.000000e+00> : vector<16x8xf32>
    %534 = tpu.matmul %457, %533, %cst_258 {dimension_numbers = #tpu.dot_dimension_numbers<[1], [0], [0], [1], [0, 0, 1, 1], [], []>} : vector<16x32xf32>, vector<32x8xf32>, vector<16x8xf32> -> vector<16x8xf32>
    %c34 = arith.constant 34 : index
    %c0_259 = arith.constant 0 : index
    %c0_260 = arith.constant 0 : index
    %535 = vector.load %arg2[%c34, %c0_259, %c0_260] : memref<36x32x8xf32, #tpu.memory_space<vmem>>, vector<1x32x8xf32>
    %536 = vector.shape_cast %535 : vector<1x32x8xf32> to vector<32x8xf32>
    %cst_261 = arith.constant dense<0.000000e+00> : vector<16x8xf32>
    %537 = tpu.matmul %457, %536, %cst_261 {dimension_numbers = #tpu.dot_dimension_numbers<[1], [0], [0], [1], [0, 0, 1, 1], [], []>} : vector<16x32xf32>, vector<32x8xf32>, vector<16x8xf32> -> vector<16x8xf32>
    %538 = vector.shape_cast %534 : vector<16x8xf32> to vector<2x8x8xf32>
    %539 = vector.shape_cast %531 : vector<16x8xf32> to vector<2x8x8xf32>
    %540 = vector.shape_cast %537 : vector<16x8xf32> to vector<2x8x8xf32>
    "tpu.trace_start"() <{level = 10 : i32, message = "bqd,bkd->bqk"}> : () -> ()
    %cst_262 = arith.constant dense<0.000000e+00> : vector<2x8x8xf32>
    %541 = tpu.matmul %538, %539, %cst_262 {dimension_numbers = #tpu.dot_dimension_numbers<[2], [2], [1], [1], [0, 0, 0, 1, 1, 1], [0], [0]>} : vector<2x8x8xf32>, vector<2x8x8xf32>, vector<2x8x8xf32> -> vector<2x8x8xf32>
    "tpu.trace_stop"() : () -> ()
    %cst_263 = arith.constant 0.176776692 : f32
    %542 = vector.broadcast %cst_263 : f32 to vector<2x8x8xf32>
    %543 = arith.mulf %541, %542 : vector<2x8x8xf32>
    %cst_264 = arith.constant -1.000000e+30 : f32
    %544 = vector.shape_cast %5 : vector<1x8x8xi1> to vector<1x8x8xi1>
    %545 = vector.broadcast %544 : vector<1x8x8xi1> to vector<2x8x8xi1>
    %546 = vector.broadcast %cst_264 : f32 to vector<2x8x8xf32>
    %547 = arith.select %545, %543, %546 : vector<2x8x8xi1>, vector<2x8x8xf32>
    %cst_265 = arith.constant dense<0xFF800000> : vector<2x8xf32>
    %548 = vector.multi_reduction <maximumf>, %547, %cst_265 [2] : vector<2x8x8xf32> to vector<2x8xf32>
    %549 = vector.shape_cast %548 : vector<2x8xf32> to vector<2x8x1xf32>
    %550 = vector.broadcast %549 : vector<2x8x1xf32> to vector<2x8x8xf32>
    %551 = arith.subf %547, %550 : vector<2x8x8xf32>
    %552 = math.exp %551 : vector<2x8x8xf32>
    %cst_266 = arith.constant dense<0.000000e+00> : vector<2x8xf32>
    %553 = vector.multi_reduction <add>, %552, %cst_266 [2] : vector<2x8x8xf32> to vector<2x8xf32>
    %554 = vector.shape_cast %553 : vector<2x8xf32> to vector<2x8x1xf32>
    %555 = tpu.reciprocal %554 {approx = true} : vector<2x8x1xf32> -> vector<2x8x1xf32>
    %556 = vector.broadcast %555 : vector<2x8x1xf32> to vector<2x8x8xf32>
    %557 = arith.mulf %552, %556 : vector<2x8x8xf32>
    "tpu.trace_start"() <{level = 10 : i32, message = "bqk,bkd->bqd"}> : () -> ()
    %cst_267 = arith.constant dense<0.000000e+00> : vector<2x8x8xf32>
    %558 = tpu.matmul %557, %540, %cst_267 {dimension_numbers = #tpu.dot_dimension_numbers<[2], [1], [1], [2], [0, 0, 0, 1, 1, 2], [0], [0]>} : vector<2x8x8xf32>, vector<2x8x8xf32>, vector<2x8x8xf32> -> vector<2x8x8xf32>
    "tpu.trace_stop"() : () -> ()
    %559 = vector.shape_cast %558 : vector<2x8x8xf32> to vector<16x8xf32>
    %c10_268 = arith.constant 10 : index
    %c0_269 = arith.constant 0 : index
    %c0_270 = arith.constant 0 : index
    %560 = vector.load %arg3[%c10_268, %c0_269, %c0_270] : memref<12x8x32xf32, #tpu.memory_space<vmem>>, vector<1x8x32xf32>
    %561 = vector.shape_cast %560 : vector<1x8x32xf32> to vector<8x32xf32>
    %cst_271 = arith.constant dense<0.000000e+00> : vector<16x32xf32>
    %562 = tpu.matmul %559, %561, %cst_271 {dimension_numbers = #tpu.dot_dimension_numbers<[1], [0], [0], [1], [0, 0, 1, 1], [], []>} : vector<16x8xf32>, vector<8x32xf32>, vector<16x32xf32> -> vector<16x32xf32>
    %563 = arith.addf %528, %562 : vector<16x32xf32>
    %c27 = arith.constant 27 : index
    %c0_272 = arith.constant 0 : index
    %c0_273 = arith.constant 0 : index
    %564 = vector.load %arg2[%c27, %c0_272, %c0_273] : memref<36x32x8xf32, #tpu.memory_space<vmem>>, vector<1x32x8xf32>
    %565 = vector.shape_cast %564 : vector<1x32x8xf32> to vector<32x8xf32>
    %cst_274 = arith.constant dense<0.000000e+00> : vector<16x8xf32>
    %566 = tpu.matmul %457, %565, %cst_274 {dimension_numbers = #tpu.dot_dimension_numbers<[1], [0], [0], [1], [0, 0, 1, 1], [], []>} : vector<16x32xf32>, vector<32x8xf32>, vector<16x8xf32> -> vector<16x8xf32>
    %c31 = arith.constant 31 : index
    %c0_275 = arith.constant 0 : index
    %c0_276 = arith.constant 0 : index
    %567 = vector.load %arg2[%c31, %c0_275, %c0_276] : memref<36x32x8xf32, #tpu.memory_space<vmem>>, vector<1x32x8xf32>
    %568 = vector.shape_cast %567 : vector<1x32x8xf32> to vector<32x8xf32>
    %cst_277 = arith.constant dense<0.000000e+00> : vector<16x8xf32>
    %569 = tpu.matmul %457, %568, %cst_277 {dimension_numbers = #tpu.dot_dimension_numbers<[1], [0], [0], [1], [0, 0, 1, 1], [], []>} : vector<16x32xf32>, vector<32x8xf32>, vector<16x8xf32> -> vector<16x8xf32>
    %c35 = arith.constant 35 : index
    %c0_278 = arith.constant 0 : index
    %c0_279 = arith.constant 0 : index
    %570 = vector.load %arg2[%c35, %c0_278, %c0_279] : memref<36x32x8xf32, #tpu.memory_space<vmem>>, vector<1x32x8xf32>
    %571 = vector.shape_cast %570 : vector<1x32x8xf32> to vector<32x8xf32>
    %cst_280 = arith.constant dense<0.000000e+00> : vector<16x8xf32>
    %572 = tpu.matmul %457, %571, %cst_280 {dimension_numbers = #tpu.dot_dimension_numbers<[1], [0], [0], [1], [0, 0, 1, 1], [], []>} : vector<16x32xf32>, vector<32x8xf32>, vector<16x8xf32> -> vector<16x8xf32>
    %573 = vector.shape_cast %569 : vector<16x8xf32> to vector<2x8x8xf32>
    %574 = vector.shape_cast %566 : vector<16x8xf32> to vector<2x8x8xf32>
    %575 = vector.shape_cast %572 : vector<16x8xf32> to vector<2x8x8xf32>
    "tpu.trace_start"() <{level = 10 : i32, message = "bqd,bkd->bqk"}> : () -> ()
    %cst_281 = arith.constant dense<0.000000e+00> : vector<2x8x8xf32>
    %576 = tpu.matmul %573, %574, %cst_281 {dimension_numbers = #tpu.dot_dimension_numbers<[2], [2], [1], [1], [0, 0, 0, 1, 1, 1], [0], [0]>} : vector<2x8x8xf32>, vector<2x8x8xf32>, vector<2x8x8xf32> -> vector<2x8x8xf32>
    "tpu.trace_stop"() : () -> ()
    %cst_282 = arith.constant 0.176776692 : f32
    %577 = vector.broadcast %cst_282 : f32 to vector<2x8x8xf32>
    %578 = arith.mulf %576, %577 : vector<2x8x8xf32>
    %cst_283 = arith.constant -1.000000e+30 : f32
    %579 = vector.shape_cast %5 : vector<1x8x8xi1> to vector<1x8x8xi1>
    %580 = vector.broadcast %579 : vector<1x8x8xi1> to vector<2x8x8xi1>
    %581 = vector.broadcast %cst_283 : f32 to vector<2x8x8xf32>
    %582 = arith.select %580, %578, %581 : vector<2x8x8xi1>, vector<2x8x8xf32>
    %cst_284 = arith.constant dense<0xFF800000> : vector<2x8xf32>
    %583 = vector.multi_reduction <maximumf>, %582, %cst_284 [2] : vector<2x8x8xf32> to vector<2x8xf32>
    %584 = vector.shape_cast %583 : vector<2x8xf32> to vector<2x8x1xf32>
    %585 = vector.broadcast %584 : vector<2x8x1xf32> to vector<2x8x8xf32>
    %586 = arith.subf %582, %585 : vector<2x8x8xf32>
    %587 = math.exp %586 : vector<2x8x8xf32>
    %cst_285 = arith.constant dense<0.000000e+00> : vector<2x8xf32>
    %588 = vector.multi_reduction <add>, %587, %cst_285 [2] : vector<2x8x8xf32> to vector<2x8xf32>
    %589 = vector.shape_cast %588 : vector<2x8xf32> to vector<2x8x1xf32>
    %590 = tpu.reciprocal %589 {approx = true} : vector<2x8x1xf32> -> vector<2x8x1xf32>
    %591 = vector.broadcast %590 : vector<2x8x1xf32> to vector<2x8x8xf32>
    %592 = arith.mulf %587, %591 : vector<2x8x8xf32>
    "tpu.trace_start"() <{level = 10 : i32, message = "bqk,bkd->bqd"}> : () -> ()
    %cst_286 = arith.constant dense<0.000000e+00> : vector<2x8x8xf32>
    %593 = tpu.matmul %592, %575, %cst_286 {dimension_numbers = #tpu.dot_dimension_numbers<[2], [1], [1], [2], [0, 0, 0, 1, 1, 2], [0], [0]>} : vector<2x8x8xf32>, vector<2x8x8xf32>, vector<2x8x8xf32> -> vector<2x8x8xf32>
    "tpu.trace_stop"() : () -> ()
    %594 = vector.shape_cast %593 : vector<2x8x8xf32> to vector<16x8xf32>
    %c11_287 = arith.constant 11 : index
    %c0_288 = arith.constant 0 : index
    %c0_289 = arith.constant 0 : index
    %595 = vector.load %arg3[%c11_287, %c0_288, %c0_289] : memref<12x8x32xf32, #tpu.memory_space<vmem>>, vector<1x8x32xf32>
    %596 = vector.shape_cast %595 : vector<1x8x32xf32> to vector<8x32xf32>
    %cst_290 = arith.constant dense<0.000000e+00> : vector<16x32xf32>
    %597 = tpu.matmul %594, %596, %cst_290 {dimension_numbers = #tpu.dot_dimension_numbers<[1], [0], [0], [1], [0, 0, 1, 1], [], []>} : vector<16x8xf32>, vector<8x32xf32>, vector<16x32xf32> -> vector<16x32xf32>
    %598 = arith.addf %563, %597 : vector<16x32xf32>
    %599 = arith.addf %427, %598 : vector<16x32xf32>
    %600 = vector.broadcast %432 : vector<1x32xf32> to vector<16x32xf32>
    %601 = arith.addf %599, %600 : vector<16x32xf32>
    %cst_291 = arith.constant dense<0.000000e+00> : vector<16xf32>
    %602 = vector.multi_reduction <add>, %601, %cst_291 [1] : vector<16x32xf32> to vector<16xf32>
    %603 = vector.shape_cast %602 : vector<16xf32> to vector<16x1xf32>
    %cst_292 = arith.constant 3.200000e+01 : f32
    %604 = vector.broadcast %cst_292 : f32 to vector<16x1xf32>
    %605 = arith.divf %603, %604 : vector<16x1xf32>
    %606 = vector.broadcast %605 : vector<16x1xf32> to vector<16x32xf32>
    %607 = arith.subf %601, %606 : vector<16x32xf32>
    %608 = arith.mulf %607, %607 : vector<16x32xf32>
    %cst_293 = arith.constant dense<0.000000e+00> : vector<16xf32>
    %609 = vector.multi_reduction <add>, %608, %cst_293 [1] : vector<16x32xf32> to vector<16xf32>
    %610 = vector.shape_cast %609 : vector<16xf32> to vector<16x1xf32>
    %cst_294 = arith.constant 3.200000e+01 : f32
    %611 = vector.broadcast %cst_294 : f32 to vector<16x1xf32>
    %612 = arith.divf %610, %611 : vector<16x1xf32>
    %613 = vector.broadcast %605 : vector<16x1xf32> to vector<16x32xf32>
    %614 = arith.subf %601, %613 : vector<16x32xf32>
    %cst_295 = arith.constant 9.99999974E-6 : f32
    %615 = vector.broadcast %cst_295 : f32 to vector<16x1xf32>
    %616 = arith.addf %612, %615 : vector<16x1xf32>
    %617 = math.rsqrt %616 : vector<16x1xf32>
    %618 = vector.broadcast %617 : vector<16x1xf32> to vector<16x32xf32>
    %619 = arith.mulf %614, %618 : vector<16x32xf32>
    %620 = vector.broadcast %433 : vector<1x32xf32> to vector<16x32xf32>
    %621 = arith.mulf %619, %620 : vector<16x32xf32>
    %622 = vector.broadcast %434 : vector<1x32xf32> to vector<16x32xf32>
    %623 = arith.addf %621, %622 : vector<16x32xf32>
    %c2_296 = arith.constant 2 : index
    %c0_297 = arith.constant 0 : index
    %c0_298 = arith.constant 0 : index
    %624 = vector.load %arg4[%c2_296, %c0_297, %c0_298] : memref<4x32x128xf32, #tpu.memory_space<vmem>>, vector<1x32x128xf32>
    %625 = vector.shape_cast %624 : vector<1x32x128xf32> to vector<32x128xf32>
    %cst_299 = arith.constant dense<0.000000e+00> : vector<16x128xf32>
    %626 = tpu.matmul %623, %625, %cst_299 {dimension_numbers = #tpu.dot_dimension_numbers<[1], [0], [0], [1], [0, 0, 1, 1], [], []>} : vector<16x32xf32>, vector<32x128xf32>, vector<16x128xf32> -> vector<16x128xf32>
    %c2_300 = arith.constant 2 : index
    %c0_301 = arith.constant 0 : index
    %c0_302 = arith.constant 0 : index
    %627 = vector.load %arg6[%c2_300, %c0_301, %c0_302] : memref<4x1x128xf32, #tpu.memory_space<vmem>>, vector<1x1x128xf32>
    %628 = vector.shape_cast %627 : vector<1x1x128xf32> to vector<1x128xf32>
    %629 = vector.broadcast %628 : vector<1x128xf32> to vector<16x128xf32>
    %630 = arith.addf %626, %629 : vector<16x128xf32>
    %cst_303 = arith.constant 0.000000e+00 : f32
    %631 = vector.broadcast %cst_303 : f32 to vector<16x128xf32>
    %632 = arith.maximumf %630, %631 : vector<16x128xf32>
    %c2_304 = arith.constant 2 : index
    %c0_305 = arith.constant 0 : index
    %c0_306 = arith.constant 0 : index
    %633 = vector.load %arg5[%c2_304, %c0_305, %c0_306] : memref<3x128x32xf32, #tpu.memory_space<vmem>>, vector<1x128x32xf32>
    %634 = vector.shape_cast %633 : vector<1x128x32xf32> to vector<128x32xf32>
    %cst_307 = arith.constant dense<0.000000e+00> : vector<16x32xf32>
    %635 = tpu.matmul %632, %634, %cst_307 {dimension_numbers = #tpu.dot_dimension_numbers<[1], [0], [0], [1], [0, 0, 1, 1], [], []>} : vector<16x128xf32>, vector<128x32xf32>, vector<16x32xf32> -> vector<16x32xf32>
    %636 = arith.addf %601, %635 : vector<16x32xf32>
    %637 = vector.broadcast %435 : vector<1x32xf32> to vector<16x32xf32>
    %638 = arith.addf %636, %637 : vector<16x32xf32>
    %c3_308 = arith.constant 3 : index
    %c0_309 = arith.constant 0 : index
    %c0_310 = arith.constant 0 : index
    %639 = vector.load %arg4[%c3_308, %c0_309, %c0_310] : memref<4x32x128xf32, #tpu.memory_space<vmem>>, vector<1x32x128xf32>
    %640 = vector.shape_cast %639 : vector<1x32x128xf32> to vector<32x128xf32>
    %cst_311 = arith.constant dense<0.000000e+00> : vector<16x128xf32>
    %641 = tpu.matmul %638, %640, %cst_311 {dimension_numbers = #tpu.dot_dimension_numbers<[1], [0], [0], [1], [0, 0, 1, 1], [], []>} : vector<16x32xf32>, vector<32x128xf32>, vector<16x128xf32> -> vector<16x128xf32>
    %c3_312 = arith.constant 3 : index
    %c0_313 = arith.constant 0 : index
    %c0_314 = arith.constant 0 : index
    %642 = vector.load %arg6[%c3_312, %c0_313, %c0_314] : memref<4x1x128xf32, #tpu.memory_space<vmem>>, vector<1x1x128xf32>
    %643 = vector.shape_cast %642 : vector<1x1x128xf32> to vector<1x128xf32>
    %644 = vector.broadcast %643 : vector<1x128xf32> to vector<16x128xf32>
    %645 = arith.addf %641, %644 : vector<16x128xf32>
    %646 = vector.shape_cast %645 : vector<16x128xf32> to vector<2x8x128xf32>
    %c0_315 = arith.constant 0 : index
    %c0_316 = arith.constant 0 : index
    %c0_317 = arith.constant 0 : index
    %647 = vector.load %arg8[%c0_315, %c0_316, %c0_317] : memref<2x8x128xf32, #tpu.memory_space<vmem>>, vector<2x8x128xf32>
    tpu.vector_store %arg8[%c0_315, %c0_316, %c0_317], %646 {strides = array<i32>} : memref<2x8x128xf32, #tpu.memory_space<vmem>>, vector<2x8x128xf32>,
    return
  }
  func.func @transform_0(%arg0: i32) -> (i32, i32, i32) {
    %c0_i32 = arith.constant 0 : i32
    %c0_i32_0 = arith.constant 0 : i32
    %c0_i32_1 = arith.constant 0 : i32
    %c0_i32_2 = arith.constant 0 : i32
    return %c0_i32, %c0_i32_0, %c0_i32_1 : i32, i32, i32
  }
  func.func @transform_1(%arg0: i32) -> (i32, i32, i32) {
    %c0_i32 = arith.constant 0 : i32
    %c0_i32_0 = arith.constant 0 : i32
    %c0_i32_1 = arith.constant 0 : i32
    %c0_i32_2 = arith.constant 0 : i32
    return %c0_i32, %c0_i32_0, %c0_i32_1 : i32, i32, i32
  }
  func.func @transform_2(%arg0: i32) -> (i32, i32, i32) {
    %c0_i32 = arith.constant 0 : i32
    %c0_i32_0 = arith.constant 0 : i32
    %c0_i32_1 = arith.constant 0 : i32
    %c0_i32_2 = arith.constant 0 : i32
    return %c0_i32, %c0_i32_0, %c0_i32_1 : i32, i32, i32
  }
  func.func @transform_3(%arg0: i32) -> (i32, i32, i32) {
    %c0_i32 = arith.constant 0 : i32
    %c0_i32_0 = arith.constant 0 : i32
    %c0_i32_1 = arith.constant 0 : i32
    %c0_i32_2 = arith.constant 0 : i32
    return %c0_i32, %c0_i32_0, %c0_i32_1 : i32, i32, i32
  }
  func.func @transform_4(%arg0: i32) -> (i32, i32, i32) {
    %c0_i32 = arith.constant 0 : i32
    %c0_i32_0 = arith.constant 0 : i32
    %c0_i32_1 = arith.constant 0 : i32
    %c0_i32_2 = arith.constant 0 : i32
    return %c0_i32, %c0_i32_0, %c0_i32_1 : i32, i32, i32
  }
  func.func @transform_5(%arg0: i32) -> (i32, i32, i32) {
    %c0_i32 = arith.constant 0 : i32
    %c0_i32_0 = arith.constant 0 : i32
    %c0_i32_1 = arith.constant 0 : i32
    %c0_i32_2 = arith.constant 0 : i32
    return %c0_i32, %c0_i32_0, %c0_i32_1 : i32, i32, i32
  }
  func.func @transform_6(%arg0: i32) -> (i32, i32, i32) {
    %c0_i32 = arith.constant 0 : i32
    %c0_i32_0 = arith.constant 0 : i32
    %c0_i32_1 = arith.constant 0 : i32
    %c0_i32_2 = arith.constant 0 : i32
    return %c0_i32, %c0_i32_0, %c0_i32_1 : i32, i32, i32
  }
  func.func @transform_7(%arg0: i32) -> (i32, i32, i32) {
    %c0_i32 = arith.constant 0 : i32
    %c0_i32_0 = arith.constant 0 : i32
    %c0_i32_1 = arith.constant 0 : i32
    %c0_i32_2 = arith.constant 0 : i32
    return %c0_i32, %c0_i32_0, %c0_i32_1 : i32, i32, i32
  }
}

</mosaic_0001>

<bundles_post_ra>
// kernel: tpu_custom_call.1
= control target key start
LH: loop header
LB: loop body
LE: loop exit
PB: predicated region body
PF: predicated region fallthrough
CT: control target
= control target key end

     0   :  { %vm35_vm0 = vcmask 261120   ;;  %s12476_s0 = inlined_call_operand.vmem [shape: f32[2,8,32], index: 0, kind: input, shape index: {}]   ;;  %s12477_s1 = inlined_call_operand.vmem [shape: f32[36,32,8], index: 1, kind: input, shape index: {}]   ;;  %s12478_s2 = inlined_call_operand.vmem [shape: f32[12,8,32], index: 2, kind: input, shape index: {}]   ;;  %s12479_s3 = inlined_call_operand.vmem [shape: f32[4,32,128], index: 3, kind: input, shape index: {}]   ;;  %s12480_s4 = inlined_call_operand.vmem [shape: f32[3,128,32], index: 4, kind: input, shape index: {}]   ;;  %s12481_s5 = inlined_call_operand.vmem [shape: f32[4,1,128], index: 5, kind: input, shape index: {}]   ;;  %s12482_s6 = inlined_call_operand.vmem [shape: f32[3,6,32], index: 6, kind: input, shape index: {}]   ;;  %s12483_s7 = inlined_call_operand.hbm [shape: f32[2,8,128], index: 7, kind: output, shape index: {}]  }
   0x1   :  { %v11068_v0 = vld [vmem:[%s12476_s0] sm:$0xff]  ;;  %v11073_v1 = vld [vmem:[%s12476_s0 + $0x8] sm:$0xff] }
   0x2   :  { %12 = vsyncpa [#allocation3], 0  ;;  %v36_v2 = vsel %vm35_vm0, %v11068_v0, 0.0  ;;  %v39_v3 = vsel %vm35_vm0, %v11073_v1, 0.0  ;;  %v75_v14 = vld [vmem:[%s12477_s1] sm:$0xff]  ;;  %v76_v15 = vld [vmem:[%s12477_s1 + $0x8] sm:$0xff]  ;;  %v29_v34 = vlaneseq }
   0x3   :  { %37 = vadd.xlane.f32.xlu0 %v36_v2  ;;  %v8793_v16 = vld [vmem:[%s12477_s1 + $0x100] sm:$0xff]  ;;  %v10436_v17 = vpack.c.bf16 %v76_v15, %v75_v14  ;;  %v8794_v18 = vld [vmem:[%s12477_s1 + $0x108] sm:$0xff]  ;;  %v77_v20 = vld [vmem:[%s12477_s1 + $0x10] sm:$0xff]  ;;  %vm11021_vm1 = vmmov 0   ;;  %vm320_vm2 = vcmask 64512  }
   0x4   :  { %v10452_v19 = vpack.c.bf16 %v8794_v18, %v8793_v16  ;;  %v78_v21 = vld [vmem:[%s12477_s1 + $0x18] sm:$0xff]  ;;  %v8795_v22 = vld [vmem:[%s12477_s1 + $0x110] sm:$0xff]  ;;  %v8787_v26 = vld [vmem:[%s12477_s1 + $0x80] sm:$0xff]  ;;  %v11120_v38 = vshrl.u32 %v29_v34, 7  ;;  %v32_v14 = vand.u32 127, %v29_v34 }
   0x5   :  { %10437 = vmatprep.subr.bf16.mxu1 %v10436_v17  ;;  %v10440_v23 = vpack.c.bf16 %v78_v21, %v77_v20  ;;  %v8796_v24 = vld [vmem:[%s12477_s1 + $0x118] sm:$0xff]  ;;  %v8788_v27 = vld [vmem:[%s12477_s1 + $0x88] sm:$0xff]  ;;  %v8805_v28 = vld [vmem:[%s12477_s1 + $0x20] sm:$0xff] }
   0x6   :  { %10453 = vmatprep.subr.bf16.mxu0 %v10452_v19  ;;  %10439 = vmatpush3.bf16.msra.mxu1 %v10436_v17  ;;  %v10456_v25 = vpack.c.bf16 %v8796_v24, %v8795_v22  ;;  %v10444_v29 = vpack.c.bf16 %v8788_v27, %v8787_v26  ;;  %v8806_v30 = vld [vmem:[%s12477_s1 + $0x28] sm:$0xff]  ;;  %v11123_v40 = vsub.s32 0, %v11120_v38  ;;  %v11128_v41 = vld [vmem:[%s12482_s6] sm:$0x3f]  ;;  %v11131_v42 = vsub.s32 1, %v11120_v38  ;;  %v8789_v51 = vld [vmem:[%s12477_s1 + $0x90] sm:$0xff] }
   0x7   :  { %40 = vadd.xlane.f32.xlu0 %v39_v3  ;;  %10455 = vmatpush3.bf16.msra.mxu0 %v10452_v19  ;;  %v10460_v31 = vpack.c.bf16 %v8806_v30, %v8805_v28  ;;  %v8790_v53 = vld [vmem:[%s12477_s1 + $0x98] sm:$0xff]  ;;  %v8807_v54 = vld [vmem:[%s12477_s1 + $0x30] sm:$0xff]  ;;  %v8817_v59 = vld [vmem:[%s12477_s1 + $0x120] sm:$0xff]  ;;  %v11020_v3 = vmov 0.0   ;;  %vm11210_vm3 = vcmp.ge.s32.totalorder %v11120_v38, %v32_v14 }
   0x8   :  { %10441 = vmatprep.subr.bf16.mxu1 %v10440_v23  ;;  %10457 = vmatprep.subr.bf16.mxu0 %v10456_v25  ;;  %v66_v43 = vrot.slane %v11128_v41, %v11123_v40  ;;  %v72_v45 = vrot.slane %v11128_v41, %v11131_v42  ;;  %v8808_v55 = vld [vmem:[%s12477_s1 + $0x38] sm:$0xff]  ;;  %v10448_v57 = vpack.c.bf16 %v8790_v53, %v8789_v51  ;;  %v8818_v60 = vld [vmem:[%s12477_s1 + $0x128] sm:$0xff]  ;;  %v8819_v62 = vld [vmem:[%s12477_s1 + $0x130] sm:$0xff] }
   0x9   :  { %v10464_v58 = vpack.c.bf16 %v8808_v55, %v8807_v54  ;;  %v10476_v61 = vpack.c.bf16 %v8818_v60, %v8817_v59  ;;  %v8820_v63 = vld [vmem:[%s12477_s1 + $0x138] sm:$0xff] }
   0xa   :  { %10443 = vmatpush3.bf16.msra.mxu1 %v10440_v23  ;;  %v10480_v2 = vpack.c.bf16 %v8820_v63, %v8819_v62 }
   0xb   :  { %10459 = vmatpush3.bf16.msra.mxu0 %v10456_v25  ;;  %10445 = vmatprep.subr.bf16.mxu1 %v10444_v29 }
   0xc   :  { %10461 = vmatprep.subr.bf16.mxu0 %v10460_v31 }
  0x90   :  { %v38_v4 = vpop.xlane.xlu0 %37 }
  0x91   :  { %v43_v5 = vmul.f32 0.03125, %v38_v4 }
  0x93   :  { %v45_v6 = vsub.f32 %v11068_v0, %v43_v5 }
  0x94   :  { %v41_v7 = vpop.xlane.xlu0 %40 }
  0x95   :  { %v44_v8 = vmul.f32 0.03125, %v41_v7  ;;  %v47_v9 = vmul.f32 %v45_v6, %v45_v6 }
  0x97   :  { %v46_v10 = vsub.f32 %v11073_v1, %v44_v8  ;;  %v49_v11 = vsel %vm35_vm0, %v47_v9, 0.0 }
  0x98   :  { %50 = vadd.xlane.f32.xlu1 %v49_v11 }
  0x99   :  { %v48_v12 = vmul.f32 %v46_v10, %v46_v10 }
  0x9b   :  { %v52_v13 = vsel %vm35_vm0, %v48_v12, 0.0 }
  0x9c   :  { %53 = vadd.xlane.f32.xlu1 %v52_v13 }
 0x125   :  { %v51_v32 = vpop.xlane.xlu1 %50 }
 0x126   :  { %v55_v33 = vmul.f32 0.03125, %v51_v32 }
 0x128   :  { %v57_v35 = vadd.f32 1e-05, %v55_v33 }
 0x129   :  { %v54_v36 = vpop.xlane.xlu1 %53 }
 0x12a   :  { %10875 = vrsqrt.f32 %v57_v35  ;;  %v56_v37 = vmul.f32 0.03125, %v54_v36 }
 0x12c   :  { %v58_v39 = vadd.f32 1e-05, %v56_v37 }
 0x12e   :  { %10877 = vrsqrt.f32 %v58_v39  ;;  %v8811_v39 = vld [vmem:[%s12477_s1 + $0xa0] sm:$0xff] }
 0x134   :  { %v10876_v44 = vpop.eup %10875 }
 0x135   :  { %v61_v46 = vmul.f32 %v10876_v44, %v45_v6 }
 0x137   :  { %v67_v47 = vmul.f32 %v66_v43, %v61_v46 }
 0x138   :  { %v10878_v48 = vpop.eup %10877 }
 0x139   :  { %v11137_v49 = vadd.f32 %v72_v45, %v67_v47  ;;  %v62_v50 = vmul.f32 %v10878_v48, %v46_v10  ;;  %v8813_v47 = vld [vmem:[%s12477_s1 + $0xb0] sm:$0xff]  ;;  %v8814_v48 = vld [vmem:[%s12477_s1 + $0xb8] sm:$0xff] }
 0x13b   :  { %v68_v52 = vmul.f32 %v66_v43, %v62_v50  ;;  %9599 = vmatprep.mubr.msk.f32.mxu1 %vm35_vm0, %v11137_v49  ;;  %9621 = vmatprep.mubr.msk.f32.mxu0 %vm35_vm0, %v11137_v49  ;;  %v8812_v43 = vld [vmem:[%s12477_s1 + $0xa8] sm:$0xff] }
 0x13c   :  { %v10468_v46 = vpack.c.bf16 %v8812_v43, %v8811_v39  ;;  %v8829_v39 = vld [vmem:[%s12478_s2 + $0x8] sm:$0xff]  ;;  %v647_v43 = vld [vmem:[%s12478_s2] sm:$0xff] }
 0x13d   :  { %v11155_v56 = vadd.f32 %v72_v45, %v68_v52  ;;  %v10472_v52 = vpack.c.bf16 %v8814_v48, %v8813_v47 }
 0x13f   :  { %9600 = vmatmul.mubr.msk.f32.vlgmr.msra.gmra.mrb[0].mxu1 %vm35_vm0, %v11155_v56  ;;  %9622 = vmatmul.mubr.msk.f32.vlgmr.msra.gmra.mrb[0].mxu0 %vm35_vm0, %v11155_v56 }
 0x140   :  { %10447 = vmatpush3.bf16.msra.mxu1 %v10444_v29  ;;  %10463 = vmatpush3.bf16.msra.mxu0 %v10460_v31 }
 0x141   :  { %9610 = vmatprep.mubr.msk.f32.mxu1 %vm35_vm0, %v11137_v49  ;;  %9652 = vmatprep.mubr.msk.f32.mxu0 %vm35_vm0, %v11137_v49 }
 0x142   :  { %10449 = vmatprep.subr.bf16.mxu1 %v10448_v57  ;;  %10465 = vmatprep.subr.bf16.mxu0 %v10464_v58 }
 0x144   :  { %10451 = vmatpush3.bf16.msra.mxu1 %v10448_v57  ;;  %10467 = vmatpush3.bf16.msra.mxu0 %v10464_v58 }
 0x145   :  { %10477 = vmatprep.subr.bf16.mxu0 %v10476_v61  ;;  %9624 = vmatprep.subr.mxu1 %v11020_v3 }
 0x147   :  { %9611 = vmatmul.mubr.msk.f32.vlgmr.msra.gmra.mrb[2].mxu1 %vm35_vm0, %v11155_v56  ;;  %9653 = vmatmul.mubr.msk.f32.vlgmr.msra.gmra.mrb[2].mxu0 %vm35_vm0, %v11155_v56 }
 0x148   :  { %10479 = vmatpush3.bf16.msra.mxu0 %v10476_v61  ;;  %9674 = vmatprep.mubr.msk.f32.mxu0 %vm35_vm0, %v11137_v49 }
 0x149   :  { %10481 = vmatprep.subr.bf16.mxu0 %v10480_v2  ;;  %9626 = vmatprep.mubr.msk.f32.mxu1 %vm11021_vm1, %v11020_v3 }
 0x14c   :  { %10483 = vmatpush3.bf16.msra.mxu0 %v10480_v2 }
 0x14d   :  { %9687 = vmatprep.subr.mxu0 %v11020_v3 }
 0x14f   :  { %9675 = vmatmul.mubr.msk.f32.vlgmr.msra.gmra.mrb[4].mxu0 %vm35_vm0, %v11155_v56 }
 0x150   :  { %9689 = vmatprep.mubr.msk.f32.mxu0 %vm11021_vm1, %v11020_v3 }
 0x212   :  { %v9601_v4 = vpop.f32.mrb[0].mxu1  ;;  %v9623_v5 = vpop.f32.mrb[0].mxu0 }
 0x213   :  { %v151_v6 = vpop.f32.mrb[1].mxu1  ;;  %v311_v7 = vpop.f32.mrb[1].mxu0 }
 0x214   :  { %9625 = vmatpush3.xpose.msk.msra.mxu1 %vm320_vm2, %v151_v6 }
 0x215   :  { %9629 = vmatprep.subr.mxu1 %v11020_v3 }
 0x21a   :  { %v9612_v8 = vpop.f32.mrb[2].mxu1  ;;  %v11193_v9 = vpop.f32.mrb[2].mxu0 }
 0x21b   :  { %v231_v10 = vpop.f32.mrb[3].mxu1  ;;  %v11195_v11 = vpop.f32.mrb[3].mxu0 }
 0x21c   :  { %9627 = vmatmul.mubr.msk.f32.vlgmr.msra.gmra.mrb[4].mxu1 %vm320_vm2, %v231_v10 }
 0x21d   :  { %9630 = vmatpush3.xpose.msk.msra.mxu1 %vm320_vm2, %v9601_v4  ;;  %9631 = vmatprep.mubr.msk.f32.mxu1 %vm11021_vm1, %v11020_v3 }
 0x21e   :  { %9634 = vmatprep.subr.mxu1 %v11020_v3 }
 0x220   :  { %9632 = vmatmul.mubr.msk.f32.vlgmr.msra.gmra.mrb[6].mxu1 %vm320_vm2, %v9612_v8 }
 0x221   :  { %9635 = vmatpush3.msra.mxu1 %v311_v7  ;;  %9636 = vmatprep.mubr.msk.f32.mxu1 %vm11021_vm1, %v11020_v3 }
 0x222   :  { %v11205_v12 = vpop.f32.mrb[4].mxu0  ;;  %9639 = vmatprep.subr.mxu1 %v11020_v3 }
 0x223   :  { %v879_v13 = vpop.f32.mrb[5].mxu0 }
 0x224   :  { %9688 = vmatpush3.msra.mxu0 %v879_v13 }
 0x225   :  { %9697 = vmatprep.subr.mxu0 %v8829_v39 }
 0x2ef   :  { %v393_v16 = vpop.f32.mrb[4].mxu1 }
 0x2f0   :  { %v473_v17 = vmul.f32 0.17677669, %v393_v16  ;;  %v9628_v18 = vpop.f32.mrb[5].mxu1 }
 0x2f2   :  { %v477_v19 = vsel %vm11210_vm3, %v473_v17, -1e+30 }
 0x2f3   :  { %v469_v20 = vpop.f32.mrb[6].mxu1  ;;  %v479_v21 = vsel %vm320_vm2, %v477_v19, -inf }
 0x2f4   :  { %v474_v22 = vmul.f32 0.17677669, %v469_v20  ;;  %480 = vmax.xlane.f32.xlu0 %v479_v21  ;;  %v9633_v23 = vpop.f32.mrb[7].mxu1  ;;  %v8834_v20 = vld [vmem:[%s12477_s1 + $0x40] sm:$0xff]  ;;  %v8835_v21 = vld [vmem:[%s12477_s1 + $0x48] sm:$0xff] }
 0x2f6   :  { %v478_v24 = vsel %vm11210_vm3, %v474_v22, -1e+30  ;;  %v10484_v22 = vpack.c.bf16 %v8835_v21, %v8834_v20 }
 0x2f7   :  { %v482_v25 = vsel %vm320_vm2, %v478_v24, -inf }
 0x2f8   :  { %483 = vmax.xlane.f32.xlu1 %v482_v25 }
 0x381   :  { %v481_v26 = vpop.xlane.xlu0 %480 }
 0x382   :  { %v485_v27 = vsub.f32 %v477_v19, %v481_v26 }
 0x384   :  { %v487_v28 = vmul.f32 1.442695, %v485_v27  ;;  %v8836_v27 = vld [vmem:[%s12477_s1 + $0x50] sm:$0xff] }
 0x385   :  { %v484_v29 = vpop.xlane.xlu1 %483 }
 0x386   :  { %10879 = vpow2.f32 %v487_v28  ;;  %v486_v30 = vsub.f32 %v478_v24, %v484_v29  ;;  %v8837_v28 = vld [vmem:[%s12477_s1 + $0x58] sm:$0xff] }
 0x388   :  { %v489_v31 = vmul.f32 1.442695, %v486_v30 }
 0x38a   :  { %10881 = vpow2.f32 %v489_v31  ;;  %v10488_v31 = vpack.c.bf16 %v8837_v28, %v8836_v27  ;;  %v8863_v28 = vld [vmem:[%s12477_s1 + $0x70] sm:$0xff] }
 0x390   :  { %v10880_v32 = vpop.eup %10879 }
 0x391   :  { %v491_v33 = vsel %vm320_vm2, %v10880_v32, 0.0 }
 0x392   :  { %492 = vadd.xlane.f32.xlu0 %v491_v33  ;;  %v8847_v33 = vld [vmem:[%s12477_s1 + $0x148] sm:$0xff] }
 0x394   :  { %v10882_v34 = vpop.eup %10881 }
 0x395   :  { %v494_v35 = vsel %vm320_vm2, %v10882_v34, 0.0 }
 0x396   :  { %495 = vadd.xlane.f32.xlu1 %v494_v35  ;;  %v8848_v35 = vld [vmem:[%s12477_s1 + $0x150] sm:$0xff] }
 0x41f   :  { %v493_v36 = vpop.xlane.xlu0 %492 }
 0x420   :  { %10883 = vrcp.f32 %v493_v36  ;;  %v8849_v36 = vld [vmem:[%s12477_s1 + $0x158] sm:$0xff] }
 0x423   :  { %v496_v37 = vpop.xlane.xlu1 %495 }
 0x424   :  { %10885 = vrcp.f32 %v496_v37  ;;  %v10504_v37 = vpack.c.bf16 %v8849_v36, %v8848_v35  ;;  %v8873_v35 = vld [vmem:[%s12477_s1 + $0x160] sm:$0xff]  ;;  %v8874_v36 = vld [vmem:[%s12477_s1 + $0x168] sm:$0xff] }
 0x42a   :  { %v10884_v44 = vpop.eup %10883 }
 0x42b   :  { %v499_v45 = vmul.f32 %v10884_v44, %v10880_v32  ;;  %v8846_v32 = vld [vmem:[%s12477_s1 + $0x140] sm:$0xff] }
 0x42d   :  { %9637 = vmatmul.mubr.msk.f32.vlgmr.msra.gmra.mrb[8].mxu1 %vm320_vm2, %v499_v45  ;;  %v8840_v45 = vld [vmem:[%s12477_s1 + $0xc0] sm:$0xff] }
 0x42e   :  { %v10886_v50 = vpop.eup %10885  ;;  %9640 = vmatpush3.msra.mxu1 %v9623_v5  ;;  %9641 = vmatprep.mubr.msk.f32.mxu1 %vm11021_vm1, %v11020_v3 }
 0x42f   :  { %v500_v51 = vmul.f32 %v10886_v50, %v10882_v34  ;;  %10469 = vmatprep.subr.bf16.mxu1 %v10468_v46  ;;  %v10500_v34 = vpack.c.bf16 %v8847_v33, %v8846_v32 }
 0x431   :  { %9642 = vmatmul.mubr.msk.f32.vlgmr.msra.gmra.mrb[10].mxu1 %vm320_vm2, %v500_v51 }
 0x432   :  { %10471 = vmatpush3.bf16.msra.mxu1 %v10468_v46  ;;  %9663 = vmatprep.mubr.msk.f32.mxu1 %vm35_vm0, %v11137_v49  ;;  %v8841_v46 = vld [vmem:[%s12477_s1 + $0xc8] sm:$0xff] }
 0x433   :  { %10473 = vmatprep.subr.bf16.mxu1 %v10472_v52  ;;  %v10492_v48 = vpack.c.bf16 %v8841_v46, %v8840_v45  ;;  %v8867_v45 = vld [vmem:[%s12477_s1 + $0xe0] sm:$0xff]  ;;  %v8868_v46 = vld [vmem:[%s12477_s1 + $0xe8] sm:$0xff] }
 0x436   :  { %10475 = vmatpush3.bf16.msra.mxu1 %v10472_v52  ;;  %v8842_v52 = vld [vmem:[%s12477_s1 + $0xd0] sm:$0xff] }
 0x437   :  { %9677 = vmatprep.subr.mxu1 %v11020_v3 }
 0x439   :  { %9664 = vmatmul.mubr.msk.f32.vlgmr.msra.gmra.mrb[12].mxu1 %vm35_vm0, %v11155_v56 }
 0x43a   :  { %9679 = vmatprep.mubr.msk.f32.mxu1 %vm11021_vm1, %v11020_v3 }
 0x43f   :  { %9678 = vmatpush3.xpose.msk.msra.mxu1 %vm320_vm2, %v11195_v11 }
 0x440   :  { %9682 = vmatprep.subr.mxu1 %v11020_v3 }
 0x500   :  { %v11248_v53 = vpop.f32.mrb[8].mxu1 }
 0x501   :  { %v9638_v54 = vpop.f32.mrb[9].mxu1 }
 0x502   :  { %v8843_v54 = vld [vmem:[%s12477_s1 + $0xd8] sm:$0xff] }
 0x504   :  { %v11250_v55 = vpop.f32.mrb[10].mxu1 }
 0x505   :  { %v9643_v57 = vpop.f32.mrb[11].mxu1 }
 0x506   :  { %v10496_v57 = vpack.c.bf16 %v8843_v54, %v8842_v52 }
 0x50c   :  { %v9665_v58 = vpop.f32.mrb[12].mxu1 }
 0x50d   :  { %v799_v59 = vpop.f32.mrb[13].mxu1 }
 0x50e   :  { %9680 = vmatmul.mubr.msk.f32.vlgmr.msra.gmra.mrb[14].mxu1 %vm320_vm2, %v799_v59 }
 0x50f   :  { %9683 = vmatpush3.xpose.msk.msra.mxu1 %vm320_vm2, %v11193_v9  ;;  %9684 = vmatprep.mubr.msk.f32.mxu1 %vm11021_vm1, %v11020_v3 }
 0x510   :  { %9692 = vmatprep.subr.mxu1 %v11020_v3 }
 0x512   :  { %9685 = vmatmul.mubr.msk.f32.vlgmr.msra.gmra.mrb[16].mxu1 %vm320_vm2, %v9665_v58 }
 0x513   :  { %9693 = vmatpush3.msra.mxu1 %v11205_v12  ;;  %9694 = vmatprep.mubr.msk.f32.mxu1 %vm11021_vm1, %v11020_v3 }
 0x514   :  { %10485 = vmatprep.subr.bf16.mxu1 %v10484_v22 }
 0x5e1   :  { %v960_v60 = vpop.f32.mrb[14].mxu1 }
 0x5e2   :  { %v1040_v61 = vmul.f32 0.17677669, %v960_v60  ;;  %v9681_v62 = vpop.f32.mrb[15].mxu1 }
 0x5e4   :  { %v1042_v63 = vsel %vm11210_vm3, %v1040_v61, -1e+30 }
 0x5e5   :  { %v1036_v2 = vpop.f32.mrb[16].mxu1  ;;  %v1044_v4 = vsel %vm320_vm2, %v1042_v63, -inf }
 0x5e6   :  { %v1041_v5 = vmul.f32 0.17677669, %v1036_v2  ;;  %1045 = vmax.xlane.f32.xlu0 %v1044_v4  ;;  %v9686_v6 = vpop.f32.mrb[17].mxu1 }
 0x5e8   :  { %v1043_v7 = vsel %vm11210_vm3, %v1041_v5, -1e+30 }
 0x5e9   :  { %v1047_v8 = vsel %vm320_vm2, %v1043_v7, -inf }
 0x5ea   :  { %1048 = vmax.xlane.f32.xlu1 %v1047_v8 }
 0x673   :  { %v1046_v9 = vpop.xlane.xlu0 %1045 }
 0x674   :  { %v1050_v10 = vsub.f32 %v1042_v63, %v1046_v9 }
 0x676   :  { %v1052_v11 = vmul.f32 1.442695, %v1050_v10 }
 0x677   :  { %v1049_v12 = vpop.xlane.xlu1 %1048 }
 0x678   :  { %10887 = vpow2.f32 %v1052_v11  ;;  %v1051_v13 = vsub.f32 %v1043_v7, %v1049_v12 }
 0x67a   :  { %v1054_v14 = vmul.f32 1.442695, %v1051_v13 }
 0x67c   :  { %10889 = vpow2.f32 %v1054_v14 }
 0x682   :  { %v10888_v16 = vpop.eup %10887 }
 0x683   :  { %v1056_v17 = vsel %vm320_vm2, %v10888_v16, 0.0 }
 0x684   :  { %1057 = vadd.xlane.f32.xlu0 %v1056_v17 }
 0x686   :  { %v10890_v18 = vpop.eup %10889 }
 0x687   :  { %v1059_v19 = vsel %vm320_vm2, %v10890_v18, 0.0 }
 0x688   :  { %1060 = vadd.xlane.f32.xlu1 %v1059_v19 }
 0x711   :  { %v1058_v23 = vpop.xlane.xlu0 %1057 }
 0x712   :  { %10891 = vrcp.f32 %v1058_v23  ;;  %v8862_v23 = vld [vmem:[%s12477_s1 + $0x68] sm:$0xff] }
 0x715   :  { %v1061_v24 = vpop.xlane.xlu1 %1060 }
 0x716   :  { %10893 = vrcp.f32 %v1061_v24 }
 0x71c   :  { %v10892_v25 = vpop.eup %10891 }
 0x71d   :  { %v1064_v26 = vmul.f32 %v10892_v25, %v10888_v16  ;;  %v8858_v25 = vld [vmem:[%s12478_s2 + $0x10] sm:$0xff] }
 0x71f   :  { %9690 = vmatmul.mubr.msk.f32.vlgmr.msra.gmra.mrb[6].mxu0 %vm320_vm2, %v1064_v26 }
 0x720   :  { %v10894_v29 = vpop.eup %10893  ;;  %9698 = vmatpush3.msra.mxu0 %v8829_v39  ;;  %v8875_v39 = vld [vmem:[%s12477_s1 + $0x170] sm:$0xff] }
 0x721   :  { %v1065_v30 = vmul.f32 %v10894_v29, %v10890_v18  ;;  %9702 = vmatprep.subr.mxu0 %v647_v43  ;;  %v8864_v29 = vld [vmem:[%s12477_s1 + $0x78] sm:$0xff] }
 0x722   :  { %v10512_v33 = vpack.c.bf16 %v8864_v29, %v8863_v28 }
 0x723   :  { %9695 = vmatmul.mubr.msk.f32.vlgmr.msra.gmra.mrb[18].mxu1 %vm320_vm2, %v1065_v30 }
 0x724   :  { %10487 = vmatpush3.bf16.msra.mxu1 %v10484_v22  ;;  %9715 = vmatprep.mubr.msk.f32.mxu1 %vm35_vm0, %v11137_v49  ;;  %v8861_v22 = vld [vmem:[%s12477_s1 + $0x60] sm:$0xff] }
 0x725   :  { %10489 = vmatprep.subr.bf16.mxu1 %v10488_v31  ;;  %v10508_v24 = vpack.c.bf16 %v8862_v23, %v8861_v22 }
 0x728   :  { %10491 = vmatpush3.bf16.msra.mxu1 %v10488_v31 }
 0x729   :  { %10501 = vmatprep.subr.bf16.mxu1 %v10500_v34 }
 0x72b   :  { %9716 = vmatmul.mubr.msk.f32.vlgmr.msra.gmra.mrb[20].mxu1 %vm35_vm0, %v11155_v56 }
 0x72c   :  { %10503 = vmatpush3.bf16.msra.mxu1 %v10500_v34  ;;  %9737 = vmatprep.mubr.msk.f32.mxu1 %vm35_vm0, %v11137_v49 }
 0x72d   :  { %10505 = vmatprep.subr.bf16.mxu1 %v10504_v37 }
 0x730   :  { %10507 = vmatpush3.bf16.msra.mxu1 %v10504_v37  ;;  %v10524_v37 = vpack.c.bf16 %v8874_v36, %v8873_v35 }
 0x731   :  { %9745 = vmatprep.subr.mxu1 %v11020_v3 }
 0x733   :  { %9738 = vmatmul.mubr.msk.f32.vlgmr.msra.gmra.mrb[22].mxu1 %vm35_vm0, %v11155_v56 }
 0x734   :  { %9747 = vmatprep.mubr.msk.f32.mxu1 %vm11021_vm1, %v11020_v3 }
 0x7f2   :  { %v1135_v44 = vpop.f32.mrb[6].mxu0 }
 0x7f3   :  { %v9691_v47 = vpop.f32.mrb[7].mxu0  ;;  %9699 = vmatprep.mubr.msk.f32.mxu0 %vm320_vm2, %v1135_v44 }
 0x7f4   :  { %v10516_v47 = vpack.c.bf16 %v8868_v46, %v8867_v45 }
 0x7f6   :  { %v1208_v50 = vpop.f32.mrb[18].mxu1 }
 0x7f7   :  { %v9696_v51 = vpop.f32.mrb[19].mxu1  ;;  %9700 = vmatmul.mubr.msk.f32.vlgmr.msra.gmra.mrb[8].mxu0 %vm320_vm2, %v1208_v50  ;;  %v8870_v50 = vld [vmem:[%s12477_s1 + $0xf8] sm:$0xff] }
 0x7f8   :  { %9703 = vmatpush3.msra.mxu0 %v647_v43  ;;  %9704 = vmatprep.mubr.msk.f32.mxu0 %vm320_vm2, %v11248_v53  ;;  %v8876_v43 = vld [vmem:[%s12477_s1 + $0x178] sm:$0xff] }
 0x7f9   :  { %10493 = vmatprep.subr.bf16.mxu0 %v10492_v48  ;;  %v10528_v44 = vpack.c.bf16 %v8876_v43, %v8875_v39 }
 0x7fe   :  { %v9717_v58 = vpop.f32.mrb[20].mxu1 }
 0x7ff   :  { %v1447_v59 = vpop.f32.mrb[21].mxu1  ;;  %9746 = vmatpush3.xpose.msk.msra.mxu1 %vm320_vm2, %v9717_v58  ;;  %9705 = vmatmul.mubr.msk.f32.vlgmr.msra.gmra.mrb[8].mxu0 %vm320_vm2, %v11250_v55 }
 0x800   :  { %10495 = vmatpush3.bf16.msra.mxu0 %v10492_v48  ;;  %9726 = vmatprep.mubr.msk.f32.mxu0 %vm35_vm0, %v11137_v49  ;;  %v8869_v48 = vld [vmem:[%s12477_s1 + $0xf0] sm:$0xff] }
 0x801   :  { %10497 = vmatprep.subr.bf16.mxu0 %v10496_v57  ;;  %9755 = vmatprep.subr.mxu1 %v11020_v3 }
 0x804   :  { %10499 = vmatpush3.bf16.msra.mxu0 %v10496_v57  ;;  %v10520_v57 = vpack.c.bf16 %v8870_v50, %v8869_v48 }
 0x805   :  { %9740 = vmatprep.subr.mxu0 %v11020_v3 }
 0x806   :  { %v9739_v53 = vpop.f32.mrb[22].mxu1 }
 0x807   :  { %9727 = vmatmul.mubr.msk.f32.vlgmr.msra.gmra.mrb[10].mxu0 %vm35_vm0, %v11155_v56  ;;  %v1607_v60 = vpop.f32.mrb[23].mxu1 }
 0x808   :  { %9742 = vmatprep.mubr.msk.f32.mxu0 %vm11021_vm1, %v11020_v3 }
 0x80d   :  { %9741 = vmatpush3.xpose.msk.msra.mxu0 %vm320_vm2, %v1447_v59 }
 0x80e   :  { %9750 = vmatprep.subr.mxu0 %v11020_v3 }
 0x8da   :  { %v9728_v55 = vpop.f32.mrb[10].mxu0 }
 0x8db   :  { %v1527_v61 = vpop.f32.mrb[11].mxu0  ;;  %9748 = vmatmul.mubr.msk.f32.vlgmr.msra.gmra.mrb[24].mxu1 %vm320_vm2, %v9728_v55 }
 0x8dc   :  { %9756 = vmatpush3.msra.mxu1 %v9739_v53  ;;  %9743 = vmatmul.mubr.msk.f32.vlgmr.msra.gmra.mrb[12].mxu0 %vm320_vm2, %v1527_v61 }
 0x8dd   :  { %9751 = vmatpush3.msra.mxu0 %v1607_v60  ;;  %9757 = vmatprep.mubr.msk.f32.mxu1 %vm11021_vm1, %v11020_v3 }
 0x8de   :  { %9752 = vmatprep.mubr.msk.f32.mxu0 %vm11021_vm1, %v11020_v3  ;;  %10509 = vmatprep.subr.bf16.mxu1 %v10508_v24 }
 0x8df   :  { %9760 = vmatprep.subr.mxu0 %v8858_v25 }
 0x9ae   :  { %v1764_v62 = vpop.f32.mrb[24].mxu1 }
 0x9af   :  { %v1769_v63 = vmul.f32 0.17677669, %v1764_v62  ;;  %v1688_v2 = vpop.f32.mrb[12].mxu0  ;;  %v9749_v4 = vpop.f32.mrb[25].mxu1 }
 0x9b0   :  { %v1768_v5 = vmul.f32 0.17677669, %v1688_v2  ;;  %v9744_v6 = vpop.f32.mrb[13].mxu0 }
 0x9b1   :  { %v1771_v7 = vsel %vm11210_vm3, %v1769_v63, -1e+30 }
 0x9b2   :  { %v1775_v8 = vsel %vm320_vm2, %v1771_v7, -inf  ;;  %v1770_v9 = vsel %vm11210_vm3, %v1768_v5, -1e+30 }
 0x9b3   :  { %1776 = vmax.xlane.f32.xlu1 %v1775_v8  ;;  %v1772_v10 = vsel %vm320_vm2, %v1770_v9, -inf }
 0x9b4   :  { %1773 = vmax.xlane.f32.xlu0 %v1772_v10 }
 0xa40   :  { %v1777_v11 = vpop.xlane.xlu1 %1776 }
 0xa41   :  { %v1779_v12 = vsub.f32 %v1771_v7, %v1777_v11  ;;  %v1774_v13 = vpop.xlane.xlu0 %1773 }
 0xa42   :  { %v1778_v14 = vsub.f32 %v1770_v9, %v1774_v13 }
 0xa43   :  { %v1782_v16 = vmul.f32 1.442695, %v1779_v12 }
 0xa44   :  { %v1780_v17 = vmul.f32 1.442695, %v1778_v14 }
 0xa45   :  { %10895 = vpow2.f32 %v1782_v16 }
 0xa46   :  { %10897 = vpow2.f32 %v1780_v17 }
 0xa4f   :  { %v10896_v18 = vpop.eup %10895 }
 0xa50   :  { %v10898_v19 = vpop.eup %10897  ;;  %v1787_v20 = vsel %vm320_vm2, %v10896_v18, 0.0 }
 0xa51   :  { %1788 = vadd.xlane.f32.xlu1 %v1787_v20  ;;  %v1784_v21 = vsel %vm320_vm2, %v10898_v19, 0.0 }
 0xa52   :  { %1785 = vadd.xlane.f32.xlu0 %v1784_v21 }
 0xade   :  { %v1789_v26 = vpop.xlane.xlu1 %1788 }
 0xadf   :  { %10899 = vrcp.f32 %v1789_v26  ;;  %v1786_v27 = vpop.xlane.xlu0 %1785 }
 0xae0   :  { %10901 = vrcp.f32 %v1786_v27  ;;  %v8885_v27 = vld [vmem:[%s12478_s2 + $0x18] sm:$0xff] }
 0xae9   :  { %v10900_v30 = vpop.eup %10899 }
 0xaea   :  { %v10902_v31 = vpop.eup %10901  ;;  %v1793_v32 = vmul.f32 %v10900_v30, %v10896_v18 }
 0xaeb   :  { %v1792_v34 = vmul.f32 %v10902_v31, %v10898_v19 }
 0xaec   :  { %9758 = vmatmul.mubr.msk.f32.vlgmr.msra.gmra.mrb[26].mxu1 %vm320_vm2, %v1793_v32  ;;  %v11443_v32 = vsub.s32 2, %v11120_v38 }
 0xaed   :  { %10511 = vmatpush3.bf16.msra.mxu1 %v10508_v24  ;;  %9753 = vmatmul.mubr.msk.f32.vlgmr.msra.gmra.mrb[14].mxu0 %vm320_vm2, %v1792_v34 }
 0xaee   :  { %9773 = vmatprep.mubr.msk.f32.mxu1 %vm35_vm0, %v11137_v49  ;;  %10513 = vmatprep.subr.bf16.mxu1 %v10512_v33 }
 0xaef   :  { %9761 = vmatpush3.msra.mxu0 %v8858_v25 }
 0xaf0   :  { %10517 = vmatprep.subr.bf16.mxu0 %v10516_v47 }
 0xaf1   :  { %10515 = vmatpush3.bf16.msra.mxu1 %v10512_v33  ;;  %v2679_v33 = vrot.slane %v11128_v41, %v11443_v32 }
 0xaf2   :  { %10525 = vmatprep.subr.bf16.mxu1 %v10524_v37 }
 0xaf4   :  { %9774 = vmatmul.mubr.msk.f32.vlgmr.msra.gmra.mrb[28].mxu1 %vm35_vm0, %v11155_v56 }
 0xaf5   :  { %10527 = vmatpush3.bf16.msra.mxu1 %v10524_v37  ;;  %9795 = vmatprep.mubr.msk.f32.mxu1 %vm35_vm0, %v11137_v49 }
 0xaf6   :  { %10529 = vmatprep.subr.bf16.mxu1 %v10528_v44 }
 0xaf9   :  { %10531 = vmatpush3.bf16.msra.mxu1 %v10528_v44 }
 0xafa   :  { %9808 = vmatprep.subr.mxu1 %v11020_v3 }
 0xafc   :  { %9796 = vmatmul.mubr.msk.f32.vlgmr.msra.gmra.mrb[30].mxu1 %vm35_vm0, %v11155_v56 }
 0xafd   :  { %9810 = vmatprep.mubr.msk.f32.mxu1 %vm11021_vm1, %v11020_v3 }
 0xbbf   :  { %v1936_v51 = vpop.f32.mrb[26].mxu1 }
 0xbc0   :  { %v1863_v52 = vpop.f32.mrb[14].mxu0  ;;  %v9759_v54 = vpop.f32.mrb[27].mxu1 }
 0xbc1   :  { %v9754_v58 = vpop.f32.mrb[15].mxu0  ;;  %9762 = vmatprep.mubr.msk.f32.mxu0 %vm320_vm2, %v1863_v52 }
 0xbc2   :  { %9763 = vmatmul.mubr.msk.f32.vlgmr.msra.gmra.mrb[8].mxu0 %vm320_vm2, %v1936_v51  ;;  %v2720_v58 = vld [vmem:[%s12479_s3] sm:$0xff] }
 0xbc3   :  { %10519 = vmatpush3.bf16.msra.mxu0 %v10516_v47  ;;  %9784 = vmatprep.mubr.msk.f32.mxu0 %vm35_vm0, %v11137_v49 }
 0xbc4   :  { %10521 = vmatprep.subr.bf16.mxu0 %v10520_v57 }
 0xbc7   :  { %v9775_v59 = vpop.f32.mrb[28].mxu1  ;;  %10523 = vmatpush3.bf16.msra.mxu0 %v10520_v57 }
 0xbc8   :  { %v2096_v53 = vpop.f32.mrb[29].mxu1  ;;  %9798 = vmatprep.subr.mxu0 %v11020_v3 }
 0xbca   :  { %9785 = vmatmul.mubr.msk.f32.vlgmr.msra.gmra.mrb[16].mxu0 %vm35_vm0, %v11155_v56 }
 0xbcb   :  { %9800 = vmatprep.mubr.msk.f32.mxu0 %vm11021_vm1, %v11020_v3 }
 0xbcf   :  { %v9797_v60 = vpop.f32.mrb[30].mxu1 }
 0xbd0   :  { %v2256_v55 = vpop.f32.mrb[31].mxu1  ;;  %9799 = vmatpush3.xpose.msk.msra.mxu0 %vm320_vm2, %v2096_v53 }
 0xbd1   :  { %9809 = vmatpush3.msra.mxu1 %v2256_v55  ;;  %9803 = vmatprep.subr.mxu0 %v11020_v3  ;;  %v2723_v55 = vld [vmem:[%s12479_s3 + $0x18] sm:$0xff] }
 0xc9d   :  { %v9786_v49 = vpop.f32.mrb[16].mxu0 }
 0xc9e   :  { %v2176_v61 = vpop.f32.mrb[17].mxu0 }
 0xc9f   :  { %9801 = vmatmul.mubr.msk.f32.vlgmr.msra.gmra.mrb[18].mxu0 %vm320_vm2, %v2176_v61  ;;  %v2814_v61 = vld [vmem:[%s12480_s4] sm:$0xff] }
 0xca0   :  { %9804 = vmatpush3.xpose.msk.msra.mxu0 %vm320_vm2, %v9775_v59  ;;  %9805 = vmatprep.mubr.msk.f32.mxu0 %vm11021_vm1, %v11020_v3  ;;  %v2721_v59 = vld [vmem:[%s12479_s3 + $0x8] sm:$0xff] }
 0xca1   :  { %9813 = vmatprep.subr.mxu0 %v11020_v3  ;;  %v10532_v53 = vpack.c.bf16 %v2721_v59, %v2720_v58  ;;  %v11550_v58 = vsub.s32 5, %v11120_v38 }
 0xca3   :  { %9806 = vmatmul.mubr.msk.f32.vlgmr.msra.gmra.mrb[20].mxu0 %vm320_vm2, %v9786_v49  ;;  %10533 = vmatprep.subr.bf16.mxu1 %v10532_v53  ;;  %v2910_v59 = vrot.slane %v11128_v41, %v11550_v58 }
 0xca4   :  { %9814 = vmatpush3.msra.mxu0 %v9797_v60  ;;  %9815 = vmatprep.mubr.msk.f32.mxu0 %vm11021_vm1, %v11020_v3  ;;  %v2722_v60 = vld [vmem:[%s12479_s3 + $0x10] sm:$0xff] }
 0xca5   :  { %9818 = vmatprep.subr.mxu0 %v8885_v27  ;;  %v10536_v49 = vpack.c.bf16 %v2723_v55, %v2722_v60 }
 0xd72   :  { %v2337_v56 = vpop.f32.mrb[18].mxu0 }
 0xd73   :  { %v2417_v62 = vmul.f32 0.17677669, %v2337_v56  ;;  %v9802_v63 = vpop.f32.mrb[19].mxu0  ;;  %v2815_v56 = vld [vmem:[%s12480_s4 + $0x8] sm:$0xff] }
 0xd74   :  { %v10540_v63 = vpack.c.bf16 %v2815_v56, %v2814_v61 }
 0xd75   :  { %v2419_v2 = vsel %vm11210_vm3, %v2417_v62, -1e+30  ;;  %v2816_v62 = vld [vmem:[%s12480_s4 + $0x10] sm:$0xff] }
 0xd76   :  { %v2413_v4 = vpop.f32.mrb[20].mxu0  ;;  %v2421_v5 = vsel %vm320_vm2, %v2419_v2, -inf }
 0xd77   :  { %v2418_v6 = vmul.f32 0.17677669, %v2413_v4  ;;  %2422 = vmax.xlane.f32.xlu0 %v2421_v5  ;;  %v9807_v7 = vpop.f32.mrb[21].mxu0  ;;  %v2818_v5 = vld [vmem:[%s12480_s4 + $0x20] sm:$0xff] }
 0xd79   :  { %v2420_v8 = vsel %vm11210_vm3, %v2418_v6, -1e+30  ;;  %v2819_v6 = vld [vmem:[%s12480_s4 + $0x28] sm:$0xff] }
 0xd7a   :  { %v2424_v9 = vsel %vm320_vm2, %v2420_v8, -inf  ;;  %v10548_v7 = vpack.c.bf16 %v2819_v6, %v2818_v5 }
 0xd7b   :  { %2425 = vmax.xlane.f32.xlu1 %v2424_v9  ;;  %v2821_v9 = vld [vmem:[%s12480_s4 + $0x38] sm:$0xff] }
 0xe04   :  { %v2423_v10 = vpop.xlane.xlu0 %2422 }
 0xe05   :  { %v2427_v11 = vsub.f32 %v2419_v2, %v2423_v10  ;;  %v2817_v2 = vld [vmem:[%s12480_s4 + $0x18] sm:$0xff] }
 0xe06   :  { %v10544_v4 = vpack.c.bf16 %v2817_v2, %v2816_v62 }
 0xe07   :  { %v2429_v12 = vmul.f32 1.442695, %v2427_v11  ;;  %v2822_v11 = vld [vmem:[%s12480_s4 + $0x40] sm:$0xff] }
 0xe08   :  { %v2426_v13 = vpop.xlane.xlu1 %2425 }
 0xe09   :  { %10903 = vpow2.f32 %v2429_v12  ;;  %v2428_v14 = vsub.f32 %v2420_v8, %v2426_v13  ;;  %v2820_v8 = vld [vmem:[%s12480_s4 + $0x30] sm:$0xff]  ;;  %v2823_v12 = vld [vmem:[%s12480_s4 + $0x48] sm:$0xff] }
 0xe0a   :  { %v10552_v10 = vpack.c.bf16 %v2821_v9, %v2820_v8  ;;  %v10556_v13 = vpack.c.bf16 %v2823_v12, %v2822_v11  ;;  %v8892_v9 = vld [vmem:[%s12477_s1 + $0x180] sm:$0xff]  ;;  %v8894_v12 = vld [vmem:[%s12477_s1 + $0x190] sm:$0xff] }
 0xe0b   :  { %v2431_v16 = vmul.f32 1.442695, %v2428_v14  ;;  %v2824_v14 = vld [vmem:[%s12480_s4 + $0x50] sm:$0xff] }
 0xe0d   :  { %10905 = vpow2.f32 %v2431_v16  ;;  %v2825_v16 = vld [vmem:[%s12480_s4 + $0x58] sm:$0xff] }
 0xe13   :  { %v10904_v17 = vpop.eup %10903 }
 0xe14   :  { %v2433_v18 = vsel %vm320_vm2, %v10904_v17, 0.0 }
 0xe15   :  { %2434 = vadd.xlane.f32.xlu0 %v2433_v18  ;;  %v2826_v18 = vld [vmem:[%s12480_s4 + $0x60] sm:$0xff] }
 0xe17   :  { %v10906_v19 = vpop.eup %10905 }
 0xe18   :  { %v2436_v20 = vsel %vm320_vm2, %v10906_v19, 0.0 }
 0xe19   :  { %2437 = vadd.xlane.f32.xlu1 %v2436_v20 }
 0xea2   :  { %v2435_v21 = vpop.xlane.xlu0 %2434 }
 0xea3   :  { %10907 = vrcp.f32 %v2435_v21 }
 0xea6   :  { %v2438_v22 = vpop.xlane.xlu1 %2437 }
 0xea7   :  { %10909 = vrcp.f32 %v2438_v22 }
 0xead   :  { %v10908_v23 = vpop.eup %10907 }
 0xeae   :  { %v2441_v24 = vmul.f32 %v10908_v23, %v10904_v17  ;;  %v10560_v17 = vpack.c.bf16 %v2825_v16, %v2824_v14  ;;  %v8898_v16 = vld [vmem:[%s12477_s1 + $0x200] sm:$0xff] }
 0xeb0   :  { %9811 = vmatmul.mubr.msk.f32.vlgmr.msra.gmra.mrb[32].mxu1 %vm320_vm2, %v2441_v24 }
 0xeb1   :  { %v10910_v25 = vpop.eup %10909  ;;  %10535 = vmatpush3.bf16.msra.mxu1 %v10532_v53 }
 0xeb2   :  { %v2442_v26 = vmul.f32 %v10910_v25, %v10906_v19  ;;  %10537 = vmatprep.subr.bf16.mxu1 %v10536_v49  ;;  %v2827_v19 = vld [vmem:[%s12480_s4 + $0x68] sm:$0xff] }
 0xeb3   :  { %v10564_v20 = vpack.c.bf16 %v2827_v19, %v2826_v18 }
 0xeb4   :  { %9816 = vmatmul.mubr.msk.f32.vlgmr.msra.gmra.mrb[22].mxu0 %vm320_vm2, %v2442_v26 }
 0xeb5   :  { %9819 = vmatpush3.msra.mxu0 %v8885_v27  ;;  %10539 = vmatpush3.bf16.msra.mxu1 %v10536_v49  ;;  %v11524_v27 = vsub.s32 3, %v11120_v38 }
 0xeb6   :  { %10541 = vmatprep.subr.bf16.mxu0 %v10540_v63 }
 0xf83   :  { %v2512_v28 = vpop.f32.mrb[32].mxu1 }
 0xf84   :  { %v9812_v29 = vpop.f32.mrb[33].mxu1  ;;  %9820 = vmatprep.mubr.msk.f32.mxu0 %vm320_vm2, %v2512_v28  ;;  %v11527_v28 = vsub.s32 4, %v11120_v38 }
 0xf85   :  { %v2711_v29 = vrot.slane %v11128_v41, %v11524_v27 }
 0xf87   :  { %v2585_v30 = vpop.f32.mrb[22].mxu0 }
 0xf88   :  { %v9817_v31 = vpop.f32.mrb[23].mxu0  ;;  %9821 = vmatmul.mubr.msk.f32.vlgmr.msra.gmra.mrb[8].mxu0 %vm320_vm2, %v2585_v30 }
 0xf89   :  { %10543 = vmatpush3.bf16.msra.mxu0 %v10540_v63 }
 0xf8a   :  { %10545 = vmatprep.subr.bf16.mxu0 %v10544_v4 }
 0xf8d   :  { %10547 = vmatpush3.bf16.msra.mxu0 %v10544_v4 }
 0xf8e   :  { %10549 = vmatprep.subr.bf16.mxu0 %v10548_v7 }
 0xf91   :  { %10551 = vmatpush3.bf16.msra.mxu0 %v10548_v7 }
 0xf92   :  { %10553 = vmatprep.subr.bf16.mxu0 %v10552_v10 }
 0xf95   :  { %10555 = vmatpush3.bf16.msra.mxu0 %v10552_v10  ;;  %v8893_v10 = vld [vmem:[%s12477_s1 + $0x188] sm:$0xff] }
 0xf96   :  { %10557 = vmatprep.subr.bf16.mxu0 %v10556_v13  ;;  %v10572_v11 = vpack.c.bf16 %v8893_v10, %v8892_v9 }
 0xf98   :  { %10573 = vmatprep.subr.bf16.mxu1 %v10572_v11 }
 0xf99   :  { %10559 = vmatpush3.bf16.msra.mxu0 %v10556_v13  ;;  %v8895_v13 = vld [vmem:[%s12477_s1 + $0x198] sm:$0xff] }
 0xf9a   :  { %10561 = vmatprep.subr.bf16.mxu0 %v10560_v17  ;;  %v10576_v14 = vpack.c.bf16 %v8895_v13, %v8894_v12 }
 0xf9d   :  { %10563 = vmatpush3.bf16.msra.mxu0 %v10560_v17  ;;  %v8899_v17 = vld [vmem:[%s12477_s1 + $0x208] sm:$0xff] }
 0xf9e   :  { %10565 = vmatprep.subr.bf16.mxu0 %v10564_v20  ;;  %v10580_v18 = vpack.c.bf16 %v8899_v17, %v8898_v16  ;;  %v8917_v17 = vld [vmem:[%s12477_s1 + $0x1a0] sm:$0xff] }
 0xfa1   :  { %10567 = vmatpush3.bf16.msra.mxu0 %v10564_v20 }
0x105b   :  { %v9822_v34 = vpop.f32.mrb[8].mxu0 }
0x105c   :  { %v2675_v35 = vadd.f32 %v9822_v34, %v11073_v1  ;;  %v2663_v36 = vpop.f32.mrb[9].mxu0 }
0x105d   :  { %v2674_v37 = vadd.f32 %v2663_v36, %v11068_v0 }
0x105e   :  { %v11449_v39 = vadd.f32 %v2679_v33, %v2675_v35  ;;  %v2717_v35 = vrot.slane %v11128_v41, %v11527_v28 }
0x105f   :  { %v11451_v43 = vadd.f32 %v2679_v33, %v2674_v37 }
0x1060   :  { %v2685_v44 = vsel %vm35_vm0, %v11449_v39, 0.0 }
0x1061   :  { %2686 = vadd.xlane.f32.xlu1 %v2685_v44  ;;  %v2682_v45 = vsel %vm35_vm0, %v11451_v43, 0.0 }
0x1062   :  { %2683 = vadd.xlane.f32.xlu0 %v2682_v45 }
0x10ee   :  { %v2687_v46 = vpop.xlane.xlu1 %2686 }
0x10ef   :  { %v2689_v47 = vmul.f32 0.03125, %v2687_v46  ;;  %v2684_v48 = vpop.xlane.xlu0 %2683  ;;  %v2828_v46 = vld [vmem:[%s12480_s4 + $0x70] sm:$0xff] }
0x10f0   :  { %v2688_v50 = vmul.f32 0.03125, %v2684_v48 }
0x10f1   :  { %v11458_v1 = vsub.f32 %v11449_v39, %v2689_v47  ;;  %v2829_v47 = vld [vmem:[%s12480_s4 + $0x78] sm:$0xff] }
0x10f2   :  { %v11461_v0 = vsub.f32 %v11451_v43, %v2688_v50  ;;  %v10568_v48 = vpack.c.bf16 %v2829_v47, %v2828_v46  ;;  %v8888_v50 = vld [vmem:[%s12481_s5] ss:$0 sm:$0xff] }
0x10f3   :  { %v2693_v51 = vmul.f32 %v11458_v1, %v11458_v1 }
0x10f4   :  { %v2692_v52 = vmul.f32 %v11461_v0, %v11461_v0  ;;  %10569 = vmatprep.subr.bf16.mxu0 %v10568_v48 }
0x10f5   :  { %v2697_v54 = vsel %vm35_vm0, %v2693_v51, 0.0  ;;  %10571 = vmatpush3.bf16.msra.mxu0 %v10568_v48  ;;  %v8904_v48 = vld [vmem:[%s12477_s1 + $0x280] sm:$0xff] }
0x10f6   :  { %2698 = vadd.xlane.f32.xlu1 %v2697_v54  ;;  %v2694_v57 = vsel %vm35_vm0, %v2692_v52, 0.0  ;;  %9912 = vmatprep.subr.mxu0 %v11020_v3 }
0x10f7   :  { %2695 = vadd.xlane.f32.xlu0 %v2694_v57 }
0x1183   :  { %v2699_v21 = vpop.xlane.xlu1 %2698 }
0x1184   :  { %v2701_v22 = vmul.f32 0.03125, %v2699_v21  ;;  %v2696_v23 = vpop.xlane.xlu0 %2695 }
0x1185   :  { %v2700_v24 = vmul.f32 0.03125, %v2696_v23 }
0x1186   :  { %v2703_v25 = vadd.f32 1e-05, %v2701_v22 }
0x1187   :  { %v2702_v26 = vadd.f32 1e-05, %v2700_v24 }
0x1188   :  { %10911 = vrsqrt.f32 %v2703_v25  ;;  %v11589_v25 = vld [vmem:[%s12482_s6 + $0x8] sm:$0x3f] }
0x1189   :  { %10913 = vrsqrt.f32 %v2702_v26  ;;  %v2944_v26 = vrot.slane %v11589_v25, %v11123_v40 }
0x1192   :  { %v10912_v30 = vpop.eup %10911 }
0x1193   :  { %v10914_v31 = vpop.eup %10913  ;;  %v2707_v33 = vmul.f32 %v10912_v30, %v11458_v1 }
0x1194   :  { %v2706_v34 = vmul.f32 %v10914_v31, %v11461_v0 }
0x1195   :  { %v2713_v36 = vmul.f32 %v2711_v29, %v2707_v33  ;;  %v2950_v33 = vrot.slane %v11589_v25, %v11131_v42 }
0x1196   :  { %v2712_v37 = vmul.f32 %v2711_v29, %v2706_v34 }
0x1197   :  { %v2719_v45 = vadd.f32 %v2717_v35, %v2713_v36 }
0x1198   :  { %v2718_v44 = vadd.f32 %v2717_v35, %v2712_v37  ;;  %v8900_v37 = vld [vmem:[%s12477_s1 + $0x210] sm:$0xff] }
0x119a   :  { %9831 = vmatprep.mubr.msk.f32.mxu1 %vm35_vm0, %v2718_v44  ;;  %v8901_v44 = vld [vmem:[%s12477_s1 + $0x218] sm:$0xff] }
0x119b   :  { %9832 = vmatmul.mubr.msk.f32.vlgmr.msra.gmra.mrb[34].mxu1 %vm35_vm0, %v2719_v45  ;;  %v10584_v47 = vpack.c.bf16 %v8901_v44, %v8900_v37  ;;  %v8930_v37 = vld [vmem:[%s12477_s1 + $0x2a8] sm:$0xff] }
0x119c   :  { %10575 = vmatpush3.bf16.msra.mxu1 %v10572_v11 }
0x119d   :  { %10577 = vmatprep.subr.bf16.mxu1 %v10576_v14 }
0x11a0   :  { %10579 = vmatpush3.bf16.msra.mxu1 %v10576_v14 }
0x11a1   :  { %10581 = vmatprep.subr.bf16.mxu1 %v10580_v18 }
0x126e   :  { %v9833_v1 = vpop.f32.mrb[34].mxu1 }
0x126f   :  { %v2809_v0 = vadd.f32 %v9833_v1, %v8888_v50  ;;  %v2803_v51 = vpop.f32.mrb[35].mxu1 }
0x1270   :  { %v2804_v52 = vadd.f32 %v8888_v50, %v2803_v51  ;;  %v8905_v50 = vld [vmem:[%s12477_s1 + $0x288] sm:$0xff]  ;;  %v8907_v51 = vld [vmem:[%s12477_s1 + $0x298] sm:$0xff] }
0x1271   :  { %v2813_v57 = vmax.f32 %v2809_v0, 0.0  ;;  %v10588_v1 = vpack.c.bf16 %v8905_v50, %v8904_v48  ;;  %v8906_v0 = vld [vmem:[%s12477_s1 + $0x290] sm:$0xff] }
0x1272   :  { %v2812_v54 = vmax.f32 %v2804_v52, 0.0  ;;  %v10592_v52 = vpack.c.bf16 %v8907_v51, %v8906_v0  ;;  %v8932_v0 = vld [vmem:[%s12477_s1 + $0x2b8] sm:$0xff] }
0x1274   :  { %9866 = vmatprep.mubr.f32.mxu0 %v2812_v54 }
0x1275   :  { %9867 = vmatmul.mubr.f32.vlgmr.msra.gmra.mrb[24].mxu0 %v2813_v57 }
0x1276   :  { %9914 = vmatprep.mubr.msk.f32.mxu0 %vm11021_vm1, %v11020_v3 }
0x1348   :  { %v9868_v53 = vpop.f32.mrb[24].mxu0 }
0x1349   :  { %v2906_v60 = vadd.f32 %v9868_v53, %v11449_v39  ;;  %v2896_v55 = vpop.f32.mrb[25].mxu0 }
0x134a   :  { %v2905_v49 = vadd.f32 %v2896_v55, %v11451_v43 }
0x134b   :  { %v11556_v61 = vadd.f32 %v2910_v59, %v2906_v60 }
0x134c   :  { %v11558_v56 = vadd.f32 %v2910_v59, %v2905_v49 }
0x134d   :  { %v2918_v62 = vsel %vm35_vm0, %v11556_v61, 0.0 }
0x134e   :  { %2919 = vadd.xlane.f32.xlu1 %v2918_v62  ;;  %v2915_v38 = vsel %vm35_vm0, %v11558_v56, 0.0 }
0x134f   :  { %2916 = vadd.xlane.f32.xlu0 %v2915_v38 }
0x13db   :  { %v2920_v63 = vpop.xlane.xlu1 %2919 }
0x13dc   :  { %v2922_v41 = vmul.f32 0.03125, %v2920_v63  ;;  %v2917_v2 = vpop.xlane.xlu0 %2916 }
0x13dd   :  { %v2921_v4 = vmul.f32 0.03125, %v2917_v2 }
0x13de   :  { %v2924_v39 = vsub.f32 %v11556_v61, %v2922_v41 }
0x13df   :  { %v2923_v43 = vsub.f32 %v11558_v56, %v2921_v4 }
0x13e0   :  { %v2926_v5 = vmul.f32 %v2924_v39, %v2924_v39 }
0x13e1   :  { %v2925_v6 = vmul.f32 %v2923_v43, %v2923_v43 }
0x13e2   :  { %v2930_v7 = vsel %vm35_vm0, %v2926_v5, 0.0 }
0x13e3   :  { %2931 = vadd.xlane.f32.xlu1 %v2930_v7  ;;  %v2927_v8 = vsel %vm35_vm0, %v2925_v6, 0.0 }
0x13e4   :  { %2928 = vadd.xlane.f32.xlu0 %v2927_v8 }
0x1470   :  { %v2932_v19 = vpop.xlane.xlu1 %2931 }
0x1471   :  { %v2934_v20 = vmul.f32 0.03125, %v2932_v19  ;;  %v2929_v21 = vpop.xlane.xlu0 %2928 }
0x1472   :  { %v2933_v22 = vmul.f32 0.03125, %v2929_v21  ;;  %v8924_v21 = vld [vmem:[%s12477_s1 + $0x228] sm:$0xff] }
0x1473   :  { %v2936_v23 = vadd.f32 1e-05, %v2934_v20  ;;  %v8923_v20 = vld [vmem:[%s12477_s1 + $0x220] sm:$0xff] }
0x1474   :  { %v2935_v24 = vadd.f32 1e-05, %v2933_v22  ;;  %v10604_v22 = vpack.c.bf16 %v8924_v21, %v8923_v20  ;;  %v8946_v20 = vld [vmem:[%s12477_s1 + $0x1c0] sm:$0xff]  ;;  %v8947_v21 = vld [vmem:[%s12477_s1 + $0x1c8] sm:$0xff] }
0x1475   :  { %10915 = vrsqrt.f32 %v2936_v23 }
0x1476   :  { %10917 = vrsqrt.f32 %v2935_v24 }
0x147f   :  { %v10916_v29 = vpop.eup %10915 }
0x1480   :  { %v10918_v30 = vpop.eup %10917  ;;  %v2940_v31 = vmul.f32 %v10916_v29, %v2924_v39  ;;  %v8920_v29 = vld [vmem:[%s12477_s1 + $0x1b8] sm:$0xff] }
0x1481   :  { %v2939_v34 = vmul.f32 %v10918_v30, %v2923_v43 }
0x1482   :  { %v2946_v35 = vmul.f32 %v2944_v26, %v2940_v31 }
0x1483   :  { %v2945_v36 = vmul.f32 %v2944_v26, %v2939_v34  ;;  %v8919_v26 = vld [vmem:[%s12477_s1 + $0x1b0] sm:$0xff] }
0x1484   :  { %v11603_v46 = vadd.f32 %v2950_v33, %v2946_v35  ;;  %v8925_v34 = vld [vmem:[%s12477_s1 + $0x230] sm:$0xff]  ;;  %v8926_v35 = vld [vmem:[%s12477_s1 + $0x238] sm:$0xff] }
0x1485   :  { %v11601_v45 = vadd.f32 %v2950_v33, %v2945_v36  ;;  %v10600_v33 = vpack.c.bf16 %v8920_v29, %v8919_v26  ;;  %v8929_v36 = vld [vmem:[%s12477_s1 + $0x2a0] sm:$0xff]  ;;  %v10608_v48 = vpack.c.bf16 %v8926_v35, %v8925_v34 }
0x1486   :  { %v10612_v50 = vpack.c.bf16 %v8930_v37, %v8929_v36  ;;  %v8958_v36 = vld [vmem:[%s12477_s1 + $0x2c0] sm:$0xff]  ;;  %v8959_v37 = vld [vmem:[%s12477_s1 + $0x2c8] sm:$0xff] }
0x1487   :  { %9877 = vmatprep.mubr.msk.f32.mxu1 %vm35_vm0, %v11601_v45 }
0x1488   :  { %9878 = vmatmul.mubr.msk.f32.vlgmr.msra.gmra.mrb[36].mxu1 %vm35_vm0, %v11603_v46 }
0x1489   :  { %10583 = vmatpush3.bf16.msra.mxu1 %v10580_v18  ;;  %9888 = vmatprep.mubr.msk.f32.mxu1 %vm35_vm0, %v11601_v45  ;;  %v8918_v18 = vld [vmem:[%s12477_s1 + $0x1a8] sm:$0xff] }
0x148a   :  { %10585 = vmatprep.subr.bf16.mxu1 %v10584_v47  ;;  %v10596_v19 = vpack.c.bf16 %v8918_v18, %v8917_v17 }
0x148d   :  { %10587 = vmatpush3.bf16.msra.mxu1 %v10584_v47 }
0x148e   :  { %10589 = vmatprep.subr.bf16.mxu1 %v10588_v1 }
0x1490   :  { %9889 = vmatmul.mubr.msk.f32.vlgmr.msra.gmra.mrb[38].mxu1 %vm35_vm0, %v11603_v46 }
0x1491   :  { %10591 = vmatpush3.bf16.msra.mxu1 %v10588_v1  ;;  %9899 = vmatprep.mubr.msk.f32.mxu1 %vm35_vm0, %v11601_v45  ;;  %v8931_v1 = vld [vmem:[%s12477_s1 + $0x2b0] sm:$0xff] }
0x1492   :  { %10593 = vmatprep.subr.bf16.mxu1 %v10592_v52  ;;  %v10616_v51 = vpack.c.bf16 %v8932_v0, %v8931_v1  ;;  %v8941_v1 = vld [vmem:[%s12478_s2 + $0x28] sm:$0xff]  ;;  %v8916_v0 = vld [vmem:[%s12478_s2 + $0x20] sm:$0xff] }
0x1495   :  { %10595 = vmatpush3.bf16.msra.mxu1 %v10592_v52 }
0x1496   :  { %9902 = vmatprep.subr.mxu1 %v11020_v3 }
0x1498   :  { %9900 = vmatmul.mubr.msk.f32.vlgmr.msra.gmra.mrb[40].mxu1 %vm35_vm0, %v11603_v46 }
0x1499   :  { %9904 = vmatprep.mubr.msk.f32.mxu1 %vm11021_vm1, %v11020_v3 }
0x155b   :  { %v9879_v54 = vpop.f32.mrb[36].mxu1 }
0x155c   :  { %v3030_v57 = vpop.f32.mrb[37].mxu1 }
0x155d   :  { %9903 = vmatpush3.xpose.msk.msra.mxu1 %vm320_vm2, %v3030_v57 }
0x155e   :  { %9907 = vmatprep.subr.mxu1 %v11020_v3 }
0x1563   :  { %v9890_v59 = vpop.f32.mrb[38].mxu1 }
0x1564   :  { %v3110_v53 = vpop.f32.mrb[39].mxu1 }
0x1565   :  { %9905 = vmatmul.mubr.msk.f32.vlgmr.msra.gmra.mrb[42].mxu1 %vm320_vm2, %v3110_v53 }
0x1566   :  { %9908 = vmatpush3.xpose.msk.msra.mxu1 %vm320_vm2, %v9879_v54  ;;  %9909 = vmatprep.mubr.msk.f32.mxu1 %vm11021_vm1, %v11020_v3 }
0x1567   :  { %9917 = vmatprep.subr.mxu1 %v11020_v3 }
0x1569   :  { %9910 = vmatmul.mubr.msk.f32.vlgmr.msra.gmra.mrb[44].mxu1 %vm320_vm2, %v9890_v59 }
0x156a   :  { %9919 = vmatprep.mubr.msk.f32.mxu1 %vm11021_vm1, %v11020_v3 }
0x156b   :  { %v9901_v60 = vpop.f32.mrb[40].mxu1 }
0x156c   :  { %v3190_v55 = vpop.f32.mrb[41].mxu1  ;;  %9918 = vmatpush3.msra.mxu1 %v9901_v60 }
0x156d   :  { %9913 = vmatpush3.msra.mxu0 %v3190_v55  ;;  %10605 = vmatprep.subr.bf16.mxu1 %v10604_v22 }
0x156e   :  { %10597 = vmatprep.subr.bf16.mxu0 %v10596_v19 }
0x1638   :  { %v3271_v49 = vpop.f32.mrb[42].mxu1 }
0x1639   :  { %v3351_v62 = vmul.f32 0.17677669, %v3271_v49  ;;  %v9906_v38 = vpop.f32.mrb[43].mxu1 }
0x163b   :  { %v3353_v63 = vsel %vm11210_vm3, %v3351_v62, -1e+30 }
0x163c   :  { %v3347_v41 = vpop.f32.mrb[44].mxu1  ;;  %v3355_v2 = vsel %vm320_vm2, %v3353_v63, -inf }
0x163d   :  { %v3352_v4 = vmul.f32 0.17677669, %v3347_v41  ;;  %3356 = vmax.xlane.f32.xlu0 %v3355_v2  ;;  %v9911_v39 = vpop.f32.mrb[45].mxu1 }
0x163f   :  { %v3354_v43 = vsel %vm11210_vm3, %v3352_v4, -1e+30 }
0x1640   :  { %v3358_v5 = vsel %vm320_vm2, %v3354_v43, -inf }
0x1641   :  { %3359 = vmax.xlane.f32.xlu1 %v3358_v5 }
0x16ca   :  { %v3357_v6 = vpop.xlane.xlu0 %3356 }
0x16cb   :  { %v3361_v7 = vsub.f32 %v3353_v63, %v3357_v6 }
0x16cd   :  { %v3363_v8 = vmul.f32 1.442695, %v3361_v7 }
0x16ce   :  { %v3360_v9 = vpop.xlane.xlu1 %3359 }
0x16cf   :  { %10919 = vpow2.f32 %v3363_v8  ;;  %v3362_v10 = vsub.f32 %v3354_v43, %v3360_v9 }
0x16d1   :  { %v3365_v11 = vmul.f32 1.442695, %v3362_v10 }
0x16d3   :  { %10921 = vpow2.f32 %v3365_v11 }
0x16d9   :  { %v10920_v12 = vpop.eup %10919 }
0x16da   :  { %v3367_v13 = vsel %vm320_vm2, %v10920_v12, 0.0 }
0x16db   :  { %3368 = vadd.xlane.f32.xlu0 %v3367_v13 }
0x16dd   :  { %v10922_v14 = vpop.eup %10921 }
0x16de   :  { %v3370_v16 = vsel %vm320_vm2, %v10922_v14, 0.0 }
0x16df   :  { %3371 = vadd.xlane.f32.xlu1 %v3370_v16 }
0x1768   :  { %v3369_v23 = vpop.xlane.xlu0 %3368 }
0x1769   :  { %10923 = vrcp.f32 %v3369_v23 }
0x176c   :  { %v3372_v24 = vpop.xlane.xlu1 %3371 }
0x176d   :  { %10925 = vrcp.f32 %v3372_v24 }
0x1773   :  { %v10924_v30 = vpop.eup %10923 }
0x1774   :  { %v3375_v31 = vmul.f32 %v10924_v30, %v10920_v12  ;;  %v8948_v30 = vld [vmem:[%s12477_s1 + $0x1d0] sm:$0xff] }
0x1776   :  { %9915 = vmatmul.mubr.msk.f32.vlgmr.msra.gmra.mrb[26].mxu0 %vm320_vm2, %v3375_v31  ;;  %v8949_v31 = vld [vmem:[%s12477_s1 + $0x1d8] sm:$0xff] }
0x1777   :  { %v10926_v44 = vpop.eup %10925  ;;  %10599 = vmatpush3.bf16.msra.mxu0 %v10596_v19  ;;  %9930 = vmatprep.mubr.msk.f32.mxu0 %vm35_vm0, %v11601_v45  ;;  %v10624_v35 = vpack.c.bf16 %v8949_v31, %v8948_v30  ;;  %v8970_v31 = vld [vmem:[%s12478_s2 + $0x30] sm:$0xff] }
0x1778   :  { %v3376_v47 = vmul.f32 %v10926_v44, %v10922_v14  ;;  %10601 = vmatprep.subr.bf16.mxu0 %v10600_v33  ;;  %v10636_v44 = vpack.c.bf16 %v8959_v37, %v8958_v36  ;;  %v8976_v36 = vld [vmem:[%s12477_s1 + $0x1f8] sm:$0xff] }
0x177a   :  { %9920 = vmatmul.mubr.msk.f32.vlgmr.msra.gmra.mrb[46].mxu1 %vm320_vm2, %v3376_v47  ;;  %v8960_v47 = vld [vmem:[%s12477_s1 + $0x2d0] sm:$0xff] }
0x177b   :  { %10603 = vmatpush3.bf16.msra.mxu0 %v10600_v33  ;;  %10607 = vmatpush3.bf16.msra.mxu1 %v10604_v22  ;;  %v10620_v22 = vpack.c.bf16 %v8947_v21, %v8946_v20 }
0x177c   :  { %9941 = vmatprep.mubr.msk.f32.mxu1 %vm35_vm0, %v11601_v45  ;;  %10609 = vmatprep.subr.bf16.mxu1 %v10608_v48 }
0x177d   :  { %10613 = vmatprep.subr.bf16.mxu0 %v10612_v50 }
0x177e   :  { %9931 = vmatmul.mubr.msk.f32.vlgmr.msra.gmra.mrb[28].mxu0 %vm35_vm0, %v11603_v46 }
0x177f   :  { %10611 = vmatpush3.bf16.msra.mxu1 %v10608_v48  ;;  %10615 = vmatpush3.bf16.msra.mxu0 %v10612_v50  ;;  %v8961_v48 = vld [vmem:[%s12477_s1 + $0x2d8] sm:$0xff] }
0x1780   :  { %9952 = vmatprep.mubr.msk.f32.mxu0 %vm35_vm0, %v11601_v45  ;;  %10617 = vmatprep.subr.bf16.mxu0 %v10616_v51  ;;  %v10640_v50 = vpack.c.bf16 %v8961_v48, %v8960_v47 }
0x1781   :  { %9955 = vmatprep.subr.mxu1 %v11020_v3 }
0x1782   :  { %9942 = vmatmul.mubr.msk.f32.vlgmr.msra.gmra.mrb[48].mxu1 %vm35_vm0, %v11603_v46 }
0x1783   :  { %10619 = vmatpush3.bf16.msra.mxu0 %v10616_v51  ;;  %9957 = vmatprep.mubr.msk.f32.mxu1 %vm11021_vm1, %v11020_v3 }
0x1784   :  { %9965 = vmatprep.subr.mxu0 %v11020_v3 }
0x1786   :  { %9953 = vmatmul.mubr.msk.f32.vlgmr.msra.gmra.mrb[30].mxu0 %vm35_vm0, %v11603_v46 }
0x1787   :  { %9967 = vmatprep.mubr.msk.f32.mxu0 %vm11021_vm1, %v11020_v3 }
0x1849   :  { %v11706_v52 = vpop.f32.mrb[26].mxu0 }
0x184a   :  { %v9916_v54 = vpop.f32.mrb[27].mxu0 }
0x184b   :  { %v8952_v54 = vld [vmem:[%s12477_s1 + $0x240] sm:$0xff] }
0x184d   :  { %v11708_v57 = vpop.f32.mrb[46].mxu1 }
0x184e   :  { %v9921_v59 = vpop.f32.mrb[47].mxu1 }
0x184f   :  { %v8953_v59 = vld [vmem:[%s12477_s1 + $0x248] sm:$0xff] }
0x1851   :  { %v9932_v53 = vpop.f32.mrb[28].mxu0 }
0x1852   :  { %v3596_v60 = vpop.f32.mrb[29].mxu0 }
0x1853   :  { %9956 = vmatpush3.xpose.msk.msra.mxu1 %vm320_vm2, %v3596_v60  ;;  %v10628_v60 = vpack.c.bf16 %v8953_v59, %v8952_v54  ;;  %v8987_v54 = vld [vmem:[%s12477_s1 + $0x2f0] sm:$0xff]  ;;  %v8988_v59 = vld [vmem:[%s12477_s1 + $0x2f8] sm:$0xff] }
0x1854   :  { %9960 = vmatprep.subr.mxu1 %v11020_v3 }
0x1855   :  { %v9943_v55 = vpop.f32.mrb[48].mxu1 }
0x1856   :  { %v3676_v49 = vpop.f32.mrb[49].mxu1 }
0x1857   :  { %9958 = vmatmul.mubr.msk.f32.vlgmr.msra.gmra.mrb[50].mxu1 %vm320_vm2, %v3676_v49 }
0x1858   :  { %9961 = vmatpush3.xpose.msk.msra.mxu1 %vm320_vm2, %v9932_v53  ;;  %9962 = vmatprep.mubr.msk.f32.mxu1 %vm11021_vm1, %v11020_v3 }
0x1859   :  { %v9954_v62 = vpop.f32.mrb[30].mxu0  ;;  %9970 = vmatprep.subr.mxu1 %v11020_v3 }
0x185a   :  { %v3756_v38 = vpop.f32.mrb[31].mxu0 }
0x185b   :  { %9963 = vmatmul.mubr.msk.f32.vlgmr.msra.gmra.mrb[52].mxu1 %vm320_vm2, %v9943_v55  ;;  %9966 = vmatpush3.msra.mxu0 %v3756_v38  ;;  %v8955_v38 = vld [vmem:[%s12477_s1 + $0x258] sm:$0xff] }
0x185c   :  { %9971 = vmatpush3.msra.mxu1 %v9954_v62  ;;  %9972 = vmatprep.mubr.msk.f32.mxu1 %vm11021_vm1, %v11020_v3  ;;  %v8954_v62 = vld [vmem:[%s12477_s1 + $0x250] sm:$0xff] }
0x185d   :  { %10621 = vmatprep.subr.bf16.mxu1 %v10620_v22  ;;  %9975 = vmatprep.subr.mxu0 %v8941_v1 }
0x192a   :  { %v3837_v63 = vpop.f32.mrb[50].mxu1 }
0x192b   :  { %v3917_v41 = vmul.f32 0.17677669, %v3837_v63  ;;  %v9959_v2 = vpop.f32.mrb[51].mxu1  ;;  %v10632_v63 = vpack.c.bf16 %v8955_v38, %v8954_v62  ;;  %v8981_v62 = vld [vmem:[%s12477_s1 + $0x270] sm:$0xff]  ;;  %v8982_v38 = vld [vmem:[%s12477_s1 + $0x278] sm:$0xff] }
0x192d   :  { %v3919_v4 = vsel %vm11210_vm3, %v3917_v41, -1e+30 }
0x192e   :  { %v3913_v39 = vpop.f32.mrb[52].mxu1  ;;  %v3921_v43 = vsel %vm320_vm2, %v3919_v4, -inf }
0x192f   :  { %v3918_v5 = vmul.f32 0.17677669, %v3913_v39  ;;  %3922 = vmax.xlane.f32.xlu0 %v3921_v43  ;;  %v9964_v6 = vpop.f32.mrb[53].mxu1 }
0x1931   :  { %v3920_v7 = vsel %vm11210_vm3, %v3918_v5, -1e+30 }
0x1932   :  { %v3924_v8 = vsel %vm320_vm2, %v3920_v7, -inf }
0x1933   :  { %3925 = vmax.xlane.f32.xlu1 %v3924_v8 }
0x19bc   :  { %v3923_v9 = vpop.xlane.xlu0 %3922 }
0x19bd   :  { %v3927_v10 = vsub.f32 %v3919_v4, %v3923_v9 }
0x19bf   :  { %v3929_v11 = vmul.f32 1.442695, %v3927_v10 }
0x19c0   :  { %v3926_v12 = vpop.xlane.xlu1 %3925 }
0x19c1   :  { %10927 = vpow2.f32 %v3929_v11  ;;  %v3928_v13 = vsub.f32 %v3920_v7, %v3926_v12 }
0x19c3   :  { %v3931_v14 = vmul.f32 1.442695, %v3928_v13 }
0x19c5   :  { %10929 = vpow2.f32 %v3931_v14 }
0x19cb   :  { %v10928_v16 = vpop.eup %10927 }
0x19cc   :  { %v3933_v17 = vsel %vm320_vm2, %v10928_v16, 0.0 }
0x19cd   :  { %3934 = vadd.xlane.f32.xlu0 %v3933_v17 }
0x19cf   :  { %v10930_v18 = vpop.eup %10929 }
0x19d0   :  { %v3936_v19 = vsel %vm320_vm2, %v10930_v18, 0.0 }
0x19d1   :  { %3937 = vadd.xlane.f32.xlu1 %v3936_v19 }
0x1a5a   :  { %v3935_v23 = vpop.xlane.xlu0 %3934 }
0x1a5b   :  { %10931 = vrcp.f32 %v3935_v23 }
0x1a5e   :  { %v3938_v24 = vpop.xlane.xlu1 %3937 }
0x1a5f   :  { %10933 = vrcp.f32 %v3938_v24 }
0x1a65   :  { %v10932_v26 = vpop.eup %10931 }
0x1a66   :  { %v3941_v29 = vmul.f32 %v10932_v26, %v10928_v16  ;;  %v8973_v26 = vld [vmem:[%s12477_s1 + $0x1e0] sm:$0xff] }
0x1a68   :  { %9968 = vmatmul.mubr.msk.f32.vlgmr.msra.gmra.mrb[32].mxu0 %vm320_vm2, %v3941_v29  ;;  %v8974_v29 = vld [vmem:[%s12477_s1 + $0x1e8] sm:$0xff] }
0x1a69   :  { %v10934_v33 = vpop.eup %10933  ;;  %9976 = vmatpush3.msra.mxu0 %v8941_v1  ;;  %v10644_v30 = vpack.c.bf16 %v8974_v29, %v8973_v26  ;;  %v8985_v1 = vld [vmem:[%s12477_s1 + $0x2e0] sm:$0xff] }
0x1a6a   :  { %v3942_v34 = vmul.f32 %v10934_v33, %v10930_v18  ;;  %9980 = vmatprep.subr.mxu0 %v8916_v0 }
0x1a6c   :  { %9973 = vmatmul.mubr.msk.f32.vlgmr.msra.gmra.mrb[54].mxu1 %vm320_vm2, %v3942_v34 }
0x1a6d   :  { %10623 = vmatpush3.bf16.msra.mxu1 %v10620_v22  ;;  %9993 = vmatprep.mubr.msk.f32.mxu1 %vm35_vm0, %v11601_v45 }
0x1a6e   :  { %10625 = vmatprep.subr.bf16.mxu1 %v10624_v35 }
0x1a71   :  { %10627 = vmatpush3.bf16.msra.mxu1 %v10624_v35  ;;  %v8975_v35 = vld [vmem:[%s12477_s1 + $0x1f0] sm:$0xff] }
0x1a72   :  { %10637 = vmatprep.subr.bf16.mxu1 %v10636_v44  ;;  %v10648_v48 = vpack.c.bf16 %v8976_v36, %v8975_v35 }
0x1a74   :  { %9994 = vmatmul.mubr.msk.f32.vlgmr.msra.gmra.mrb[56].mxu1 %vm35_vm0, %v11603_v46 }
0x1a75   :  { %10639 = vmatpush3.bf16.msra.mxu1 %v10636_v44  ;;  %10015 = vmatprep.mubr.msk.f32.mxu1 %vm35_vm0, %v11601_v45 }
0x1a76   :  { %10641 = vmatprep.subr.bf16.mxu1 %v10640_v50 }
0x1a79   :  { %10643 = vmatpush3.bf16.msra.mxu1 %v10640_v50 }
0x1a7a   :  { %10023 = vmatprep.subr.mxu1 %v11020_v3 }
0x1a7c   :  { %10016 = vmatmul.mubr.msk.f32.vlgmr.msra.gmra.mrb[58].mxu1 %vm35_vm0, %v11603_v46 }
0x1a7d   :  { %10025 = vmatprep.mubr.msk.f32.mxu1 %vm11021_vm1, %v11020_v3 }
0x1b3b   :  { %v4012_v51 = vpop.f32.mrb[32].mxu0 }
0x1b3c   :  { %v9969_v53 = vpop.f32.mrb[33].mxu0  ;;  %9977 = vmatprep.mubr.msk.f32.mxu0 %vm320_vm2, %v4012_v51 }
0x1b3d   :  { %v10664_v53 = vpack.c.bf16 %v8988_v59, %v8987_v54 }
0x1b3f   :  { %v4085_v55 = vpop.f32.mrb[54].mxu1 }
0x1b40   :  { %v9974_v49 = vpop.f32.mrb[55].mxu1  ;;  %9978 = vmatmul.mubr.msk.f32.vlgmr.msra.gmra.mrb[34].mxu0 %vm320_vm2, %v4085_v55  ;;  %v8980_v55 = vld [vmem:[%s12477_s1 + $0x268] sm:$0xff] }
0x1b41   :  { %9981 = vmatpush3.msra.mxu0 %v8916_v0  ;;  %9982 = vmatprep.mubr.msk.f32.mxu0 %vm320_vm2, %v11706_v52  ;;  %v8986_v0 = vld [vmem:[%s12477_s1 + $0x2e8] sm:$0xff] }
0x1b42   :  { %10629 = vmatprep.subr.bf16.mxu0 %v10628_v60  ;;  %v10660_v51 = vpack.c.bf16 %v8986_v0, %v8985_v1  ;;  %v5556_v1 = vrot.slane %v11589_v25, %v11443_v32 }
0x1b47   :  { %v9995_v41 = vpop.f32.mrb[56].mxu1 }
0x1b48   :  { %v4324_v2 = vpop.f32.mrb[57].mxu1  ;;  %10024 = vmatpush3.xpose.msk.msra.mxu1 %vm320_vm2, %v9995_v41  ;;  %9983 = vmatmul.mubr.msk.f32.vlgmr.msra.gmra.mrb[34].mxu0 %vm320_vm2, %v11708_v57 }
0x1b49   :  { %10631 = vmatpush3.bf16.msra.mxu0 %v10628_v60  ;;  %10004 = vmatprep.mubr.msk.f32.mxu0 %vm35_vm0, %v11601_v45  ;;  %v8979_v60 = vld [vmem:[%s12477_s1 + $0x260] sm:$0xff] }
0x1b4a   :  { %10633 = vmatprep.subr.bf16.mxu0 %v10632_v63  ;;  %10033 = vmatprep.subr.mxu1 %v11020_v3  ;;  %v10652_v49 = vpack.c.bf16 %v8980_v55, %v8979_v60 }
0x1b4d   :  { %10635 = vmatpush3.bf16.msra.mxu0 %v10632_v63 }
0x1b4e   :  { %10018 = vmatprep.subr.mxu0 %v11020_v3 }
0x1b4f   :  { %v10017_v52 = vpop.f32.mrb[58].mxu1 }
0x1b50   :  { %10005 = vmatmul.mubr.msk.f32.vlgmr.msra.gmra.mrb[36].mxu0 %vm35_vm0, %v11603_v46  ;;  %v4484_v4 = vpop.f32.mrb[59].mxu1 }
0x1b51   :  { %10020 = vmatprep.mubr.msk.f32.mxu0 %vm11021_vm1, %v11020_v3 }
0x1b56   :  { %10019 = vmatpush3.xpose.msk.msra.mxu0 %vm320_vm2, %v4324_v2 }
0x1b57   :  { %10028 = vmatprep.subr.mxu0 %v11020_v3 }
0x1c23   :  { %v10006_v57 = vpop.f32.mrb[36].mxu0 }
0x1c24   :  { %v4404_v39 = vpop.f32.mrb[37].mxu0  ;;  %10026 = vmatmul.mubr.msk.f32.vlgmr.msra.gmra.mrb[60].mxu1 %vm320_vm2, %v10006_v57 }
0x1c25   :  { %10034 = vmatpush3.msra.mxu1 %v10017_v52  ;;  %10021 = vmatmul.mubr.msk.f32.vlgmr.msra.gmra.mrb[38].mxu0 %vm320_vm2, %v4404_v39  ;;  %v10656_v52 = vpack.c.bf16 %v8982_v38, %v8981_v62 }
0x1c26   :  { %10029 = vmatpush3.msra.mxu0 %v4484_v4  ;;  %10035 = vmatprep.mubr.msk.f32.mxu1 %vm11021_vm1, %v11020_v3 }
0x1c27   :  { %10030 = vmatprep.mubr.msk.f32.mxu0 %vm11021_vm1, %v11020_v3  ;;  %10645 = vmatprep.subr.bf16.mxu1 %v10644_v30 }
0x1c28   :  { %10038 = vmatprep.subr.mxu0 %v8970_v31 }
0x1cf7   :  { %v4641_v43 = vpop.f32.mrb[60].mxu1 }
0x1cf8   :  { %v4646_v5 = vmul.f32 0.17677669, %v4641_v43  ;;  %v4565_v6 = vpop.f32.mrb[38].mxu0  ;;  %v10027_v7 = vpop.f32.mrb[61].mxu1 }
0x1cf9   :  { %v4645_v8 = vmul.f32 0.17677669, %v4565_v6  ;;  %v10022_v9 = vpop.f32.mrb[39].mxu0 }
0x1cfa   :  { %v4648_v10 = vsel %vm11210_vm3, %v4646_v5, -1e+30 }
0x1cfb   :  { %v4652_v11 = vsel %vm320_vm2, %v4648_v10, -inf  ;;  %v4647_v12 = vsel %vm11210_vm3, %v4645_v8, -1e+30 }
0x1cfc   :  { %4653 = vmax.xlane.f32.xlu1 %v4652_v11  ;;  %v4649_v13 = vsel %vm320_vm2, %v4647_v12, -inf }
0x1cfd   :  { %4650 = vmax.xlane.f32.xlu0 %v4649_v13 }
0x1d89   :  { %v4654_v14 = vpop.xlane.xlu1 %4653 }
0x1d8a   :  { %v4656_v16 = vsub.f32 %v4648_v10, %v4654_v14  ;;  %v4651_v17 = vpop.xlane.xlu0 %4650 }
0x1d8b   :  { %v4655_v18 = vsub.f32 %v4647_v12, %v4651_v17 }
0x1d8c   :  { %v4659_v19 = vmul.f32 1.442695, %v4656_v16 }
0x1d8d   :  { %v4657_v20 = vmul.f32 1.442695, %v4655_v18 }
0x1d8e   :  { %10935 = vpow2.f32 %v4659_v19 }
0x1d8f   :  { %10937 = vpow2.f32 %v4657_v20 }
0x1d98   :  { %v10936_v21 = vpop.eup %10935 }
0x1d99   :  { %v10938_v22 = vpop.eup %10937  ;;  %v4664_v23 = vsel %vm320_vm2, %v10936_v21, 0.0 }
0x1d9a   :  { %4665 = vadd.xlane.f32.xlu1 %v4664_v23  ;;  %v4661_v24 = vsel %vm320_vm2, %v10938_v22, 0.0 }
0x1d9b   :  { %4662 = vadd.xlane.f32.xlu0 %v4661_v24 }
0x1e27   :  { %v4666_v33 = vpop.xlane.xlu1 %4665 }
0x1e28   :  { %10939 = vrcp.f32 %v4666_v33  ;;  %v4663_v34 = vpop.xlane.xlu0 %4662 }
0x1e29   :  { %10941 = vrcp.f32 %v4663_v34 }
0x1e32   :  { %v10940_v37 = vpop.eup %10939 }
0x1e33   :  { %v10942_v44 = vpop.eup %10941  ;;  %v4670_v47 = vmul.f32 %v10940_v37, %v10936_v21  ;;  %v8997_v37 = vld [vmem:[%s12478_s2 + $0x38] sm:$0xff] }
0x1e34   :  { %v4669_v50 = vmul.f32 %v10942_v44, %v10938_v22 }
0x1e35   :  { %10036 = vmatmul.mubr.msk.f32.vlgmr.msra.gmra.mrb[62].mxu1 %vm320_vm2, %v4670_v47 }
0x1e36   :  { %10647 = vmatpush3.bf16.msra.mxu1 %v10644_v30  ;;  %10031 = vmatmul.mubr.msk.f32.vlgmr.msra.gmra.mrb[40].mxu0 %vm320_vm2, %v4669_v50 }
0x1e37   :  { %10051 = vmatprep.mubr.msk.f32.mxu1 %vm35_vm0, %v11601_v45  ;;  %10649 = vmatprep.subr.bf16.mxu1 %v10648_v48 }
0x1e38   :  { %10039 = vmatpush3.msra.mxu0 %v8970_v31 }
0x1e39   :  { %10653 = vmatprep.subr.bf16.mxu0 %v10652_v49 }
0x1e3a   :  { %10651 = vmatpush3.bf16.msra.mxu1 %v10648_v48 }
0x1e3b   :  { %10661 = vmatprep.subr.bf16.mxu1 %v10660_v51 }
0x1e3d   :  { %10052 = vmatmul.mubr.msk.f32.vlgmr.msra.gmra.mrb[64].mxu1 %vm35_vm0, %v11603_v46 }
0x1e3e   :  { %10663 = vmatpush3.bf16.msra.mxu1 %v10660_v51  ;;  %10073 = vmatprep.mubr.msk.f32.mxu1 %vm35_vm0, %v11601_v45 }
0x1e3f   :  { %10665 = vmatprep.subr.bf16.mxu1 %v10664_v53 }
0x1e42   :  { %10667 = vmatpush3.bf16.msra.mxu1 %v10664_v53 }
0x1e43   :  { %10086 = vmatprep.subr.mxu1 %v11020_v3 }
0x1e45   :  { %10074 = vmatmul.mubr.msk.f32.vlgmr.msra.gmra.mrb[66].mxu1 %vm35_vm0, %v11603_v46 }
0x1e46   :  { %10088 = vmatprep.mubr.msk.f32.mxu1 %vm11021_vm1, %v11020_v3 }
0x1f08   :  { %v4813_v63 = vpop.f32.mrb[62].mxu1 }
0x1f09   :  { %v4740_v41 = vpop.f32.mrb[40].mxu0  ;;  %v10037_v2 = vpop.f32.mrb[63].mxu1 }
0x1f0a   :  { %v10032_v4 = vpop.f32.mrb[41].mxu0  ;;  %10040 = vmatprep.mubr.msk.f32.mxu0 %vm320_vm2, %v4740_v41 }
0x1f0b   :  { %10041 = vmatmul.mubr.msk.f32.vlgmr.msra.gmra.mrb[34].mxu0 %vm320_vm2, %v4813_v63 }
0x1f0c   :  { %10655 = vmatpush3.bf16.msra.mxu0 %v10652_v49  ;;  %10062 = vmatprep.mubr.msk.f32.mxu0 %vm35_vm0, %v11601_v45 }
0x1f0d   :  { %10657 = vmatprep.subr.bf16.mxu0 %v10656_v52 }
0x1f10   :  { %v10053_v57 = vpop.f32.mrb[64].mxu1  ;;  %10659 = vmatpush3.bf16.msra.mxu0 %v10656_v52 }
0x1f11   :  { %v4973_v39 = vpop.f32.mrb[65].mxu1  ;;  %10076 = vmatprep.subr.mxu0 %v11020_v3 }
0x1f13   :  { %10063 = vmatmul.mubr.msk.f32.vlgmr.msra.gmra.mrb[42].mxu0 %vm35_vm0, %v11603_v46 }
0x1f14   :  { %10078 = vmatprep.mubr.msk.f32.mxu0 %vm11021_vm1, %v11020_v3 }
0x1f18   :  { %v10075_v43 = vpop.f32.mrb[66].mxu1 }
0x1f19   :  { %v5133_v5 = vpop.f32.mrb[67].mxu1  ;;  %10077 = vmatpush3.xpose.msk.msra.mxu0 %vm320_vm2, %v4973_v39  ;;  %v9000_v39 = vld [vmem:[%s12479_s3 + $0x20] sm:$0xff] }
0x1f1a   :  { %10087 = vmatpush3.msra.mxu1 %v5133_v5  ;;  %10081 = vmatprep.subr.mxu0 %v11020_v3 }
0x1fe6   :  { %v10064_v45 = vpop.f32.mrb[42].mxu0 }
0x1fe7   :  { %v5053_v6 = vpop.f32.mrb[43].mxu0 }
0x1fe8   :  { %10079 = vmatmul.mubr.msk.f32.vlgmr.msra.gmra.mrb[44].mxu0 %vm320_vm2, %v5053_v6  ;;  %v9003_v6 = vld [vmem:[%s12479_s3 + $0x38] sm:$0xff] }
0x1fe9   :  { %10082 = vmatpush3.xpose.msk.msra.mxu0 %vm320_vm2, %v10053_v57  ;;  %10083 = vmatprep.mubr.msk.f32.mxu0 %vm11021_vm1, %v11020_v3 }
0x1fea   :  { %10091 = vmatprep.subr.mxu0 %v11020_v3 }
0x1fec   :  { %10084 = vmatmul.mubr.msk.f32.vlgmr.msra.gmra.mrb[46].mxu0 %vm320_vm2, %v10064_v45  ;;  %v9002_v45 = vld [vmem:[%s12479_s3 + $0x30] sm:$0xff] }
0x1fed   :  { %10092 = vmatpush3.msra.mxu0 %v10075_v43  ;;  %10093 = vmatprep.mubr.msk.f32.mxu0 %vm11021_vm1, %v11020_v3  ;;  %v9001_v43 = vld [vmem:[%s12479_s3 + $0x28] sm:$0xff] }
0x1fee   :  { %10096 = vmatprep.subr.mxu0 %v8997_v37  ;;  %v10668_v5 = vpack.c.bf16 %v9001_v43, %v9000_v39  ;;  %v5790_v39 = vrot.slane %v11589_v25, %v11550_v58 }
0x1ff0   :  { %10669 = vmatprep.subr.bf16.mxu1 %v10668_v5 }
0x20bb   :  { %v5214_v46 = vpop.f32.mrb[44].mxu0 }
0x20bc   :  { %v5294_v7 = vmul.f32 0.17677669, %v5214_v46  ;;  %v10080_v8 = vpop.f32.mrb[45].mxu0  ;;  %v10672_v46 = vpack.c.bf16 %v9003_v6, %v9002_v45 }
0x20bd   :  { %v9009_v8 = vld [vmem:[%s12480_s4 + $0x88] sm:$0xff] }
0x20be   :  { %v5296_v9 = vsel %vm11210_vm3, %v5294_v7, -1e+30  ;;  %v9008_v7 = vld [vmem:[%s12480_s4 + $0x80] sm:$0xff] }
0x20bf   :  { %v5290_v10 = vpop.f32.mrb[46].mxu0  ;;  %v5298_v11 = vsel %vm320_vm2, %v5296_v9, -inf }
0x20c0   :  { %v5295_v12 = vmul.f32 0.17677669, %v5290_v10  ;;  %5299 = vmax.xlane.f32.xlu0 %v5298_v11  ;;  %v10085_v13 = vpop.f32.mrb[47].mxu0  ;;  %v10676_v10 = vpack.c.bf16 %v9009_v8, %v9008_v7  ;;  %v9011_v11 = vld [vmem:[%s12480_s4 + $0x98] sm:$0xff] }
0x20c1   :  { %v9012_v13 = vld [vmem:[%s12480_s4 + $0xa0] sm:$0xff] }
0x20c2   :  { %v5297_v14 = vsel %vm11210_vm3, %v5295_v12, -1e+30 }
0x20c3   :  { %v5301_v16 = vsel %vm320_vm2, %v5297_v14, -inf }
0x20c4   :  { %5302 = vmax.xlane.f32.xlu1 %v5301_v16 }
0x214d   :  { %v5300_v17 = vpop.xlane.xlu0 %5299 }
0x214e   :  { %v5304_v18 = vsub.f32 %v5296_v9, %v5300_v17  ;;  %v9010_v9 = vld [vmem:[%s12480_s4 + $0x90] sm:$0xff] }
0x214f   :  { %v10680_v12 = vpack.c.bf16 %v9011_v11, %v9010_v9  ;;  %v9014_v17 = vld [vmem:[%s12480_s4 + $0xb0] sm:$0xff] }
0x2150   :  { %v5306_v19 = vmul.f32 1.442695, %v5304_v18  ;;  %v9015_v18 = vld [vmem:[%s12480_s4 + $0xb8] sm:$0xff] }
0x2151   :  { %v5303_v20 = vpop.xlane.xlu1 %5302 }
0x2152   :  { %10943 = vpow2.f32 %v5306_v19  ;;  %v5305_v21 = vsub.f32 %v5297_v14, %v5303_v20  ;;  %v9013_v14 = vld [vmem:[%s12480_s4 + $0xa8] sm:$0xff]  ;;  %v10688_v19 = vpack.c.bf16 %v9015_v18, %v9014_v17  ;;  %v9016_v20 = vld [vmem:[%s12480_s4 + $0xc0] sm:$0xff] }
0x2153   :  { %v10684_v16 = vpack.c.bf16 %v9013_v14, %v9012_v13  ;;  %v9025_v18 = vld [vmem:[%s12477_s1 + $0x300] sm:$0xff] }
0x2154   :  { %v5308_v22 = vmul.f32 1.442695, %v5305_v21  ;;  %v9017_v21 = vld [vmem:[%s12480_s4 + $0xc8] sm:$0xff] }
0x2156   :  { %10945 = vpow2.f32 %v5308_v22  ;;  %v10692_v22 = vpack.c.bf16 %v9017_v21, %v9016_v20  ;;  %v9027_v21 = vld [vmem:[%s12477_s1 + $0x310] sm:$0xff] }
0x215c   :  { %v10944_v23 = vpop.eup %10943 }
0x215d   :  { %v5310_v24 = vsel %vm320_vm2, %v10944_v23, 0.0 }
0x215e   :  { %5311 = vadd.xlane.f32.xlu0 %v5310_v24  ;;  %v9019_v24 = vld [vmem:[%s12480_s4 + $0xd8] sm:$0xff] }
0x2160   :  { %v10946_v26 = vpop.eup %10945 }
0x2161   :  { %v5313_v29 = vsel %vm320_vm2, %v10946_v26, 0.0 }
0x2162   :  { %5314 = vadd.xlane.f32.xlu1 %v5313_v29  ;;  %v9020_v29 = vld [vmem:[%s12480_s4 + $0xe0] sm:$0xff] }
0x21eb   :  { %v5312_v30 = vpop.xlane.xlu0 %5311 }
0x21ec   :  { %10947 = vrcp.f32 %v5312_v30  ;;  %v9021_v30 = vld [vmem:[%s12480_s4 + $0xe8] sm:$0xff] }
0x21ef   :  { %v5315_v31 = vpop.xlane.xlu1 %5314 }
0x21f0   :  { %10949 = vrcp.f32 %v5315_v31  ;;  %v10700_v31 = vpack.c.bf16 %v9021_v30, %v9020_v29 }
0x21f6   :  { %v10948_v33 = vpop.eup %10947 }
0x21f7   :  { %v5318_v34 = vmul.f32 %v10948_v33, %v10944_v23  ;;  %v9018_v23 = vld [vmem:[%s12480_s4 + $0xd0] sm:$0xff] }
0x21f9   :  { %10089 = vmatmul.mubr.msk.f32.vlgmr.msra.gmra.mrb[68].mxu1 %vm320_vm2, %v5318_v34 }
0x21fa   :  { %v10950_v35 = vpop.eup %10949  ;;  %10671 = vmatpush3.bf16.msra.mxu1 %v10668_v5 }
0x21fb   :  { %v5319_v36 = vmul.f32 %v10950_v35, %v10946_v26  ;;  %10673 = vmatprep.subr.bf16.mxu1 %v10672_v46  ;;  %v10696_v26 = vpack.c.bf16 %v9019_v24, %v9018_v23  ;;  %v9031_v24 = vld [vmem:[%s12477_s1 + $0x380] sm:$0xff] }
0x21fd   :  { %10094 = vmatmul.mubr.msk.f32.vlgmr.msra.gmra.mrb[48].mxu0 %vm320_vm2, %v5319_v36 }
0x21fe   :  { %10097 = vmatpush3.msra.mxu0 %v8997_v37  ;;  %10675 = vmatpush3.bf16.msra.mxu1 %v10672_v46 }
0x21ff   :  { %10677 = vmatprep.subr.bf16.mxu0 %v10676_v10 }
0x22cc   :  { %v5389_v44 = vpop.f32.mrb[68].mxu1 }
0x22cd   :  { %v10090_v47 = vpop.f32.mrb[69].mxu1  ;;  %10098 = vmatprep.mubr.msk.f32.mxu0 %vm320_vm2, %v5389_v44 }
0x22ce   :  { %v5588_v47 = vrot.slane %v11589_v25, %v11524_v27 }
0x22d0   :  { %v5462_v48 = vpop.f32.mrb[48].mxu0 }
0x22d1   :  { %v10095_v50 = vpop.f32.mrb[49].mxu0  ;;  %10099 = vmatmul.mubr.msk.f32.vlgmr.msra.gmra.mrb[34].mxu0 %vm320_vm2, %v5462_v48 }
0x22d2   :  { %10679 = vmatpush3.bf16.msra.mxu0 %v10676_v10 }
0x22d3   :  { %10681 = vmatprep.subr.bf16.mxu0 %v10680_v12 }
0x22d6   :  { %10683 = vmatpush3.bf16.msra.mxu0 %v10680_v12 }
0x22d7   :  { %10685 = vmatprep.subr.bf16.mxu0 %v10684_v16 }
0x22da   :  { %10687 = vmatpush3.bf16.msra.mxu0 %v10684_v16 }
0x22db   :  { %10689 = vmatprep.subr.bf16.mxu0 %v10688_v19 }
0x22de   :  { %10691 = vmatpush3.bf16.msra.mxu0 %v10688_v19  ;;  %v9026_v19 = vld [vmem:[%s12477_s1 + $0x308] sm:$0xff] }
0x22df   :  { %10693 = vmatprep.subr.bf16.mxu0 %v10692_v22  ;;  %v10708_v20 = vpack.c.bf16 %v9026_v19, %v9025_v18 }
0x22e1   :  { %10709 = vmatprep.subr.bf16.mxu1 %v10708_v20 }
0x22e2   :  { %10695 = vmatpush3.bf16.msra.mxu0 %v10692_v22  ;;  %v9028_v22 = vld [vmem:[%s12477_s1 + $0x318] sm:$0xff] }
0x22e3   :  { %10697 = vmatprep.subr.bf16.mxu0 %v10696_v26  ;;  %v10712_v23 = vpack.c.bf16 %v9028_v22, %v9027_v21 }
0x22e6   :  { %10699 = vmatpush3.bf16.msra.mxu0 %v10696_v26  ;;  %v9032_v26 = vld [vmem:[%s12477_s1 + $0x388] sm:$0xff] }
0x22e7   :  { %10701 = vmatprep.subr.bf16.mxu0 %v10700_v31  ;;  %v10716_v29 = vpack.c.bf16 %v9032_v26, %v9031_v24  ;;  %v9051_v24 = vld [vmem:[%s12477_s1 + $0x328] sm:$0xff] }
0x22ea   :  { %10703 = vmatpush3.bf16.msra.mxu0 %v10700_v31 }
0x23a4   :  { %v10100_v0 = vpop.f32.mrb[34].mxu0 }
0x23a5   :  { %v5552_v51 = vadd.f32 %v10100_v0, %v11556_v61  ;;  %v5540_v54 = vpop.f32.mrb[35].mxu0 }
0x23a6   :  { %v5551_v59 = vadd.f32 %v5540_v54, %v11558_v56 }
0x23a7   :  { %v11904_v53 = vadd.f32 %v5556_v1, %v5552_v51  ;;  %v5594_v51 = vrot.slane %v11589_v25, %v11527_v28 }
0x23a8   :  { %v11906_v60 = vadd.f32 %v5556_v1, %v5551_v59 }
0x23a9   :  { %v5562_v55 = vsel %vm35_vm0, %v11904_v53, 0.0 }
0x23aa   :  { %5563 = vadd.xlane.f32.xlu1 %v5562_v55  ;;  %v5559_v49 = vsel %vm35_vm0, %v11906_v60, 0.0 }
0x23ab   :  { %5560 = vadd.xlane.f32.xlu0 %v5559_v49 }
0x2437   :  { %v5564_v62 = vpop.xlane.xlu1 %5563 }
0x2438   :  { %v5566_v38 = vmul.f32 0.03125, %v5564_v62  ;;  %v5561_v63 = vpop.xlane.xlu0 %5560  ;;  %v9022_v62 = vld [vmem:[%s12480_s4 + $0xf0] sm:$0xff] }
0x2439   :  { %v5565_v41 = vmul.f32 0.03125, %v5561_v63 }
0x243a   :  { %v11913_v61 = vsub.f32 %v11904_v53, %v5566_v38  ;;  %v9023_v38 = vld [vmem:[%s12480_s4 + $0xf8] sm:$0xff] }
0x243b   :  { %v11916_v56 = vsub.f32 %v11906_v60, %v5565_v41  ;;  %v10704_v63 = vpack.c.bf16 %v9023_v38, %v9022_v62  ;;  %v9005_v41 = vld [vmem:[%s12481_s5 + $0x1] ss:$0 sm:$0xff]  ;;  %v9038_v38 = vld [vmem:[%s12477_s1 + $0x408] sm:$0xff] }
0x243c   :  { %v5570_v2 = vmul.f32 %v11913_v61, %v11913_v61 }
0x243d   :  { %v5569_v52 = vmul.f32 %v11916_v56, %v11916_v56  ;;  %10705 = vmatprep.subr.bf16.mxu0 %v10704_v63 }
0x243e   :  { %v5574_v4 = vsel %vm35_vm0, %v5570_v2, 0.0  ;;  %10707 = vmatpush3.bf16.msra.mxu0 %v10704_v63 }
0x243f   :  { %5575 = vadd.xlane.f32.xlu1 %v5574_v4  ;;  %v5571_v57 = vsel %vm35_vm0, %v5569_v52, 0.0  ;;  %10190 = vmatprep.subr.mxu0 %v11020_v3 }
0x2440   :  { %5572 = vadd.xlane.f32.xlu0 %v5571_v57 }
0x24cc   :  { %v5576_v33 = vpop.xlane.xlu1 %5575 }
0x24cd   :  { %v5578_v34 = vmul.f32 0.03125, %v5576_v33  ;;  %v5573_v35 = vpop.xlane.xlu0 %5572 }
0x24ce   :  { %v5577_v36 = vmul.f32 0.03125, %v5573_v35 }
0x24cf   :  { %v5580_v37 = vadd.f32 1e-05, %v5578_v34 }
0x24d0   :  { %v5579_v44 = vadd.f32 1e-05, %v5577_v36 }
0x24d1   :  { %10951 = vrsqrt.f32 %v5580_v37  ;;  %v12035_v37 = vld [vmem:[%s12482_s6 + $0x10] sm:$0x3f] }
0x24d2   :  { %10953 = vrsqrt.f32 %v5579_v44  ;;  %v5824_v44 = vrot.slane %v12035_v37, %v11123_v40 }
0x24db   :  { %v10952_v48 = vpop.eup %10951 }
0x24dc   :  { %v10954_v50 = vpop.eup %10953  ;;  %v5584_v1 = vmul.f32 %v10952_v48, %v11913_v61 }
0x24dd   :  { %v5583_v0 = vmul.f32 %v10954_v50, %v11916_v56 }
0x24de   :  { %v5590_v54 = vmul.f32 %v5588_v47, %v5584_v1  ;;  %v5830_v1 = vrot.slane %v12035_v37, %v11131_v42  ;;  %v9037_v42 = vld [vmem:[%s12477_s1 + $0x400] sm:$0xff] }
0x24df   :  { %v5589_v59 = vmul.f32 %v5588_v47, %v5583_v0  ;;  %v10724_v63 = vpack.c.bf16 %v9038_v38, %v9037_v42  ;;  %v9064_v42 = vld [vmem:[%s12477_s1 + $0x430] sm:$0xff]  ;;  %v9065_v38 = vld [vmem:[%s12477_s1 + $0x438] sm:$0xff] }
0x24e0   :  { %v5596_v49 = vadd.f32 %v5594_v51, %v5590_v54 }
0x24e1   :  { %v5595_v55 = vadd.f32 %v5594_v51, %v5589_v59  ;;  %v9033_v59 = vld [vmem:[%s12477_s1 + $0x390] sm:$0xff] }
0x24e3   :  { %10109 = vmatprep.mubr.msk.f32.mxu1 %vm35_vm0, %v5595_v55  ;;  %v9034_v55 = vld [vmem:[%s12477_s1 + $0x398] sm:$0xff] }
0x24e4   :  { %10110 = vmatmul.mubr.msk.f32.vlgmr.msra.gmra.mrb[70].mxu1 %vm35_vm0, %v5596_v49  ;;  %v10720_v62 = vpack.c.bf16 %v9034_v55, %v9033_v59 }
0x24e5   :  { %10711 = vmatpush3.bf16.msra.mxu1 %v10708_v20 }
0x24e6   :  { %10713 = vmatprep.subr.bf16.mxu1 %v10712_v23 }
0x24e9   :  { %10715 = vmatpush3.bf16.msra.mxu1 %v10712_v23  ;;  %v9050_v23 = vld [vmem:[%s12477_s1 + $0x320] sm:$0xff] }
0x24ea   :  { %10717 = vmatprep.subr.bf16.mxu1 %v10716_v29  ;;  %v10732_v26 = vpack.c.bf16 %v9051_v24, %v9050_v23  ;;  %v9079_v24 = vld [vmem:[%s12477_s1 + $0x340] sm:$0xff] }
0x25b7   :  { %v10111_v61 = vpop.f32.mrb[70].mxu1 }
0x25b8   :  { %v5688_v56 = vadd.f32 %v10111_v61, %v9005_v41  ;;  %v5682_v2 = vpop.f32.mrb[71].mxu1  ;;  %v9040_v61 = vld [vmem:[%s12477_s1 + $0x418] sm:$0xff] }
0x25b9   :  { %v5683_v52 = vadd.f32 %v9005_v41, %v5682_v2  ;;  %v9039_v41 = vld [vmem:[%s12477_s1 + $0x410] sm:$0xff] }
0x25ba   :  { %v5692_v57 = vmax.f32 %v5688_v56, 0.0  ;;  %v10728_v56 = vpack.c.bf16 %v9040_v61, %v9039_v41 }
0x25bb   :  { %v5691_v4 = vmax.f32 %v5683_v52, 0.0 }
0x25bd   :  { %10144 = vmatprep.mubr.f32.mxu0 %v5691_v4 }
0x25be   :  { %10145 = vmatmul.mubr.f32.vlgmr.msra.gmra.mrb[50].mxu0 %v5692_v57 }
0x25bf   :  { %10192 = vmatprep.mubr.msk.f32.mxu0 %vm11021_vm1, %v11020_v3 }
0x2691   :  { %v10146_v43 = vpop.f32.mrb[50].mxu0 }
0x2692   :  { %v5786_v5 = vadd.f32 %v10146_v43, %v11904_v53  ;;  %v5776_v45 = vpop.f32.mrb[51].mxu0 }
0x2693   :  { %v5785_v6 = vadd.f32 %v5776_v45, %v11906_v60 }
0x2694   :  { %v12002_v46 = vadd.f32 %v5790_v39, %v5786_v5 }
0x2695   :  { %v12004_v7 = vadd.f32 %v5790_v39, %v5785_v6 }
0x2696   :  { %v5798_v8 = vsel %vm35_vm0, %v12002_v46, 0.0 }
0x2697   :  { %5799 = vadd.xlane.f32.xlu1 %v5798_v8  ;;  %v5795_v9 = vsel %vm35_vm0, %v12004_v7, 0.0 }
0x2698   :  { %5796 = vadd.xlane.f32.xlu0 %v5795_v9 }
0x2724   :  { %v5800_v10 = vpop.xlane.xlu1 %5799 }
0x2725   :  { %v5802_v25 = vmul.f32 0.03125, %v5800_v10  ;;  %v5797_v11 = vpop.xlane.xlu0 %5796 }
0x2726   :  { %v5801_v12 = vmul.f32 0.03125, %v5797_v11 }
0x2727   :  { %v5804_v53 = vsub.f32 %v12002_v46, %v5802_v25 }
0x2728   :  { %v5803_v60 = vsub.f32 %v12004_v7, %v5801_v12 }
0x2729   :  { %v5806_v13 = vmul.f32 %v5804_v53, %v5804_v53 }
0x272a   :  { %v5805_v14 = vmul.f32 %v5803_v60, %v5803_v60 }
0x272b   :  { %v5810_v16 = vsel %vm35_vm0, %v5806_v13, 0.0 }
0x272c   :  { %5811 = vadd.xlane.f32.xlu1 %v5810_v16  ;;  %v5807_v17 = vsel %vm35_vm0, %v5805_v14, 0.0 }
0x272d   :  { %5808 = vadd.xlane.f32.xlu0 %v5807_v17 }
0x27b9   :  { %v5812_v30 = vpop.xlane.xlu1 %5811 }
0x27ba   :  { %v5814_v31 = vmul.f32 0.03125, %v5812_v30  ;;  %v5809_v33 = vpop.xlane.xlu0 %5808  ;;  %v9057_v30 = vld [vmem:[%s12477_s1 + $0x3a8] sm:$0xff] }
0x27bb   :  { %v5813_v34 = vmul.f32 0.03125, %v5809_v33 }
0x27bc   :  { %v5816_v35 = vadd.f32 1e-05, %v5814_v31 }
0x27bd   :  { %v5815_v36 = vadd.f32 1e-05, %v5813_v34 }
0x27be   :  { %10955 = vrsqrt.f32 %v5816_v35  ;;  %v9052_v35 = vld [vmem:[%s12477_s1 + $0x330] sm:$0xff] }
0x27bf   :  { %10957 = vrsqrt.f32 %v5815_v36  ;;  %v9053_v36 = vld [vmem:[%s12477_s1 + $0x338] sm:$0xff] }
0x27c8   :  { %v10956_v47 = vpop.eup %10955 }
0x27c9   :  { %v10958_v48 = vpop.eup %10957  ;;  %v5820_v50 = vmul.f32 %v10956_v47, %v5804_v53 }
0x27ca   :  { %v5819_v0 = vmul.f32 %v10958_v48, %v5803_v60  ;;  %v10736_v48 = vpack.c.bf16 %v9053_v36, %v9052_v35  ;;  %v9081_v35 = vld [vmem:[%s12477_s1 + $0x350] sm:$0xff]  ;;  %v9082_v36 = vld [vmem:[%s12477_s1 + $0x358] sm:$0xff] }
0x27cb   :  { %v5826_v51 = vmul.f32 %v5824_v44, %v5820_v50  ;;  %v9058_v50 = vld [vmem:[%s12477_s1 + $0x3b0] sm:$0xff] }
0x27cc   :  { %v5825_v54 = vmul.f32 %v5824_v44, %v5819_v0  ;;  %v9062_v0 = vld [vmem:[%s12477_s1 + $0x420] sm:$0xff] }
0x27cd   :  { %v12049_v40 = vadd.f32 %v5830_v1, %v5826_v51  ;;  %v9063_v51 = vld [vmem:[%s12477_s1 + $0x428] sm:$0xff] }
0x27ce   :  { %v12047_v49 = vadd.f32 %v5830_v1, %v5825_v54  ;;  %v9059_v1 = vld [vmem:[%s12477_s1 + $0x3b8] sm:$0xff] }
0x27cf   :  { %v10744_v55 = vpack.c.bf16 %v9059_v1, %v9058_v50  ;;  %v9091_v50 = vld [vmem:[%s12477_s1 + $0x440] sm:$0xff]  ;;  %v9092_v1 = vld [vmem:[%s12477_s1 + $0x448] sm:$0xff] }
0x27d0   :  { %10155 = vmatprep.mubr.msk.f32.mxu1 %vm35_vm0, %v12047_v49 }
0x27d1   :  { %10156 = vmatmul.mubr.msk.f32.vlgmr.msra.gmra.mrb[72].mxu1 %vm35_vm0, %v12049_v40 }
0x27d2   :  { %10719 = vmatpush3.bf16.msra.mxu1 %v10716_v29  ;;  %10166 = vmatprep.mubr.msk.f32.mxu1 %vm35_vm0, %v12047_v49  ;;  %v9056_v29 = vld [vmem:[%s12477_s1 + $0x3a0] sm:$0xff] }
0x27d3   :  { %10721 = vmatprep.subr.bf16.mxu1 %v10720_v62  ;;  %v10740_v31 = vpack.c.bf16 %v9057_v30, %v9056_v29 }
0x27d6   :  { %10723 = vmatpush3.bf16.msra.mxu1 %v10720_v62  ;;  %v10748_v62 = vpack.c.bf16 %v9063_v51, %v9062_v0  ;;  %v10772_v0 = vpack.c.bf16 %v9092_v1, %v9091_v50  ;;  %v9093_v51 = vld [vmem:[%s12477_s1 + $0x450] sm:$0xff] }
0x27d7   :  { %10725 = vmatprep.subr.bf16.mxu1 %v10724_v63 }
0x27d9   :  { %10167 = vmatmul.mubr.msk.f32.vlgmr.msra.gmra.mrb[74].mxu1 %vm35_vm0, %v12049_v40 }
0x27da   :  { %10727 = vmatpush3.bf16.msra.mxu1 %v10724_v63  ;;  %10177 = vmatprep.mubr.msk.f32.mxu1 %vm35_vm0, %v12047_v49  ;;  %v10752_v63 = vpack.c.bf16 %v9065_v38, %v9064_v42  ;;  %v9085_v38 = vld [vmem:[%s12477_s1 + $0x3c0] sm:$0xff] }
0x27db   :  { %10729 = vmatprep.subr.bf16.mxu1 %v10728_v56 }
0x27de   :  { %10731 = vmatpush3.bf16.msra.mxu1 %v10728_v56 }
0x27df   :  { %10180 = vmatprep.subr.mxu1 %v11020_v3 }
0x27e1   :  { %10178 = vmatmul.mubr.msk.f32.vlgmr.msra.gmra.mrb[76].mxu1 %vm35_vm0, %v12049_v40 }
0x27e2   :  { %10182 = vmatprep.mubr.msk.f32.mxu1 %vm11021_vm1, %v11020_v3 }
0x28a4   :  { %v10157_v2 = vpop.f32.mrb[72].mxu1 }
0x28a5   :  { %v5910_v52 = vpop.f32.mrb[73].mxu1 }
0x28a6   :  { %10181 = vmatpush3.xpose.msk.msra.mxu1 %vm320_vm2, %v5910_v52 }
0x28a7   :  { %10185 = vmatprep.subr.mxu1 %v11020_v3 }
0x28ac   :  { %v10168_v4 = vpop.f32.mrb[74].mxu1 }
0x28ad   :  { %v5990_v57 = vpop.f32.mrb[75].mxu1 }
0x28ae   :  { %10183 = vmatmul.mubr.msk.f32.vlgmr.msra.gmra.mrb[78].mxu1 %vm320_vm2, %v5990_v57 }
0x28af   :  { %10186 = vmatpush3.xpose.msk.msra.mxu1 %vm320_vm2, %v10157_v2  ;;  %10187 = vmatprep.mubr.msk.f32.mxu1 %vm11021_vm1, %v11020_v3 }
0x28b0   :  { %10195 = vmatprep.subr.mxu1 %v11020_v3 }
0x28b2   :  { %10188 = vmatmul.mubr.msk.f32.vlgmr.msra.gmra.mrb[80].mxu1 %vm320_vm2, %v10168_v4 }
0x28b3   :  { %10197 = vmatprep.mubr.msk.f32.mxu1 %vm11021_vm1, %v11020_v3 }
0x28b4   :  { %v10179_v39 = vpop.f32.mrb[76].mxu1 }
0x28b5   :  { %v6070_v43 = vpop.f32.mrb[77].mxu1  ;;  %10196 = vmatpush3.msra.mxu1 %v10179_v39 }
0x28b6   :  { %10191 = vmatpush3.msra.mxu0 %v6070_v43  ;;  %10741 = vmatprep.subr.bf16.mxu1 %v10740_v31 }
0x28b7   :  { %10733 = vmatprep.subr.bf16.mxu0 %v10732_v26 }
0x2981   :  { %v6151_v5 = vpop.f32.mrb[78].mxu1 }
0x2982   :  { %v6231_v45 = vmul.f32 0.17677669, %v6151_v5  ;;  %v10184_v6 = vpop.f32.mrb[79].mxu1 }
0x2984   :  { %v6233_v8 = vsel %vm11210_vm3, %v6231_v45, -1e+30 }
0x2985   :  { %v6227_v9 = vpop.f32.mrb[80].mxu1  ;;  %v6235_v10 = vsel %vm320_vm2, %v6233_v8, -inf }
0x2986   :  { %v6232_v25 = vmul.f32 0.17677669, %v6227_v9  ;;  %6236 = vmax.xlane.f32.xlu0 %v6235_v10  ;;  %v10189_v11 = vpop.f32.mrb[81].mxu1 }
0x2988   :  { %v6234_v12 = vsel %vm11210_vm3, %v6232_v25, -1e+30 }
0x2989   :  { %v6238_v53 = vsel %vm320_vm2, %v6234_v12, -inf }
0x298a   :  { %6239 = vmax.xlane.f32.xlu1 %v6238_v53 }
0x2a13   :  { %v6237_v60 = vpop.xlane.xlu0 %6236 }
0x2a14   :  { %v6241_v13 = vsub.f32 %v6233_v8, %v6237_v60 }
0x2a16   :  { %v6243_v14 = vmul.f32 1.442695, %v6241_v13 }
0x2a17   :  { %v6240_v16 = vpop.xlane.xlu1 %6239 }
0x2a18   :  { %10959 = vpow2.f32 %v6243_v14  ;;  %v6242_v17 = vsub.f32 %v6234_v12, %v6240_v16 }
0x2a1a   :  { %v6245_v18 = vmul.f32 1.442695, %v6242_v17 }
0x2a1c   :  { %10961 = vpow2.f32 %v6245_v18 }
0x2a22   :  { %v10960_v19 = vpop.eup %10959 }
0x2a23   :  { %v6247_v20 = vsel %vm320_vm2, %v10960_v19, 0.0 }
0x2a24   :  { %6248 = vadd.xlane.f32.xlu0 %v6247_v20 }
0x2a26   :  { %v10962_v21 = vpop.eup %10961 }
0x2a27   :  { %v6250_v22 = vsel %vm320_vm2, %v10962_v21, 0.0 }
0x2a28   :  { %6251 = vadd.xlane.f32.xlu1 %v6250_v22 }
0x2ab1   :  { %v6249_v33 = vpop.xlane.xlu0 %6248 }
0x2ab2   :  { %10963 = vrcp.f32 %v6249_v33 }
0x2ab5   :  { %v6252_v34 = vpop.xlane.xlu1 %6251 }
0x2ab6   :  { %10965 = vrcp.f32 %v6252_v34 }
0x2abc   :  { %v10964_v44 = vpop.eup %10963 }
0x2abd   :  { %v6255_v47 = vmul.f32 %v10964_v44, %v10960_v19 }
0x2abf   :  { %10193 = vmatmul.mubr.msk.f32.vlgmr.msra.gmra.mrb[52].mxu0 %vm320_vm2, %v6255_v47 }
0x2ac0   :  { %v10966_v54 = vpop.eup %10965  ;;  %10735 = vmatpush3.bf16.msra.mxu0 %v10732_v26  ;;  %10208 = vmatprep.mubr.msk.f32.mxu0 %vm35_vm0, %v12047_v49  ;;  %v9080_v26 = vld [vmem:[%s12477_s1 + $0x348] sm:$0xff] }
0x2ac1   :  { %v6256_v59 = vmul.f32 %v10966_v54, %v10962_v21  ;;  %10737 = vmatprep.subr.bf16.mxu0 %v10736_v48  ;;  %v10756_v29 = vpack.c.bf16 %v9080_v26, %v9079_v24  ;;  %v9094_v54 = vld [vmem:[%s12477_s1 + $0x458] sm:$0xff] }
0x2ac3   :  { %10198 = vmatmul.mubr.msk.f32.vlgmr.msra.gmra.mrb[82].mxu1 %vm320_vm2, %v6256_v59  ;;  %v10776_v59 = vpack.c.bf16 %v9094_v54, %v9093_v51  ;;  %v9118_v54 = vld [vmem:[%s12477_s1 + $0x460] sm:$0xff] }
0x2ac4   :  { %10739 = vmatpush3.bf16.msra.mxu0 %v10736_v48  ;;  %10743 = vmatpush3.bf16.msra.mxu1 %v10740_v31  ;;  %v10760_v48 = vpack.c.bf16 %v9082_v36, %v9081_v35 }
0x2ac5   :  { %10219 = vmatprep.mubr.msk.f32.mxu1 %vm35_vm0, %v12047_v49  ;;  %10745 = vmatprep.subr.bf16.mxu1 %v10744_v55 }
0x2ac6   :  { %10749 = vmatprep.subr.bf16.mxu0 %v10748_v62 }
0x2ac7   :  { %10209 = vmatmul.mubr.msk.f32.vlgmr.msra.gmra.mrb[54].mxu0 %vm35_vm0, %v12049_v40 }
0x2ac8   :  { %10747 = vmatpush3.bf16.msra.mxu1 %v10744_v55  ;;  %10751 = vmatpush3.bf16.msra.mxu0 %v10748_v62  ;;  %v9074_v55 = vld [vmem:[%s12478_s2 + $0x48] sm:$0xff]  ;;  %v9049_v62 = vld [vmem:[%s12478_s2 + $0x40] sm:$0xff] }
0x2ac9   :  { %10230 = vmatprep.mubr.msk.f32.mxu0 %vm35_vm0, %v12047_v49  ;;  %10753 = vmatprep.subr.bf16.mxu0 %v10752_v63 }
0x2aca   :  { %10233 = vmatprep.subr.mxu1 %v11020_v3 }
0x2acb   :  { %10220 = vmatmul.mubr.msk.f32.vlgmr.msra.gmra.mrb[84].mxu1 %vm35_vm0, %v12049_v40 }
0x2acc   :  { %10755 = vmatpush3.bf16.msra.mxu0 %v10752_v63  ;;  %10235 = vmatprep.mubr.msk.f32.mxu1 %vm11021_vm1, %v11020_v3  ;;  %v9086_v63 = vld [vmem:[%s12477_s1 + $0x3c8] sm:$0xff] }
0x2acd   :  { %10243 = vmatprep.subr.mxu0 %v11020_v3 }
0x2acf   :  { %10231 = vmatmul.mubr.msk.f32.vlgmr.msra.gmra.mrb[56].mxu0 %vm35_vm0, %v12049_v40 }
0x2ad0   :  { %10245 = vmatprep.mubr.msk.f32.mxu0 %vm11021_vm1, %v11020_v3 }
0x2b92   :  { %v12152_v41 = vpop.f32.mrb[52].mxu0 }
0x2b93   :  { %v10194_v61 = vpop.f32.mrb[53].mxu0 }
0x2b96   :  { %v12154_v56 = vpop.f32.mrb[82].mxu1 }
0x2b97   :  { %v10199_v2 = vpop.f32.mrb[83].mxu1 }
0x2b98   :  { %v10764_v2 = vpack.c.bf16 %v9086_v63, %v9085_v38  ;;  %v9112_v63 = vld [vmem:[%s12477_s1 + $0x3e0] sm:$0xff] }
0x2b9a   :  { %v10210_v52 = vpop.f32.mrb[54].mxu0 }
0x2b9b   :  { %v6476_v4 = vpop.f32.mrb[55].mxu0 }
0x2b9c   :  { %10234 = vmatpush3.xpose.msk.msra.mxu1 %vm320_vm2, %v6476_v4 }
0x2b9d   :  { %10238 = vmatprep.subr.mxu1 %v11020_v3 }
0x2b9e   :  { %v10221_v57 = vpop.f32.mrb[84].mxu1 }
0x2b9f   :  { %v6556_v39 = vpop.f32.mrb[85].mxu1 }
0x2ba0   :  { %10236 = vmatmul.mubr.msk.f32.vlgmr.msra.gmra.mrb[86].mxu1 %vm320_vm2, %v6556_v39  ;;  %v9088_v39 = vld [vmem:[%s12477_s1 + $0x3d8] sm:$0xff] }
0x2ba1   :  { %10239 = vmatpush3.xpose.msk.msra.mxu1 %vm320_vm2, %v10210_v52  ;;  %10240 = vmatprep.mubr.msk.f32.mxu1 %vm11021_vm1, %v11020_v3 }
0x2ba2   :  { %v10232_v43 = vpop.f32.mrb[56].mxu0  ;;  %10248 = vmatprep.subr.mxu1 %v11020_v3 }
0x2ba3   :  { %v6636_v5 = vpop.f32.mrb[57].mxu0 }
0x2ba4   :  { %10241 = vmatmul.mubr.msk.f32.vlgmr.msra.gmra.mrb[88].mxu1 %vm320_vm2, %v10221_v57  ;;  %10244 = vmatpush3.msra.mxu0 %v6636_v5  ;;  %v9087_v57 = vld [vmem:[%s12477_s1 + $0x3d0] sm:$0xff] }
0x2ba5   :  { %10249 = vmatpush3.msra.mxu1 %v10232_v43  ;;  %10250 = vmatprep.mubr.msk.f32.mxu1 %vm11021_vm1, %v11020_v3  ;;  %v10768_v43 = vpack.c.bf16 %v9088_v39, %v9087_v57 }
0x2ba6   :  { %10757 = vmatprep.subr.bf16.mxu1 %v10756_v29  ;;  %10253 = vmatprep.subr.mxu0 %v9074_v55 }
0x2c73   :  { %v6717_v45 = vpop.f32.mrb[86].mxu1 }
0x2c74   :  { %v6797_v6 = vmul.f32 0.17677669, %v6717_v45  ;;  %v10237_v8 = vpop.f32.mrb[87].mxu1 }
0x2c76   :  { %v6799_v9 = vsel %vm11210_vm3, %v6797_v6, -1e+30 }
0x2c77   :  { %v6793_v10 = vpop.f32.mrb[88].mxu1  ;;  %v6801_v25 = vsel %vm320_vm2, %v6799_v9, -inf }
0x2c78   :  { %v6798_v11 = vmul.f32 0.17677669, %v6793_v10  ;;  %6802 = vmax.xlane.f32.xlu0 %v6801_v25  ;;  %v10242_v12 = vpop.f32.mrb[89].mxu1 }
0x2c7a   :  { %v6800_v53 = vsel %vm11210_vm3, %v6798_v11, -1e+30 }
0x2c7b   :  { %v6804_v60 = vsel %vm320_vm2, %v6800_v53, -inf }
0x2c7c   :  { %6805 = vmax.xlane.f32.xlu1 %v6804_v60 }
0x2d05   :  { %v6803_v13 = vpop.xlane.xlu0 %6802 }
0x2d06   :  { %v6807_v14 = vsub.f32 %v6799_v9, %v6803_v13 }
0x2d08   :  { %v6809_v16 = vmul.f32 1.442695, %v6807_v14 }
0x2d09   :  { %v6806_v17 = vpop.xlane.xlu1 %6805 }
0x2d0a   :  { %10967 = vpow2.f32 %v6809_v16  ;;  %v6808_v18 = vsub.f32 %v6800_v53, %v6806_v17 }
0x2d0c   :  { %v6811_v19 = vmul.f32 1.442695, %v6808_v18 }
0x2d0e   :  { %10969 = vpow2.f32 %v6811_v19 }
0x2d14   :  { %v10968_v20 = vpop.eup %10967 }
0x2d15   :  { %v6813_v21 = vsel %vm320_vm2, %v10968_v20, 0.0 }
0x2d16   :  { %6814 = vadd.xlane.f32.xlu0 %v6813_v21 }
0x2d18   :  { %v10970_v22 = vpop.eup %10969 }
0x2d19   :  { %v6816_v23 = vsel %vm320_vm2, %v10970_v22, 0.0 }
0x2d1a   :  { %6817 = vadd.xlane.f32.xlu1 %v6816_v23 }
0x2da3   :  { %v6815_v30 = vpop.xlane.xlu0 %6814 }
0x2da4   :  { %10971 = vrcp.f32 %v6815_v30  ;;  %v9106_v30 = vld [vmem:[%s12477_s1 + $0x360] sm:$0xff] }
0x2da7   :  { %v6818_v31 = vpop.xlane.xlu1 %6817 }
0x2da8   :  { %10973 = vrcp.f32 %v6818_v31  ;;  %v9107_v31 = vld [vmem:[%s12477_s1 + $0x368] sm:$0xff] }
0x2dae   :  { %v10972_v33 = vpop.eup %10971 }
0x2daf   :  { %v6821_v34 = vmul.f32 %v10972_v33, %v10968_v20  ;;  %v10780_v33 = vpack.c.bf16 %v9107_v31, %v9106_v30 }
0x2db1   :  { %10246 = vmatmul.mubr.msk.f32.vlgmr.msra.gmra.mrb[58].mxu0 %vm320_vm2, %v6821_v34  ;;  %v9103_v34 = vld [vmem:[%s12478_s2 + $0x50] sm:$0xff] }
0x2db2   :  { %v10974_v44 = vpop.eup %10973  ;;  %10254 = vmatpush3.msra.mxu0 %v9074_v55 }
0x2db3   :  { %v6822_v47 = vmul.f32 %v10974_v44, %v10970_v22  ;;  %10258 = vmatprep.subr.mxu0 %v9049_v62  ;;  %v9108_v44 = vld [vmem:[%s12477_s1 + $0x370] sm:$0xff] }
0x2db5   :  { %10251 = vmatmul.mubr.msk.f32.vlgmr.msra.gmra.mrb[90].mxu1 %vm320_vm2, %v6822_v47  ;;  %v9109_v47 = vld [vmem:[%s12477_s1 + $0x378] sm:$0xff] }
0x2db6   :  { %10759 = vmatpush3.bf16.msra.mxu1 %v10756_v29  ;;  %10271 = vmatprep.mubr.msk.f32.mxu1 %vm35_vm0, %v12047_v49 }
0x2db7   :  { %10761 = vmatprep.subr.bf16.mxu1 %v10760_v48 }
0x2dba   :  { %10763 = vmatpush3.bf16.msra.mxu1 %v10760_v48 }
0x2dbb   :  { %10773 = vmatprep.subr.bf16.mxu1 %v10772_v0 }
0x2dbd   :  { %10272 = vmatmul.mubr.msk.f32.vlgmr.msra.gmra.mrb[92].mxu1 %vm35_vm0, %v12049_v40 }
0x2dbe   :  { %10775 = vmatpush3.bf16.msra.mxu1 %v10772_v0  ;;  %10293 = vmatprep.mubr.msk.f32.mxu1 %vm35_vm0, %v12047_v49  ;;  %v10784_v0 = vpack.c.bf16 %v9109_v47, %v9108_v44 }
0x2dbf   :  { %10777 = vmatprep.subr.bf16.mxu1 %v10776_v59 }
0x2dc2   :  { %10779 = vmatpush3.bf16.msra.mxu1 %v10776_v59  ;;  %v9119_v59 = vld [vmem:[%s12477_s1 + $0x468] sm:$0xff] }
0x2dc3   :  { %10301 = vmatprep.subr.mxu1 %v11020_v3  ;;  %v10796_v55 = vpack.c.bf16 %v9119_v59, %v9118_v54 }
0x2dc5   :  { %10294 = vmatmul.mubr.msk.f32.vlgmr.msra.gmra.mrb[94].mxu1 %vm35_vm0, %v12049_v40 }
0x2dc6   :  { %10303 = vmatprep.mubr.msk.f32.mxu1 %vm11021_vm1, %v11020_v3 }
0x2e84   :  { %v6892_v42 = vpop.f32.mrb[58].mxu0 }
0x2e85   :  { %v10247_v61 = vpop.f32.mrb[59].mxu0  ;;  %10255 = vmatprep.mubr.msk.f32.mxu0 %vm320_vm2, %v6892_v42  ;;  %v9121_v42 = vld [vmem:[%s12477_s1 + $0x478] sm:$0xff] }
0x2e86   :  { %v9113_v61 = vld [vmem:[%s12477_s1 + $0x3e8] sm:$0xff] }
0x2e88   :  { %v6965_v52 = vpop.f32.mrb[90].mxu1 }
0x2e89   :  { %v10252_v4 = vpop.f32.mrb[91].mxu1  ;;  %10256 = vmatmul.mubr.msk.f32.vlgmr.msra.gmra.mrb[60].mxu0 %vm320_vm2, %v6965_v52  ;;  %v9114_v52 = vld [vmem:[%s12477_s1 + $0x3f0] sm:$0xff] }
0x2e8a   :  { %10259 = vmatpush3.msra.mxu0 %v9049_v62  ;;  %10260 = vmatprep.mubr.msk.f32.mxu0 %vm320_vm2, %v12152_v41  ;;  %v9120_v62 = vld [vmem:[%s12477_s1 + $0x470] sm:$0xff]  ;;  %v9115_v4 = vld [vmem:[%s12477_s1 + $0x3f8] sm:$0xff] }
0x2e8b   :  { %10765 = vmatprep.subr.bf16.mxu0 %v10764_v2  ;;  %v10800_v38 = vpack.c.bf16 %v9121_v42, %v9120_v62 }
0x2e90   :  { %v10273_v5 = vpop.f32.mrb[92].mxu1 }
0x2e91   :  { %v7204_v45 = vpop.f32.mrb[93].mxu1  ;;  %10302 = vmatpush3.xpose.msk.msra.mxu1 %vm320_vm2, %v10273_v5  ;;  %10261 = vmatmul.mubr.msk.f32.vlgmr.msra.gmra.mrb[60].mxu0 %vm320_vm2, %v12154_v56  ;;  %v10792_v5 = vpack.c.bf16 %v9115_v4, %v9114_v52 }
0x2e92   :  { %10767 = vmatpush3.bf16.msra.mxu0 %v10764_v2  ;;  %10282 = vmatprep.mubr.msk.f32.mxu0 %vm35_vm0, %v12047_v49  ;;  %v10788_v2 = vpack.c.bf16 %v9113_v61, %v9112_v63 }
0x2e93   :  { %10769 = vmatprep.subr.bf16.mxu0 %v10768_v43  ;;  %10311 = vmatprep.subr.mxu1 %v11020_v3 }
0x2e96   :  { %10771 = vmatpush3.bf16.msra.mxu0 %v10768_v43 }
0x2e97   :  { %10296 = vmatprep.subr.mxu0 %v11020_v3 }
0x2e98   :  { %v10295_v41 = vpop.f32.mrb[94].mxu1 }
0x2e99   :  { %10283 = vmatmul.mubr.msk.f32.vlgmr.msra.gmra.mrb[62].mxu0 %vm35_vm0, %v12049_v40  ;;  %v7364_v6 = vpop.f32.mrb[95].mxu1 }
0x2e9a   :  { %10298 = vmatprep.mubr.msk.f32.mxu0 %vm11021_vm1, %v11020_v3 }
0x2e9f   :  { %10297 = vmatpush3.xpose.msk.msra.mxu0 %vm320_vm2, %v7204_v45 }
0x2ea0   :  { %10306 = vmatprep.subr.mxu0 %v11020_v3 }
0x2f6c   :  { %v10284_v56 = vpop.f32.mrb[62].mxu0 }
0x2f6d   :  { %v7284_v8 = vpop.f32.mrb[63].mxu0  ;;  %10304 = vmatmul.mubr.msk.f32.vlgmr.msra.gmra.mrb[96].mxu1 %vm320_vm2, %v10284_v56 }
0x2f6e   :  { %10312 = vmatpush3.msra.mxu1 %v10295_v41  ;;  %10299 = vmatmul.mubr.msk.f32.vlgmr.msra.gmra.mrb[64].mxu0 %vm320_vm2, %v7284_v8 }
0x2f6f   :  { %10307 = vmatpush3.msra.mxu0 %v7364_v6  ;;  %10313 = vmatprep.mubr.msk.f32.mxu1 %vm11021_vm1, %v11020_v3 }
0x2f70   :  { %10308 = vmatprep.mubr.msk.f32.mxu0 %vm11021_vm1, %v11020_v3  ;;  %10781 = vmatprep.subr.bf16.mxu1 %v10780_v33 }
0x2f71   :  { %10316 = vmatprep.subr.mxu0 %v9103_v34 }
0x3040   :  { %v7521_v9 = vpop.f32.mrb[96].mxu1 }
0x3041   :  { %v7526_v10 = vmul.f32 0.17677669, %v7521_v9  ;;  %v7445_v25 = vpop.f32.mrb[64].mxu0  ;;  %v10305_v11 = vpop.f32.mrb[97].mxu1 }
0x3042   :  { %v7525_v12 = vmul.f32 0.17677669, %v7445_v25  ;;  %v10300_v53 = vpop.f32.mrb[65].mxu0 }
0x3043   :  { %v7528_v60 = vsel %vm11210_vm3, %v7526_v10, -1e+30 }
0x3044   :  { %v7532_v13 = vsel %vm320_vm2, %v7528_v60, -inf  ;;  %v7527_v14 = vsel %vm11210_vm3, %v7525_v12, -1e+30 }
0x3045   :  { %7533 = vmax.xlane.f32.xlu1 %v7532_v13  ;;  %v7529_v16 = vsel %vm320_vm2, %v7527_v14, -inf }
0x3046   :  { %7530 = vmax.xlane.f32.xlu0 %v7529_v16 }
0x30d2   :  { %v7534_v17 = vpop.xlane.xlu1 %7533 }
0x30d3   :  { %v7536_v18 = vsub.f32 %v7528_v60, %v7534_v17  ;;  %v7531_v19 = vpop.xlane.xlu0 %7530 }
0x30d4   :  { %v7535_v20 = vsub.f32 %v7527_v14, %v7531_v19 }
0x30d5   :  { %v7539_v21 = vmul.f32 1.442695, %v7536_v18 }
0x30d6   :  { %v7537_v22 = vmul.f32 1.442695, %v7535_v20 }
0x30d7   :  { %10975 = vpow2.f32 %v7539_v21 }
0x30d8   :  { %10977 = vpow2.f32 %v7537_v22 }
0x30e1   :  { %v10976_v23 = vpop.eup %10975 }
0x30e2   :  { %v10978_v24 = vpop.eup %10977  ;;  %v7544_v26 = vsel %vm320_vm2, %v10976_v23, 0.0 }
0x30e3   :  { %7545 = vadd.xlane.f32.xlu1 %v7544_v26  ;;  %v7541_v29 = vsel %vm320_vm2, %v10978_v24, 0.0 }
0x30e4   :  { %7542 = vadd.xlane.f32.xlu0 %v7541_v29 }
0x3170   :  { %v7546_v35 = vpop.xlane.xlu1 %7545 }
0x3171   :  { %10979 = vrcp.f32 %v7546_v35  ;;  %v7543_v36 = vpop.xlane.xlu0 %7542  ;;  %v9130_v35 = vld [vmem:[%s12478_s2 + $0x58] sm:$0xff]  ;;  %s11022_s2 = smov [#allocation2]  }
0x3172   :  { %10981 = vrcp.f32 %v7543_v36  ;;  %s8774_s21 = sshll.u32 %s11022_s2, 4  ;;  %s8775_s21 = int_to_ptr.vmem [resolvable:$true] %s8774_s21 }
0x3173   :  { %p11001_p1 = scmp.lt.s32.totalorder %s8775_s21, %s8775_s21 }
0x317b   :  { %v10980_v48 = vpop.eup %10979 }
0x317c   :  { %v10982_v50 = vpop.eup %10981  ;;  %v7550_v1 = vmul.f32 %v10980_v48, %v10976_v23 }
0x317d   :  { %v7549_v51 = vmul.f32 %v10982_v50, %v10978_v24  ;;  %v8436_v50 = vrot.slane %v12035_v37, %v11443_v32 }
0x317e   :  { %10314 = vmatmul.mubr.msk.f32.vlgmr.msra.gmra.mrb[98].mxu1 %vm320_vm2, %v7550_v1 }
0x317f   :  { %10783 = vmatpush3.bf16.msra.mxu1 %v10780_v33  ;;  %10309 = vmatmul.mubr.msk.f32.vlgmr.msra.gmra.mrb[66].mxu0 %vm320_vm2, %v7549_v51 }
0x3180   :  { %10329 = vmatprep.mubr.msk.f32.mxu1 %vm35_vm0, %v12047_v49  ;;  %10785 = vmatprep.subr.bf16.mxu1 %v10784_v0 }
0x3181   :  { %10317 = vmatpush3.msra.mxu0 %v9103_v34 }
0x3182   :  { %10789 = vmatprep.subr.bf16.mxu0 %v10788_v2 }
0x3183   :  { %10787 = vmatpush3.bf16.msra.mxu1 %v10784_v0 }
0x3184   :  { %10797 = vmatprep.subr.bf16.mxu1 %v10796_v55 }
0x3186   :  { %10330 = vmatmul.mubr.msk.f32.vlgmr.msra.gmra.mrb[100].mxu1 %vm35_vm0, %v12049_v40 }
0x3187   :  { %10799 = vmatpush3.bf16.msra.mxu1 %v10796_v55  ;;  %10351 = vmatprep.mubr.msk.f32.mxu1 %vm35_vm0, %v12047_v49 }
0x3188   :  { %10801 = vmatprep.subr.bf16.mxu1 %v10800_v38 }
0x318b   :  { %10803 = vmatpush3.bf16.msra.mxu1 %v10800_v38 }
0x318c   :  { %10364 = vmatprep.subr.mxu1 %v11020_v3 }
0x318e   :  { %10352 = vmatmul.mubr.msk.f32.vlgmr.msra.gmra.mrb[102].mxu1 %vm35_vm0, %v12049_v40 }
0x318f   :  { %10366 = vmatprep.mubr.msk.f32.mxu1 %vm11021_vm1, %v11020_v3 }
0x3251   :  { %v7693_v57 = vpop.f32.mrb[98].mxu1 }
0x3252   :  { %v7620_v39 = vpop.f32.mrb[66].mxu0  ;;  %v10315_v43 = vpop.f32.mrb[99].mxu1 }
0x3253   :  { %v10310_v45 = vpop.f32.mrb[67].mxu0  ;;  %10318 = vmatprep.mubr.msk.f32.mxu0 %vm320_vm2, %v7620_v39  ;;  %v9133_v39 = vld [vmem:[%s12479_s3 + $0x40] sm:$0xff]  ;;  %v9134_v43 = vld [vmem:[%s12479_s3 + $0x48] sm:$0xff] }
0x3254   :  { %10319 = vmatmul.mubr.msk.f32.vlgmr.msra.gmra.mrb[60].mxu0 %vm320_vm2, %v7693_v57  ;;  %v9135_v45 = vld [vmem:[%s12479_s3 + $0x50] sm:$0xff] }
0x3255   :  { %10791 = vmatpush3.bf16.msra.mxu0 %v10788_v2  ;;  %10340 = vmatprep.mubr.msk.f32.mxu0 %vm35_vm0, %v12047_v49 }
0x3256   :  { %10793 = vmatprep.subr.bf16.mxu0 %v10792_v5 }
0x3259   :  { %v10331_v41 = vpop.f32.mrb[100].mxu1  ;;  %10795 = vmatpush3.bf16.msra.mxu0 %v10792_v5  ;;  %v10804_v5 = vpack.c.bf16 %v9134_v43, %v9133_v39 }
0x325a   :  { %v7853_v6 = vpop.f32.mrb[101].mxu1  ;;  %10354 = vmatprep.subr.mxu0 %v11020_v3 }
0x325c   :  { %10341 = vmatmul.mubr.msk.f32.vlgmr.msra.gmra.mrb[68].mxu0 %vm35_vm0, %v12049_v40 }
0x325d   :  { %10356 = vmatprep.mubr.msk.f32.mxu0 %vm11021_vm1, %v11020_v3 }
0x3261   :  { %v10353_v56 = vpop.f32.mrb[102].mxu1 }
0x3262   :  { %v8013_v8 = vpop.f32.mrb[103].mxu1  ;;  %10355 = vmatpush3.xpose.msk.msra.mxu0 %vm320_vm2, %v7853_v6 }
0x3263   :  { %10365 = vmatpush3.msra.mxu1 %v8013_v8  ;;  %10359 = vmatprep.subr.mxu0 %v11020_v3  ;;  %v9142_v8 = vld [vmem:[%s12480_s4 + $0x108] sm:$0xff] }
0x3264   :  { %10805 = vmatprep.subr.bf16.mxu1 %v10804_v5 }
0x332f   :  { %v10342_v49 = vpop.f32.mrb[68].mxu0 }
0x3330   :  { %v7933_v9 = vpop.f32.mrb[69].mxu0 }
0x3331   :  { %10357 = vmatmul.mubr.msk.f32.vlgmr.msra.gmra.mrb[70].mxu0 %vm320_vm2, %v7933_v9 }
0x3332   :  { %10360 = vmatpush3.xpose.msk.msra.mxu0 %vm320_vm2, %v10331_v41  ;;  %10361 = vmatprep.mubr.msk.f32.mxu0 %vm11021_vm1, %v11020_v3  ;;  %v9136_v41 = vld [vmem:[%s12479_s3 + $0x58] sm:$0xff] }
0x3333   :  { %10369 = vmatprep.subr.mxu0 %v11020_v3  ;;  %v10808_v6 = vpack.c.bf16 %v9136_v41, %v9135_v45 }
0x3335   :  { %10362 = vmatmul.mubr.msk.f32.vlgmr.msra.gmra.mrb[72].mxu0 %vm320_vm2, %v10342_v49  ;;  %v9143_v49 = vld [vmem:[%s12480_s4 + $0x110] sm:$0xff] }
0x3336   :  { %10370 = vmatpush3.msra.mxu0 %v10353_v56  ;;  %10371 = vmatprep.mubr.msk.f32.mxu0 %vm11021_vm1, %v11020_v3  ;;  %v9141_v56 = vld [vmem:[%s12480_s4 + $0x100] sm:$0xff] }
0x3337   :  { %10374 = vmatprep.subr.mxu0 %v9130_v35  ;;  %v10812_v9 = vpack.c.bf16 %v9142_v8, %v9141_v56  ;;  %v9162_v56 = vld [vmem:[%s12481_s5 + $0x3] ss:$0 sm:$0xff] }
0x3404   :  { %v8094_v40 = vpop.f32.mrb[70].mxu0 }
0x3405   :  { %v8174_v10 = vmul.f32 0.17677669, %v8094_v40  ;;  %v10358_v25 = vpop.f32.mrb[71].mxu0  ;;  %v9144_v40 = vld [vmem:[%s12480_s4 + $0x118] sm:$0xff] }
0x3406   :  { %v9145_v25 = vld [vmem:[%s12480_s4 + $0x120] sm:$0xff] }
0x3407   :  { %v8176_v11 = vsel %vm11210_vm3, %v8174_v10, -1e+30  ;;  %v10816_v10 = vpack.c.bf16 %v9144_v40, %v9143_v49 }
0x3408   :  { %v8170_v12 = vpop.f32.mrb[72].mxu0  ;;  %v8178_v53 = vsel %vm320_vm2, %v8176_v11, -inf }
0x3409   :  { %v8175_v60 = vmul.f32 0.17677669, %v8170_v12  ;;  %8179 = vmax.xlane.f32.xlu0 %v8178_v53  ;;  %v10363_v13 = vpop.f32.mrb[73].mxu0  ;;  %v9147_v53 = vld [vmem:[%s12480_s4 + $0x130] sm:$0xff] }
0x340b   :  { %v8177_v14 = vsel %vm11210_vm3, %v8175_v60, -1e+30  ;;  %v9148_v60 = vld [vmem:[%s12480_s4 + $0x138] sm:$0xff] }
0x340c   :  { %v8181_v16 = vsel %vm320_vm2, %v8177_v14, -inf  ;;  %v10824_v13 = vpack.c.bf16 %v9148_v60, %v9147_v53 }
0x340d   :  { %8182 = vmax.xlane.f32.xlu1 %v8181_v16  ;;  %v9150_v16 = vld [vmem:[%s12480_s4 + $0x148] sm:$0xff] }
0x3496   :  { %v8180_v17 = vpop.xlane.xlu0 %8179 }
0x3497   :  { %v8184_v3 = vsub.f32 %v8176_v11, %v8180_v17  ;;  %v9146_v11 = vld [vmem:[%s12480_s4 + $0x128] sm:$0xff] }
0x3498   :  { %v10820_v12 = vpack.c.bf16 %v9146_v11, %v9145_v25 }
0x3499   :  { %v8186_v18 = vmul.f32 1.442695, %v8184_v3  ;;  %v9151_v3 = vld [vmem:[%s12480_s4 + $0x150] sm:$0xff] }
0x349a   :  { %v8183_v19 = vpop.xlane.xlu1 %8182 }
0x349b   :  { %10983 = vpow2.f32 %v8186_v18  ;;  %v8185_v20 = vsub.f32 %v8177_v14, %v8183_v19  ;;  %v9149_v14 = vld [vmem:[%s12480_s4 + $0x140] sm:$0xff]  ;;  %v9152_v18 = vld [vmem:[%s12480_s4 + $0x158] sm:$0xff] }
0x349c   :  { %v10828_v17 = vpack.c.bf16 %v9150_v16, %v9149_v14  ;;  %v10832_v19 = vpack.c.bf16 %v9152_v18, %v9151_v3 }
0x349d   :  { %v8188_v21 = vmul.f32 1.442695, %v8185_v20  ;;  %v9153_v20 = vld [vmem:[%s12480_s4 + $0x160] sm:$0xff] }
0x349f   :  { %10985 = vpow2.f32 %v8188_v21  ;;  %v9154_v21 = vld [vmem:[%s12480_s4 + $0x168] sm:$0xff] }
0x34a5   :  { %v10984_v22 = vpop.eup %10983 }
0x34a6   :  { %v8190_v23 = vsel %vm320_vm2, %v10984_v22, 0.0 }
0x34a7   :  { %8191 = vadd.xlane.f32.xlu0 %v8190_v23 }
0x34a9   :  { %v10986_v24 = vpop.eup %10985 }
0x34aa   :  { %v8193_v26 = vsel %vm320_vm2, %v10986_v24, 0.0 }
0x34ab   :  { %8194 = vadd.xlane.f32.xlu1 %v8193_v26 }
0x3534   :  { %v8192_v15 = vpop.xlane.xlu0 %8191 }
0x3535   :  { %10987 = vrcp.f32 %v8192_v15 }
0x3538   :  { %v8195_v29 = vpop.xlane.xlu1 %8194 }
0x3539   :  { %10989 = vrcp.f32 %v8195_v29 }
0x353f   :  { %v10988_v30 = vpop.eup %10987 }
0x3540   :  { %v8198_v31 = vmul.f32 %v10988_v30, %v10984_v22  ;;  %v10836_v22 = vpack.c.bf16 %v9154_v21, %v9153_v20 }
0x3542   :  { %10367 = vmatmul.mubr.msk.f32.vlgmr.msra.gmra.mrb[104].mxu1 %vm320_vm2, %v8198_v31  ;;  %v8468_v31 = vrot.slane %v12035_v37, %v11524_v27  ;;  %v9155_v27 = vld [vmem:[%s12480_s4 + $0x170] sm:$0xff] }
0x3543   :  { %v10990_v33 = vpop.eup %10989  ;;  %10807 = vmatpush3.bf16.msra.mxu1 %v10804_v5 }
0x3544   :  { %v8199_v34 = vmul.f32 %v10990_v33, %v10986_v24  ;;  %10809 = vmatprep.subr.bf16.mxu1 %v10808_v6 }
0x3546   :  { %10372 = vmatmul.mubr.msk.f32.vlgmr.msra.gmra.mrb[74].mxu0 %vm320_vm2, %v8199_v34 }
0x3547   :  { %10375 = vmatpush3.msra.mxu0 %v9130_v35  ;;  %10811 = vmatpush3.bf16.msra.mxu1 %v10808_v6 }
0x3548   :  { %10813 = vmatprep.subr.bf16.mxu0 %v10812_v9 }
0x3615   :  { %v8269_v36 = vpop.f32.mrb[104].mxu1 }
0x3616   :  { %v10368_v44 = vpop.f32.mrb[105].mxu1  ;;  %10376 = vmatprep.mubr.msk.f32.mxu0 %vm320_vm2, %v8269_v36 }
0x3617   :  { %v8474_v44 = vrot.slane %v12035_v37, %v11527_v28  ;;  %v9157_v28 = vld [vmem:[%s12479_s3 + $0x60] sm:$0xff]  ;;  %v9158_v37 = vld [vmem:[%s12479_s3 + $0x68] sm:$0xff] }
0x3619   :  { %v8342_v47 = vpop.f32.mrb[74].mxu0 }
0x361a   :  { %v10373_v48 = vpop.f32.mrb[75].mxu0  ;;  %10377 = vmatmul.mubr.msk.f32.vlgmr.msra.gmra.mrb[60].mxu0 %vm320_vm2, %v8342_v47 }
0x361b   :  { %10815 = vmatpush3.bf16.msra.mxu0 %v10812_v9 }
0x361c   :  { %10817 = vmatprep.subr.bf16.mxu0 %v10816_v10 }
0x361f   :  { %10819 = vmatpush3.bf16.msra.mxu0 %v10816_v10 }
0x3620   :  { %10821 = vmatprep.subr.bf16.mxu0 %v10820_v12 }
0x3623   :  { %10823 = vmatpush3.bf16.msra.mxu0 %v10820_v12 }
0x3624   :  { %10825 = vmatprep.subr.bf16.mxu0 %v10824_v13 }
0x3627   :  { %10827 = vmatpush3.bf16.msra.mxu0 %v10824_v13 }
0x3628   :  { %10829 = vmatprep.subr.bf16.mxu0 %v10828_v17 }
0x362b   :  { %10831 = vmatpush3.bf16.msra.mxu0 %v10828_v17 }
0x362c   :  { %10833 = vmatprep.subr.bf16.mxu0 %v10832_v19 }
0x362f   :  { %10835 = vmatpush3.bf16.msra.mxu0 %v10832_v19 }
0x3630   :  { %10837 = vmatprep.subr.bf16.mxu0 %v10836_v22 }
0x3633   :  { %10839 = vmatpush3.bf16.msra.mxu0 %v10836_v22 }
0x36ed   :  { %v10378_v1 = vpop.f32.mrb[60].mxu0 }
0x36ee   :  { %v8432_v0 = vadd.f32 %v10378_v1, %v12002_v46  ;;  %v8420_v51 = vpop.f32.mrb[61].mxu0 }
0x36ef   :  { %v8431_v54 = vadd.f32 %v8420_v51, %v12004_v7 }
0x36f0   :  { %v12350_v59 = vadd.f32 %v8436_v50, %v8432_v0  ;;  %v9156_v0 = vld [vmem:[%s12480_s4 + $0x178] sm:$0xff] }
0x36f1   :  { %v12352_v55 = vadd.f32 %v8436_v50, %v8431_v54  ;;  %v10840_v51 = vpack.c.bf16 %v9156_v0, %v9155_v27  ;;  %v10844_v54 = vpack.c.bf16 %v9158_v37, %v9157_v28 }
0x36f2   :  { %v8442_v62 = vsel %vm35_vm0, %v12350_v59, 0.0 }
0x36f3   :  { %8443 = vadd.xlane.f32.xlu1 %v8442_v62  ;;  %v8439_v42 = vsel %vm35_vm0, %v12352_v55, 0.0  ;;  %10841 = vmatprep.subr.bf16.mxu0 %v10840_v51  ;;  %v9138_v62 = vld [vmem:[%s12481_s5 + $0x2] ss:$0 sm:$0xff] }
0x36f4   :  { %8440 = vadd.xlane.f32.xlu0 %v8439_v42  ;;  %10843 = vmatpush3.bf16.msra.mxu0 %v10840_v51 }
0x36f5   :  { %10845 = vmatprep.subr.bf16.mxu1 %v10844_v54 }
0x3780   :  { %v8444_v38 = vpop.xlane.xlu1 %8443 }
0x3781   :  { %v8446_v32 = vmul.f32 0.03125, %v8444_v38  ;;  %v8441_v63 = vpop.xlane.xlu0 %8440 }
0x3782   :  { %v8445_v61 = vmul.f32 0.03125, %v8441_v63 }
0x3783   :  { %v12359_v46 = vsub.f32 %v12350_v59, %v8446_v32 }
0x3784   :  { %v12362_v7 = vsub.f32 %v12352_v55, %v8445_v61 }
0x3785   :  { %v8450_v2 = vmul.f32 %v12359_v46, %v12359_v46 }
0x3786   :  { %v8449_v52 = vmul.f32 %v12362_v7, %v12362_v7 }
0x3787   :  { %v8454_v4 = vsel %vm35_vm0, %v8450_v2, 0.0  ;;  %v9160_v2 = vld [vmem:[%s12479_s3 + $0x78] sm:$0xff] }
0x3788   :  { %8455 = vadd.xlane.f32.xlu1 %v8454_v4  ;;  %v8451_v57 = vsel %vm35_vm0, %v8449_v52, 0.0 }
0x3789   :  { %8452 = vadd.xlane.f32.xlu0 %v8451_v57  ;;  %v10995_v57 = vld [vmem:[%s12482_s6 + $0x10] sm:$0x3f]  ;;  %s10996_s6 = scalar_lea.vmem %s8775_s21, 256 }
0x378a   :  { %v8670_v39 = vrot.slane %v10995_v57, %v11550_v58  ;;  %p10997_p0 = scmp.ne.s32.totalorder %s8775_s21, %s10996_s6  ;;  %p11002_p2 = scmp.lt.s32.totalorder %s10996_s6, %s10996_s6 }
0x378c   :  { %p11003_p3 = por %p11002_p2, %p11001_p1 }
0x378e   :  { %p11004_p4 = pnand %p11003_p3, %p10997_p0 }
0x3815   :  { %v8456_v23 = vpop.xlane.xlu1 %8455 }
0x3816   :  { %v8458_v24 = vmul.f32 0.03125, %v8456_v23  ;;  %v8453_v26 = vpop.xlane.xlu0 %8452 }
0x3817   :  { %v8457_v15 = vmul.f32 0.03125, %v8453_v26 }
0x3818   :  { %v8460_v29 = vadd.f32 1e-05, %v8458_v24 }
0x3819   :  { %v8459_v30 = vadd.f32 1e-05, %v8457_v15 }
0x381a   :  { %10991 = vrsqrt.f32 %v8460_v29 }
0x381b   :  { %10993 = vrsqrt.f32 %v8459_v30 }
0x3824   :  { %v10992_v33 = vpop.eup %10991 }
0x3825   :  { %v10994_v34 = vpop.eup %10993  ;;  %v8464_v35 = vmul.f32 %v10992_v33, %v12359_v46 }
0x3826   :  { %v8463_v36 = vmul.f32 %v10994_v34, %v12362_v7  ;;  %v9159_v7 = vld [vmem:[%s12479_s3 + $0x70] sm:$0xff] }
0x3827   :  { %v8470_v47 = vmul.f32 %v8468_v31, %v8464_v35  ;;  %v10848_v52 = vpack.c.bf16 %v9160_v2, %v9159_v7 }
0x3828   :  { %v8469_v48 = vmul.f32 %v8468_v31, %v8463_v36 }
0x3829   :  { %v8476_v1 = vadd.f32 %v8474_v44, %v8470_v47 }
0x382a   :  { %v8475_v50 = vadd.f32 %v8474_v44, %v8469_v48 }
0x382c   :  { %10387 = vmatprep.mubr.msk.f32.mxu1 %vm35_vm0, %v8475_v50 }
0x382d   :  { %10388 = vmatmul.mubr.msk.f32.vlgmr.msra.gmra.mrb[106].mxu1 %vm35_vm0, %v8476_v1 }
0x382e   :  { %10847 = vmatpush3.bf16.msra.mxu1 %v10844_v54 }
0x382f   :  { %10849 = vmatprep.subr.bf16.mxu1 %v10848_v52 }
0x3832   :  { %10851 = vmatpush3.bf16.msra.mxu1 %v10848_v52 }
0x3900   :  { %v10389_v42 = vpop.f32.mrb[106].mxu1 }
0x3901   :  { %v8568_v38 = vadd.f32 %v10389_v42, %v9138_v62  ;;  %v8562_v32 = vpop.f32.mrb[107].mxu1 }
0x3902   :  { %v8563_v63 = vadd.f32 %v9138_v62, %v8562_v32 }
0x3903   :  { %v8572_v46 = vmax.f32 %v8568_v38, 0.0 }
0x3904   :  { %v8571_v61 = vmax.f32 %v8563_v63, 0.0 }
0x3906   :  { %10422 = vmatprep.mubr.f32.mxu0 %v8571_v61 }
0x3907   :  { %10423 = vmatmul.mubr.f32.vlgmr.msra.gmra.mrb[76].mxu0 %v8572_v46 }
0x39da   :  { %v10424_v4 = vpop.f32.mrb[76].mxu0 }
0x39db   :  { %v8666_v43 = vadd.f32 %v10424_v4, %v12350_v59  ;;  %v8656_v5 = vpop.f32.mrb[77].mxu0 }
0x39dc   :  { %v8665_v45 = vadd.f32 %v8656_v5, %v12352_v55 }
0x39dd   :  { %v8672_v6 = vadd.f32 %v8670_v39, %v8666_v43 }
0x39de   :  { %v8671_v41 = vadd.f32 %v8670_v39, %v8665_v45 }
0x39e0   :  { %10433 = vmatprep.mubr.msk.f32.mxu1 %vm35_vm0, %v8671_v41 }
0x39e1   :  { %10434 = vmatmul.mubr.msk.f32.vlgmr.msra.gmra.mrb[108].mxu1 %vm35_vm0, %v8672_v6 }
0x3ab4   :  { %v10435_v8 = vpop.f32.mrb[108].mxu1 }
0x3ab5   :  { %v8764_v49 = vadd.f32 %v10435_v8, %v9162_v56  ;;  %v8758_v58 = vpop.f32.mrb[109].mxu1 }
0x3ab6   :  { %v8759_v9 = vadd.f32 %v9162_v56, %v8758_v58 }
0x3ab7   :  { %8768 = vst [vmem:[#allocation2 + $0x8] sm:$0xff] %v8764_v49 }
0x3ab8   :  { %8767 = vst [vmem:[#allocation2] sm:$0xff] %v8759_v9 }
0x3ab9   :  { %11007 = shalt.err (!%p11004_p4)
}
0x3aba   :  { %s11008_s5 = scalar_lea.hbm %s12483_s7, 256 }
0x3abb   :  { %p11009_p5 = scmp.ne.s32.totalorder %s12483_s7, %s11008_s5  ;;  %p11012_p6 = scmp.lt.u32.totalorder %s11008_s5, %s12483_s7 }
0x3abd   :  { %p11014_p7 = pnand %p11012_p6, %p11009_p5 }
0x3abf   :  { %11017 = shalt.err (!%p11014_p7)
}
0x3ac0   :  { %s11023_s0 = smov 128   ;;  %s11024_s28 = smov 8  }
0x3ac1   :  { %8780 = dma.vmem_to_hbm [thread:$0]  %s8775_s21, 256, %s12483_s7, [#allocation3], %s11023_s0, %s11023_s0, %s11024_s28  }
0x3ac2   :  { %11018 = dma.done.wait [#allocation3], 256  }
0x3ac3   :  { %11019 = vsyncadd [#allocation3], 4294967040 }
0x3ac4   :  { %8784 = vsyncpa [#allocation3], 1 }

</bundles_post_ra>
